<compile_context>
chip_gen: v7x
topology: tpu7x:2x2x1
jax: 0.10.0
libtpu: 0.0.40
codegen_flags: <defaults>
</compile_context>

<pallas_src>
import functools

import jax
import jax.numpy as jnp
from jax.experimental import pallas as pl
from jax.experimental.pallas import tpu as pltpu


# ----------------------------------------------------------------------------
# Host-side weight staging (pure layout plumbing, done once outside the kernel)
# ----------------------------------------------------------------------------
def _conv_taps(w, width_in, width_out):
    """Per-kernel-row conv matrices, shape [kh, 128, 256].

    Row of tap i = input lane (c_in*width_in + w_in), zero-padded to 128.
    Column       = pool_width_parity*128 + (c_out*(width_out//2) + pooled_w),
    each half zero-padded to 128, so the width half of the 2x2 max-pool is
    simply max(cols[:128], cols[128:]) of the (accumulated) matmul output.
    """
    o, c, kh, kw = w.shape
    half = width_out // 2
    sel = (jnp.arange(width_in)[None, :, None]
           == (jnp.arange(width_out)[None, None, :]
               + jnp.arange(kw)[:, None, None])).astype(w.dtype)   # [kw,win,wout]
    m = jnp.einsum('ocid,dwp->icwop', w, sel)          # [kh, c, win, o, wout]
    m = m.reshape(kh, c * width_in, o, half, 2)        # [kh, cw, o, pw, parity]
    m = jnp.transpose(m, (0, 1, 4, 2, 3))              # [kh, cw, parity, o, pw]
    m = m.reshape(kh, c * width_in, 2, o * half)
    m = jnp.pad(m, ((0, 0), (0, 128 - c * width_in),
                    (0, 0), (0, 128 - o * half)))
    return m.reshape(kh, 128, 256)


def _conv_bias(b, width_out):
    half = width_out // 2
    row = jnp.pad(jnp.repeat(b, half), (0, 128 - b.shape[0] * half))
    return jnp.tile(row, 2)[None, :].astype(jnp.float32)           # [1, 256]


# ----------------------------------------------------------------------------
# The fused Pallas kernel (whole network, one batch tile per grid step)
# ----------------------------------------------------------------------------
def _cnn_kernel(x_ref, w1_ref, b1_ref, w2_ref, b2_ref,
                wf1_ref, bf1_ref, wf2_ref, bf2_ref, wf3_ref, bf3_ref,
                out_ref, *, tb):
    f32 = jnp.float32
    cdt = w1_ref.dtype                    # MXU operand dtype (bf16 or f32)
    n8, n5 = 8 * tb, 5 * tb

    xv = x_ref[...]                       # [4, 9, tb, 128]; plane m = h mod 4

    # ---- conv1 (+ fused relu / 2x2 maxpool): 5 accumulated per-tap matmuls --
    # Row group (dh, s): rows ordered (q, image); conv output row oh = 4q+2s+dh.
    def conv1_half(dh, s):
        acc = None
        for i in range(5):
            c0 = 2 * s + dh + i           # input-row offset from 4q
            slab = xv[c0 % 4, c0 // 4:c0 // 4 + 8].reshape(n8, 128)
            d = jnp.dot(slab, w1_ref[i], preferred_element_type=f32)
            acc = d if acc is None else acc + d
        y = acc + b1_ref[...]
        return jnp.maximum(y[:, :128], y[:, 128:])    # width pool (lane-aligned)

    p1 = []                               # plane s = (pooled row) mod 2
    for s in (0, 1):                      # height pool over dh; relu folded in
        h = jnp.maximum(conv1_half(0, s), conv1_half(1, s))
        p1.append(jnp.maximum(h, 0.0).astype(cdt))    # [8*tb,128] rows (q, img)

    # ---- conv2 (+ fused relu / 2x2 maxpool): rows ordered (ph2, image) ------
    def conv2_half(dh):
        acc = None
        for i in range(5):
            c0 = dh + i
            slab = p1[c0 % 2][(c0 // 2) * tb:(c0 // 2) * tb + n5, :]
            d = jnp.dot(slab, w2_ref[i], preferred_element_type=f32)
            acc = d if acc is None else acc + d
        y = acc + b2_ref[...]
        return jnp.maximum(y[:, :128], y[:, 128:])

    p2 = jnp.maximum(jnp.maximum(conv2_half(0), conv2_half(1)), 0.0)
    p2 = p2.astype(cdt)                   # [5*tb, 128] rows (ph2, image)

    # ---- flatten + fc1 as 5 accumulated matmuls over contiguous slabs -------
    acc = None
    for k in range(5):
        d = jnp.dot(p2[k * tb:(k + 1) * tb, :], wf1_ref[k],
                    preferred_element_type=f32)
        acc = d if acc is None else acc + d
    z = jnp.maximum(acc + bf1_ref[...], 0.0).astype(cdt)            # [tb, 128]
    z = jnp.maximum(jnp.dot(z, wf2_ref[...], preferred_element_type=f32)
                    + bf2_ref[...], 0.0).astype(cdt)                # [tb, 128]
    z = jnp.dot(z, wf3_ref[...], preferred_element_type=f32) + bf3_ref[...]
    out_ref[...] = z.astype(out_ref.dtype)                          # [tb, 128]


# ----------------------------------------------------------------------------
# Wrapper: host-side staging + single pallas_call
# ----------------------------------------------------------------------------
def cnn_forward(params, x, *, tile_b=64, mxu_dtype=jnp.bfloat16):
    """Forward pass. x: [B, 3, 32, 32] float32 (NCHW, CIFAR-10 geometry)."""
    B = x.shape[0]
    assert x.shape[1:] == (3, 32, 32), x.shape

    # batch tile: 8-aligned; prefer >= 2 grid steps when batch allows (v7x megacore)
    bp8 = ((B + 7) // 8) * 8
    tb = max(8, (min(int(tile_b), bp8) // 8) * 8)
    if bp8 > 8 and bp8 <= tb:
        tb = max(8, ((bp8 // 2 + 7) // 8) * 8)
    bp = ((B + tb - 1) // tb) * tb
    if bp != B:
        x = jnp.concatenate([x, jnp.zeros((bp - B,) + x.shape[1:], x.dtype)], 0)

    # Input staging: one fused array. Plane m = h mod 4, rows ordered (r, image),
    # lanes (c*32 + w) zero-padded 96 -> 128, plus one zero pad row (r = 8).
    xr = x.reshape(bp, 3, 8, 4, 32)                      # [b, c, r, m, w]
    xr = jnp.transpose(xr, (3, 2, 0, 1, 4)).reshape(4, 8, bp, 96)
    xin = jnp.zeros((4, 9, bp, 128), mxu_dtype)
    xin = xin.at[:, :8, :, :96].set(xr.astype(mxu_dtype))

    # Weight staging (all lane-padded, MXU-friendly).
    w1t = _conv_taps(params["conv1_w"], 32, 28).astype(mxu_dtype)   # [5,128,256]
    b1r = _conv_bias(params["conv1_b"], 28)                         # [1,256]
    w2t = _conv_taps(params["conv2_w"], 14, 10).astype(mxu_dtype)   # [5,128,256]
    b2r = _conv_bias(params["conv2_b"], 10)                         # [1,256]

    # fc1 columns permuted from torch (c, h, w) to the kernel's (h, c, w); the
    # pooled-row index h becomes the 5 accumulated fc1 taps.
    wf1 = params["fc1_w"].reshape(120, 16, 5, 5)
    wf1 = jnp.transpose(wf1, (2, 1, 3, 0)).reshape(5, 80, 120)
    wf1 = jnp.pad(wf1, ((0, 0), (0, 48), (0, 8))).astype(mxu_dtype)  # [5,128,128]
    bf1 = jnp.pad(params["fc1_b"], (0, 8))[None, :].astype(jnp.float32)
    wf2 = jnp.pad(params["fc2_w"].T, ((0, 8), (0, 64))).astype(mxu_dtype)
    bf2 = jnp.pad(params["fc2_b"], (0, 64))[None, :].astype(jnp.float32)
    wf3 = jnp.pad(params["fc3_w"].T, ((0, 64), (0, 118))).astype(mxu_dtype)
    bf3 = jnp.pad(params["fc3_b"], (0, 118))[None, :].astype(jnp.float32)

    weights = (w1t, b1r, w2t, b2r, wf1, bf1, wf2, bf2, wf3, bf3)

    def inv(nd):                       # grid-invariant (VMEM-resident) weights
        return lambda t: (0,) * nd

    in_specs = ([pl.BlockSpec((4, 9, tb, 128), lambda t: (0, 0, t, 0))]
                + [pl.BlockSpec(a.shape, inv(a.ndim)) for a in weights])

    flops = 2 * bp * (20 * 8 * 128 * 256 + 10 * 5 * 128 * 256
                      + 5 * 128 * 128 + 2 * 128 * 128)
    bytes_acc = int(xin.size * xin.dtype.itemsize + bp * 128 * 4
                    + sum(int(a.size) * a.dtype.itemsize for a in weights))
    cost = pl.CostEstimate(flops=int(flops), transcendentals=0,
                           bytes_accessed=bytes_acc)

    out = pl.pallas_call(
        functools.partial(_cnn_kernel, tb=tb),
        out_shape=jax.ShapeDtypeStruct((bp, 128), jnp.float32),
        grid=(bp // tb,),
        in_specs=in_specs,
        out_specs=pl.BlockSpec((tb, 128), lambda t: (t, 0)),
        compiler_params=pltpu.CompilerParams(
            dimension_semantics=("parallel",),
            vmem_limit_bytes=48 * 1024 * 1024),
        cost_estimate=cost,
    )(xin, *weights)
    return out[:B, :10]


# ----------------------------------------------------------------------------
# Parameters (deterministic, PyTorch-like uniform(+-1/sqrt(fan_in)))
# ----------------------------------------------------------------------------
def init_params(key):
    ks = jax.random.split(key, 10)

    def u(k, shape, fan_in):
        bound = 1.0 / (fan_in ** 0.5)
        return jax.random.uniform(k, shape, jnp.float32, -bound, bound)

    return {
        "conv1_w": u(ks[0], (6, 3, 5, 5), 3 * 25),
        "conv1_b": u(ks[1], (6,), 3 * 25),
        "conv2_w": u(ks[2], (16, 6, 5, 5), 6 * 25),
        "conv2_b": u(ks[3], (16,), 6 * 25),
        "fc1_w": u(ks[4], (120, 400), 400),
        "fc1_b": u(ks[5], (120,), 400),
        "fc2_w": u(ks[6], (64, 120), 120),
        "fc2_b": u(ks[7], (64,), 120),
        "fc3_w": u(ks[8], (10, 64), 64),
        "fc3_b": u(ks[9], (10,), 64),
    }


# Plain-XLA reference with the exact PyTorch semantics (validation only).
def cnn_reference(params, x):
    dn = ("NCHW", "OIHW", "NCHW")
    hp = jax.lax.Precision.HIGHEST
    y = jax.lax.conv_general_dilated(x, params["conv1_w"], (1, 1), "VALID",
                                     dimension_numbers=dn, precision=hp)
    y = jax.nn.relu(y + params["conv1_b"][None, :, None, None])
    y = jax.lax.reduce_window(y, -jnp.inf, jax.lax.max,
                              (1, 1, 2, 2), (1, 1, 2, 2), "VALID")
    y = jax.lax.conv_general_dilated(y, params["conv2_w"], (1, 1), "VALID",
                                     dimension_numbers=dn, precision=hp)
    y = jax.nn.relu(y + params["conv2_b"][None, :, None, None])
    y = jax.lax.reduce_window(y, -jnp.inf, jax.lax.max,
                              (1, 1, 2, 2), (1, 1, 2, 2), "VALID")
    y = y.reshape(y.shape[0], 400)
    y = jax.nn.relu(jnp.dot(y, params["fc1_w"].T, precision=hp) + params["fc1_b"])
    y = jax.nn.relu(jnp.dot(y, params["fc2_w"].T, precision=hp) + params["fc2_b"])
    return jnp.dot(y, params["fc3_w"].T, precision=hp) + params["fc3_b"]


if __name__ == "__main__":
    key = jax.random.PRNGKey(0)
    pkey, xkey = jax.random.split(key)
    params = init_params(pkey)
    # CIFAR-10 geometry is forced by the fc1 = 16*5*5 flatten: input is 3x32x32.
    x = jax.random.normal(xkey, (2, 3, 32, 32), jnp.float32)

    out = jax.jit(cnn_forward)(params, x)          # default: bf16 MXU operands
    jax.block_until_ready(out)
    assert out.shape == (2, 10) and out.dtype == jnp.float32

    ref = jax.jit(cnn_reference)(params, x)
    out_f32 = jax.jit(functools.partial(cnn_forward, mxu_dtype=jnp.float32))(params, x)
    err_f32 = float(jnp.max(jnp.abs(out_f32 - ref)))
    err_bf16 = float(jnp.max(jnp.abs(out - ref)))
    assert err_f32 < 2e-2, f"f32-path mismatch vs reference: {err_f32}"
    assert err_bf16 < 1.5e-1, f"bf16-path mismatch vs reference: {err_bf16}"
    print("KERNEL_OK")
</pallas_src>

<mosaic_0001>
module attributes {stable_mosaic.version = 11 : i64} {
  func.func @_cnn_kernel(%arg0: i32, %arg1: memref<4x9x8x128xbf16, #tpu.memory_space<vmem>>, %arg2: memref<5x128x256xbf16, #tpu.memory_space<vmem>>, %arg3: memref<1x256xf32, #tpu.memory_space<vmem>>, %arg4: memref<5x128x256xbf16, #tpu.memory_space<vmem>>, %arg5: memref<1x256xf32, #tpu.memory_space<vmem>>, %arg6: memref<5x128x128xbf16, #tpu.memory_space<vmem>>, %arg7: memref<1x128xf32, #tpu.memory_space<vmem>>, %arg8: memref<128x128xbf16, #tpu.memory_space<vmem>>, %arg9: memref<1x128xf32, #tpu.memory_space<vmem>>, %arg10: memref<128x128xbf16, #tpu.memory_space<vmem>>, %arg11: memref<1x128xf32, #tpu.memory_space<vmem>>, %arg12: memref<8x128xf32, #tpu.memory_space<vmem>>) attributes {dimension_semantics = [#tpu.dimension_semantics<parallel>], iteration_bounds = array<i64: 1>, scalar_prefetch = 0 : i64, scratch_operands = 0 : i64, tpu.core_type = #tpu.core_type<tc>, window_params = [{transform_indices = @transform_0, window_bounds = array<i64: 4, 9, 8, 128>}, {pipeline_mode = #tpu.pipeline_mode<synchronous>, transform_indices = @transform_1, window_bounds = array<i64: 5, 128, 256>}, {pipeline_mode = #tpu.pipeline_mode<synchronous>, transform_indices = @transform_2, window_bounds = array<i64: 1, 256>}, {pipeline_mode = #tpu.pipeline_mode<synchronous>, transform_indices = @transform_3, window_bounds = array<i64: 5, 128, 256>}, {pipeline_mode = #tpu.pipeline_mode<synchronous>, transform_indices = @transform_4, window_bounds = array<i64: 1, 256>}, {pipeline_mode = #tpu.pipeline_mode<synchronous>, transform_indices = @transform_5, window_bounds = array<i64: 5, 128, 128>}, {pipeline_mode = #tpu.pipeline_mode<synchronous>, transform_indices = @transform_6, window_bounds = array<i64: 1, 128>}, {pipeline_mode = #tpu.pipeline_mode<synchronous>, transform_indices = @transform_7, window_bounds = array<i64: 128, 128>}, {pipeline_mode = #tpu.pipeline_mode<synchronous>, transform_indices = @transform_8, window_bounds = array<i64: 1, 128>}, {pipeline_mode = #tpu.pipeline_mode<synchronous>, transform_indices = @transform_9, window_bounds = array<i64: 128, 128>}, {pipeline_mode = #tpu.pipeline_mode<synchronous>, transform_indices = @transform_10, window_bounds = array<i64: 1, 128>}, {transform_indices = @transform_11, window_bounds = array<i64: 8, 128>}]} {
    %c0 = arith.constant 0 : index
    %c0_0 = arith.constant 0 : index
    %c0_1 = arith.constant 0 : index
    %c0_2 = arith.constant 0 : index
    %0 = vector.load %arg1[%c0, %c0_0, %c0_1, %c0_2] : memref<4x9x8x128xbf16, #tpu.memory_space<vmem>>, vector<4x9x8x128xbf16>
    %1 = vector.extract_strided_slice %0 {offsets = [0, 0, 0, 0], sizes = [1, 8, 8, 128], strides = [1, 1, 1, 1]} : vector<4x9x8x128xbf16> to vector<1x8x8x128xbf16>
    %2 = vector.shape_cast %1 : vector<1x8x8x128xbf16> to vector<8x8x128xbf16>
    %3 = vector.shape_cast %2 : vector<8x8x128xbf16> to vector<64x128xbf16>
    %c0_3 = arith.constant 0 : index
    %c0_4 = arith.constant 0 : index
    %c0_5 = arith.constant 0 : index
    %4 = vector.load %arg2[%c0_3, %c0_4, %c0_5] : memref<5x128x256xbf16, #tpu.memory_space<vmem>>, vector<1x128x256xbf16>
    %5 = vector.shape_cast %4 : vector<1x128x256xbf16> to vector<128x256xbf16>
    %cst = arith.constant dense<0.000000e+00> : vector<64x256xf32>
    %6 = tpu.matmul %3, %5, %cst {dimension_numbers = #tpu.dot_dimension_numbers<[1], [0], [0], [1], [0, 0, 1, 1], [], []>} : vector<64x128xbf16>, vector<128x256xbf16>, vector<64x256xf32> -> vector<64x256xf32>
    %7 = vector.extract_strided_slice %0 {offsets = [1, 0, 0, 0], sizes = [1, 8, 8, 128], strides = [1, 1, 1, 1]} : vector<4x9x8x128xbf16> to vector<1x8x8x128xbf16>
    %8 = vector.shape_cast %7 : vector<1x8x8x128xbf16> to vector<8x8x128xbf16>
    %9 = vector.shape_cast %8 : vector<8x8x128xbf16> to vector<64x128xbf16>
    %c1 = arith.constant 1 : index
    %c0_6 = arith.constant 0 : index
    %c0_7 = arith.constant 0 : index
    %10 = vector.load %arg2[%c1, %c0_6, %c0_7] : memref<5x128x256xbf16, #tpu.memory_space<vmem>>, vector<1x128x256xbf16>
    %11 = vector.shape_cast %10 : vector<1x128x256xbf16> to vector<128x256xbf16>
    %cst_8 = arith.constant dense<0.000000e+00> : vector<64x256xf32>
    %12 = tpu.matmul %9, %11, %cst_8 {dimension_numbers = #tpu.dot_dimension_numbers<[1], [0], [0], [1], [0, 0, 1, 1], [], []>} : vector<64x128xbf16>, vector<128x256xbf16>, vector<64x256xf32> -> vector<64x256xf32>
    %13 = arith.addf %6, %12 : vector<64x256xf32>
    %14 = vector.extract_strided_slice %0 {offsets = [2, 0, 0, 0], sizes = [1, 8, 8, 128], strides = [1, 1, 1, 1]} : vector<4x9x8x128xbf16> to vector<1x8x8x128xbf16>
    %15 = vector.shape_cast %14 : vector<1x8x8x128xbf16> to vector<8x8x128xbf16>
    %16 = vector.shape_cast %15 : vector<8x8x128xbf16> to vector<64x128xbf16>
    %c2 = arith.constant 2 : index
    %c0_9 = arith.constant 0 : index
    %c0_10 = arith.constant 0 : index
    %17 = vector.load %arg2[%c2, %c0_9, %c0_10] : memref<5x128x256xbf16, #tpu.memory_space<vmem>>, vector<1x128x256xbf16>
    %18 = vector.shape_cast %17 : vector<1x128x256xbf16> to vector<128x256xbf16>
    %cst_11 = arith.constant dense<0.000000e+00> : vector<64x256xf32>
    %19 = tpu.matmul %16, %18, %cst_11 {dimension_numbers = #tpu.dot_dimension_numbers<[1], [0], [0], [1], [0, 0, 1, 1], [], []>} : vector<64x128xbf16>, vector<128x256xbf16>, vector<64x256xf32> -> vector<64x256xf32>
    %20 = arith.addf %13, %19 : vector<64x256xf32>
    %21 = vector.extract_strided_slice %0 {offsets = [3, 0, 0, 0], sizes = [1, 8, 8, 128], strides = [1, 1, 1, 1]} : vector<4x9x8x128xbf16> to vector<1x8x8x128xbf16>
    %22 = vector.shape_cast %21 : vector<1x8x8x128xbf16> to vector<8x8x128xbf16>
    %23 = vector.shape_cast %22 : vector<8x8x128xbf16> to vector<64x128xbf16>
    %c3 = arith.constant 3 : index
    %c0_12 = arith.constant 0 : index
    %c0_13 = arith.constant 0 : index
    %24 = vector.load %arg2[%c3, %c0_12, %c0_13] : memref<5x128x256xbf16, #tpu.memory_space<vmem>>, vector<1x128x256xbf16>
    %25 = vector.shape_cast %24 : vector<1x128x256xbf16> to vector<128x256xbf16>
    %cst_14 = arith.constant dense<0.000000e+00> : vector<64x256xf32>
    %26 = tpu.matmul %23, %25, %cst_14 {dimension_numbers = #tpu.dot_dimension_numbers<[1], [0], [0], [1], [0, 0, 1, 1], [], []>} : vector<64x128xbf16>, vector<128x256xbf16>, vector<64x256xf32> -> vector<64x256xf32>
    %27 = arith.addf %20, %26 : vector<64x256xf32>
    %28 = vector.extract_strided_slice %0 {offsets = [0, 1, 0, 0], sizes = [1, 8, 8, 128], strides = [1, 1, 1, 1]} : vector<4x9x8x128xbf16> to vector<1x8x8x128xbf16>
    %29 = vector.shape_cast %28 : vector<1x8x8x128xbf16> to vector<8x8x128xbf16>
    %30 = vector.shape_cast %29 : vector<8x8x128xbf16> to vector<64x128xbf16>
    %c4 = arith.constant 4 : index
    %c0_15 = arith.constant 0 : index
    %c0_16 = arith.constant 0 : index
    %31 = vector.load %arg2[%c4, %c0_15, %c0_16] : memref<5x128x256xbf16, #tpu.memory_space<vmem>>, vector<1x128x256xbf16>
    %32 = vector.shape_cast %31 : vector<1x128x256xbf16> to vector<128x256xbf16>
    %cst_17 = arith.constant dense<0.000000e+00> : vector<64x256xf32>
    %33 = tpu.matmul %30, %32, %cst_17 {dimension_numbers = #tpu.dot_dimension_numbers<[1], [0], [0], [1], [0, 0, 1, 1], [], []>} : vector<64x128xbf16>, vector<128x256xbf16>, vector<64x256xf32> -> vector<64x256xf32>
    %34 = arith.addf %27, %33 : vector<64x256xf32>
    %c0_18 = arith.constant 0 : index
    %c0_19 = arith.constant 0 : index
    %35 = vector.load %arg3[%c0_18, %c0_19] : memref<1x256xf32, #tpu.memory_space<vmem>>, vector<1x256xf32>
    %36 = vector.broadcast %35 : vector<1x256xf32> to vector<64x256xf32>
    %37 = arith.addf %34, %36 : vector<64x256xf32>
    %38 = vector.extract_strided_slice %37 {offsets = [0, 0], sizes = [64, 128], strides = [1, 1]} : vector<64x256xf32> to vector<64x128xf32>
    %39 = vector.extract_strided_slice %37 {offsets = [0, 128], sizes = [64, 128], strides = [1, 1]} : vector<64x256xf32> to vector<64x128xf32>
    %40 = arith.maximumf %38, %39 : vector<64x128xf32>
    %41 = vector.extract_strided_slice %0 {offsets = [1, 0, 0, 0], sizes = [1, 8, 8, 128], strides = [1, 1, 1, 1]} : vector<4x9x8x128xbf16> to vector<1x8x8x128xbf16>
    %42 = vector.shape_cast %41 : vector<1x8x8x128xbf16> to vector<8x8x128xbf16>
    %43 = vector.shape_cast %42 : vector<8x8x128xbf16> to vector<64x128xbf16>
    %c0_20 = arith.constant 0 : index
    %c0_21 = arith.constant 0 : index
    %c0_22 = arith.constant 0 : index
    %44 = vector.load %arg2[%c0_20, %c0_21, %c0_22] : memref<5x128x256xbf16, #tpu.memory_space<vmem>>, vector<1x128x256xbf16>
    %45 = vector.shape_cast %44 : vector<1x128x256xbf16> to vector<128x256xbf16>
    %cst_23 = arith.constant dense<0.000000e+00> : vector<64x256xf32>
    %46 = tpu.matmul %43, %45, %cst_23 {dimension_numbers = #tpu.dot_dimension_numbers<[1], [0], [0], [1], [0, 0, 1, 1], [], []>} : vector<64x128xbf16>, vector<128x256xbf16>, vector<64x256xf32> -> vector<64x256xf32>
    %47 = vector.extract_strided_slice %0 {offsets = [2, 0, 0, 0], sizes = [1, 8, 8, 128], strides = [1, 1, 1, 1]} : vector<4x9x8x128xbf16> to vector<1x8x8x128xbf16>
    %48 = vector.shape_cast %47 : vector<1x8x8x128xbf16> to vector<8x8x128xbf16>
    %49 = vector.shape_cast %48 : vector<8x8x128xbf16> to vector<64x128xbf16>
    %c1_24 = arith.constant 1 : index
    %c0_25 = arith.constant 0 : index
    %c0_26 = arith.constant 0 : index
    %50 = vector.load %arg2[%c1_24, %c0_25, %c0_26] : memref<5x128x256xbf16, #tpu.memory_space<vmem>>, vector<1x128x256xbf16>
    %51 = vector.shape_cast %50 : vector<1x128x256xbf16> to vector<128x256xbf16>
    %cst_27 = arith.constant dense<0.000000e+00> : vector<64x256xf32>
    %52 = tpu.matmul %49, %51, %cst_27 {dimension_numbers = #tpu.dot_dimension_numbers<[1], [0], [0], [1], [0, 0, 1, 1], [], []>} : vector<64x128xbf16>, vector<128x256xbf16>, vector<64x256xf32> -> vector<64x256xf32>
    %53 = arith.addf %46, %52 : vector<64x256xf32>
    %54 = vector.extract_strided_slice %0 {offsets = [3, 0, 0, 0], sizes = [1, 8, 8, 128], strides = [1, 1, 1, 1]} : vector<4x9x8x128xbf16> to vector<1x8x8x128xbf16>
    %55 = vector.shape_cast %54 : vector<1x8x8x128xbf16> to vector<8x8x128xbf16>
    %56 = vector.shape_cast %55 : vector<8x8x128xbf16> to vector<64x128xbf16>
    %c2_28 = arith.constant 2 : index
    %c0_29 = arith.constant 0 : index
    %c0_30 = arith.constant 0 : index
    %57 = vector.load %arg2[%c2_28, %c0_29, %c0_30] : memref<5x128x256xbf16, #tpu.memory_space<vmem>>, vector<1x128x256xbf16>
    %58 = vector.shape_cast %57 : vector<1x128x256xbf16> to vector<128x256xbf16>
    %cst_31 = arith.constant dense<0.000000e+00> : vector<64x256xf32>
    %59 = tpu.matmul %56, %58, %cst_31 {dimension_numbers = #tpu.dot_dimension_numbers<[1], [0], [0], [1], [0, 0, 1, 1], [], []>} : vector<64x128xbf16>, vector<128x256xbf16>, vector<64x256xf32> -> vector<64x256xf32>
    %60 = arith.addf %53, %59 : vector<64x256xf32>
    %61 = vector.extract_strided_slice %0 {offsets = [0, 1, 0, 0], sizes = [1, 8, 8, 128], strides = [1, 1, 1, 1]} : vector<4x9x8x128xbf16> to vector<1x8x8x128xbf16>
    %62 = vector.shape_cast %61 : vector<1x8x8x128xbf16> to vector<8x8x128xbf16>
    %63 = vector.shape_cast %62 : vector<8x8x128xbf16> to vector<64x128xbf16>
    %c3_32 = arith.constant 3 : index
    %c0_33 = arith.constant 0 : index
    %c0_34 = arith.constant 0 : index
    %64 = vector.load %arg2[%c3_32, %c0_33, %c0_34] : memref<5x128x256xbf16, #tpu.memory_space<vmem>>, vector<1x128x256xbf16>
    %65 = vector.shape_cast %64 : vector<1x128x256xbf16> to vector<128x256xbf16>
    %cst_35 = arith.constant dense<0.000000e+00> : vector<64x256xf32>
    %66 = tpu.matmul %63, %65, %cst_35 {dimension_numbers = #tpu.dot_dimension_numbers<[1], [0], [0], [1], [0, 0, 1, 1], [], []>} : vector<64x128xbf16>, vector<128x256xbf16>, vector<64x256xf32> -> vector<64x256xf32>
    %67 = arith.addf %60, %66 : vector<64x256xf32>
    %68 = vector.extract_strided_slice %0 {offsets = [1, 1, 0, 0], sizes = [1, 8, 8, 128], strides = [1, 1, 1, 1]} : vector<4x9x8x128xbf16> to vector<1x8x8x128xbf16>
    %69 = vector.shape_cast %68 : vector<1x8x8x128xbf16> to vector<8x8x128xbf16>
    %70 = vector.shape_cast %69 : vector<8x8x128xbf16> to vector<64x128xbf16>
    %c4_36 = arith.constant 4 : index
    %c0_37 = arith.constant 0 : index
    %c0_38 = arith.constant 0 : index
    %71 = vector.load %arg2[%c4_36, %c0_37, %c0_38] : memref<5x128x256xbf16, #tpu.memory_space<vmem>>, vector<1x128x256xbf16>
    %72 = vector.shape_cast %71 : vector<1x128x256xbf16> to vector<128x256xbf16>
    %cst_39 = arith.constant dense<0.000000e+00> : vector<64x256xf32>
    %73 = tpu.matmul %70, %72, %cst_39 {dimension_numbers = #tpu.dot_dimension_numbers<[1], [0], [0], [1], [0, 0, 1, 1], [], []>} : vector<64x128xbf16>, vector<128x256xbf16>, vector<64x256xf32> -> vector<64x256xf32>
    %74 = arith.addf %67, %73 : vector<64x256xf32>
    %c0_40 = arith.constant 0 : index
    %c0_41 = arith.constant 0 : index
    %75 = vector.load %arg3[%c0_40, %c0_41] : memref<1x256xf32, #tpu.memory_space<vmem>>, vector<1x256xf32>
    %76 = vector.broadcast %75 : vector<1x256xf32> to vector<64x256xf32>
    %77 = arith.addf %74, %76 : vector<64x256xf32>
    %78 = vector.extract_strided_slice %77 {offsets = [0, 0], sizes = [64, 128], strides = [1, 1]} : vector<64x256xf32> to vector<64x128xf32>
    %79 = vector.extract_strided_slice %77 {offsets = [0, 128], sizes = [64, 128], strides = [1, 1]} : vector<64x256xf32> to vector<64x128xf32>
    %80 = arith.maximumf %78, %79 : vector<64x128xf32>
    %81 = arith.maximumf %40, %80 : vector<64x128xf32>
    %cst_42 = arith.constant 0.000000e+00 : f32
    %82 = vector.broadcast %cst_42 : f32 to vector<64x128xf32>
    %83 = arith.maximumf %81, %82 : vector<64x128xf32>
    %84 = arith.truncf %83 : vector<64x128xf32> to vector<64x128xbf16>
    %85 = vector.extract_strided_slice %0 {offsets = [2, 0, 0, 0], sizes = [1, 8, 8, 128], strides = [1, 1, 1, 1]} : vector<4x9x8x128xbf16> to vector<1x8x8x128xbf16>
    %86 = vector.shape_cast %85 : vector<1x8x8x128xbf16> to vector<8x8x128xbf16>
    %87 = vector.shape_cast %86 : vector<8x8x128xbf16> to vector<64x128xbf16>
    %c0_43 = arith.constant 0 : index
    %c0_44 = arith.constant 0 : index
    %c0_45 = arith.constant 0 : index
    %88 = vector.load %arg2[%c0_43, %c0_44, %c0_45] : memref<5x128x256xbf16, #tpu.memory_space<vmem>>, vector<1x128x256xbf16>
    %89 = vector.shape_cast %88 : vector<1x128x256xbf16> to vector<128x256xbf16>
    %cst_46 = arith.constant dense<0.000000e+00> : vector<64x256xf32>
    %90 = tpu.matmul %87, %89, %cst_46 {dimension_numbers = #tpu.dot_dimension_numbers<[1], [0], [0], [1], [0, 0, 1, 1], [], []>} : vector<64x128xbf16>, vector<128x256xbf16>, vector<64x256xf32> -> vector<64x256xf32>
    %91 = vector.extract_strided_slice %0 {offsets = [3, 0, 0, 0], sizes = [1, 8, 8, 128], strides = [1, 1, 1, 1]} : vector<4x9x8x128xbf16> to vector<1x8x8x128xbf16>
    %92 = vector.shape_cast %91 : vector<1x8x8x128xbf16> to vector<8x8x128xbf16>
    %93 = vector.shape_cast %92 : vector<8x8x128xbf16> to vector<64x128xbf16>
    %c1_47 = arith.constant 1 : index
    %c0_48 = arith.constant 0 : index
    %c0_49 = arith.constant 0 : index
    %94 = vector.load %arg2[%c1_47, %c0_48, %c0_49] : memref<5x128x256xbf16, #tpu.memory_space<vmem>>, vector<1x128x256xbf16>
    %95 = vector.shape_cast %94 : vector<1x128x256xbf16> to vector<128x256xbf16>
    %cst_50 = arith.constant dense<0.000000e+00> : vector<64x256xf32>
    %96 = tpu.matmul %93, %95, %cst_50 {dimension_numbers = #tpu.dot_dimension_numbers<[1], [0], [0], [1], [0, 0, 1, 1], [], []>} : vector<64x128xbf16>, vector<128x256xbf16>, vector<64x256xf32> -> vector<64x256xf32>
    %97 = arith.addf %90, %96 : vector<64x256xf32>
    %98 = vector.extract_strided_slice %0 {offsets = [0, 1, 0, 0], sizes = [1, 8, 8, 128], strides = [1, 1, 1, 1]} : vector<4x9x8x128xbf16> to vector<1x8x8x128xbf16>
    %99 = vector.shape_cast %98 : vector<1x8x8x128xbf16> to vector<8x8x128xbf16>
    %100 = vector.shape_cast %99 : vector<8x8x128xbf16> to vector<64x128xbf16>
    %c2_51 = arith.constant 2 : index
    %c0_52 = arith.constant 0 : index
    %c0_53 = arith.constant 0 : index
    %101 = vector.load %arg2[%c2_51, %c0_52, %c0_53] : memref<5x128x256xbf16, #tpu.memory_space<vmem>>, vector<1x128x256xbf16>
    %102 = vector.shape_cast %101 : vector<1x128x256xbf16> to vector<128x256xbf16>
    %cst_54 = arith.constant dense<0.000000e+00> : vector<64x256xf32>
    %103 = tpu.matmul %100, %102, %cst_54 {dimension_numbers = #tpu.dot_dimension_numbers<[1], [0], [0], [1], [0, 0, 1, 1], [], []>} : vector<64x128xbf16>, vector<128x256xbf16>, vector<64x256xf32> -> vector<64x256xf32>
    %104 = arith.addf %97, %103 : vector<64x256xf32>
    %105 = vector.extract_strided_slice %0 {offsets = [1, 1, 0, 0], sizes = [1, 8, 8, 128], strides = [1, 1, 1, 1]} : vector<4x9x8x128xbf16> to vector<1x8x8x128xbf16>
    %106 = vector.shape_cast %105 : vector<1x8x8x128xbf16> to vector<8x8x128xbf16>
    %107 = vector.shape_cast %106 : vector<8x8x128xbf16> to vector<64x128xbf16>
    %c3_55 = arith.constant 3 : index
    %c0_56 = arith.constant 0 : index
    %c0_57 = arith.constant 0 : index
    %108 = vector.load %arg2[%c3_55, %c0_56, %c0_57] : memref<5x128x256xbf16, #tpu.memory_space<vmem>>, vector<1x128x256xbf16>
    %109 = vector.shape_cast %108 : vector<1x128x256xbf16> to vector<128x256xbf16>
    %cst_58 = arith.constant dense<0.000000e+00> : vector<64x256xf32>
    %110 = tpu.matmul %107, %109, %cst_58 {dimension_numbers = #tpu.dot_dimension_numbers<[1], [0], [0], [1], [0, 0, 1, 1], [], []>} : vector<64x128xbf16>, vector<128x256xbf16>, vector<64x256xf32> -> vector<64x256xf32>
    %111 = arith.addf %104, %110 : vector<64x256xf32>
    %112 = vector.extract_strided_slice %0 {offsets = [2, 1, 0, 0], sizes = [1, 8, 8, 128], strides = [1, 1, 1, 1]} : vector<4x9x8x128xbf16> to vector<1x8x8x128xbf16>
    %113 = vector.shape_cast %112 : vector<1x8x8x128xbf16> to vector<8x8x128xbf16>
    %114 = vector.shape_cast %113 : vector<8x8x128xbf16> to vector<64x128xbf16>
    %c4_59 = arith.constant 4 : index
    %c0_60 = arith.constant 0 : index
    %c0_61 = arith.constant 0 : index
    %115 = vector.load %arg2[%c4_59, %c0_60, %c0_61] : memref<5x128x256xbf16, #tpu.memory_space<vmem>>, vector<1x128x256xbf16>
    %116 = vector.shape_cast %115 : vector<1x128x256xbf16> to vector<128x256xbf16>
    %cst_62 = arith.constant dense<0.000000e+00> : vector<64x256xf32>
    %117 = tpu.matmul %114, %116, %cst_62 {dimension_numbers = #tpu.dot_dimension_numbers<[1], [0], [0], [1], [0, 0, 1, 1], [], []>} : vector<64x128xbf16>, vector<128x256xbf16>, vector<64x256xf32> -> vector<64x256xf32>
    %118 = arith.addf %111, %117 : vector<64x256xf32>
    %c0_63 = arith.constant 0 : index
    %c0_64 = arith.constant 0 : index
    %119 = vector.load %arg3[%c0_63, %c0_64] : memref<1x256xf32, #tpu.memory_space<vmem>>, vector<1x256xf32>
    %120 = vector.broadcast %119 : vector<1x256xf32> to vector<64x256xf32>
    %121 = arith.addf %118, %120 : vector<64x256xf32>
    %122 = vector.extract_strided_slice %121 {offsets = [0, 0], sizes = [64, 128], strides = [1, 1]} : vector<64x256xf32> to vector<64x128xf32>
    %123 = vector.extract_strided_slice %121 {offsets = [0, 128], sizes = [64, 128], strides = [1, 1]} : vector<64x256xf32> to vector<64x128xf32>
    %124 = arith.maximumf %122, %123 : vector<64x128xf32>
    %125 = vector.extract_strided_slice %0 {offsets = [3, 0, 0, 0], sizes = [1, 8, 8, 128], strides = [1, 1, 1, 1]} : vector<4x9x8x128xbf16> to vector<1x8x8x128xbf16>
    %126 = vector.shape_cast %125 : vector<1x8x8x128xbf16> to vector<8x8x128xbf16>
    %127 = vector.shape_cast %126 : vector<8x8x128xbf16> to vector<64x128xbf16>
    %c0_65 = arith.constant 0 : index
    %c0_66 = arith.constant 0 : index
    %c0_67 = arith.constant 0 : index
    %128 = vector.load %arg2[%c0_65, %c0_66, %c0_67] : memref<5x128x256xbf16, #tpu.memory_space<vmem>>, vector<1x128x256xbf16>
    %129 = vector.shape_cast %128 : vector<1x128x256xbf16> to vector<128x256xbf16>
    %cst_68 = arith.constant dense<0.000000e+00> : vector<64x256xf32>
    %130 = tpu.matmul %127, %129, %cst_68 {dimension_numbers = #tpu.dot_dimension_numbers<[1], [0], [0], [1], [0, 0, 1, 1], [], []>} : vector<64x128xbf16>, vector<128x256xbf16>, vector<64x256xf32> -> vector<64x256xf32>
    %131 = vector.extract_strided_slice %0 {offsets = [0, 1, 0, 0], sizes = [1, 8, 8, 128], strides = [1, 1, 1, 1]} : vector<4x9x8x128xbf16> to vector<1x8x8x128xbf16>
    %132 = vector.shape_cast %131 : vector<1x8x8x128xbf16> to vector<8x8x128xbf16>
    %133 = vector.shape_cast %132 : vector<8x8x128xbf16> to vector<64x128xbf16>
    %c1_69 = arith.constant 1 : index
    %c0_70 = arith.constant 0 : index
    %c0_71 = arith.constant 0 : index
    %134 = vector.load %arg2[%c1_69, %c0_70, %c0_71] : memref<5x128x256xbf16, #tpu.memory_space<vmem>>, vector<1x128x256xbf16>
    %135 = vector.shape_cast %134 : vector<1x128x256xbf16> to vector<128x256xbf16>
    %cst_72 = arith.constant dense<0.000000e+00> : vector<64x256xf32>
    %136 = tpu.matmul %133, %135, %cst_72 {dimension_numbers = #tpu.dot_dimension_numbers<[1], [0], [0], [1], [0, 0, 1, 1], [], []>} : vector<64x128xbf16>, vector<128x256xbf16>, vector<64x256xf32> -> vector<64x256xf32>
    %137 = arith.addf %130, %136 : vector<64x256xf32>
    %138 = vector.extract_strided_slice %0 {offsets = [1, 1, 0, 0], sizes = [1, 8, 8, 128], strides = [1, 1, 1, 1]} : vector<4x9x8x128xbf16> to vector<1x8x8x128xbf16>
    %139 = vector.shape_cast %138 : vector<1x8x8x128xbf16> to vector<8x8x128xbf16>
    %140 = vector.shape_cast %139 : vector<8x8x128xbf16> to vector<64x128xbf16>
    %c2_73 = arith.constant 2 : index
    %c0_74 = arith.constant 0 : index
    %c0_75 = arith.constant 0 : index
    %141 = vector.load %arg2[%c2_73, %c0_74, %c0_75] : memref<5x128x256xbf16, #tpu.memory_space<vmem>>, vector<1x128x256xbf16>
    %142 = vector.shape_cast %141 : vector<1x128x256xbf16> to vector<128x256xbf16>
    %cst_76 = arith.constant dense<0.000000e+00> : vector<64x256xf32>
    %143 = tpu.matmul %140, %142, %cst_76 {dimension_numbers = #tpu.dot_dimension_numbers<[1], [0], [0], [1], [0, 0, 1, 1], [], []>} : vector<64x128xbf16>, vector<128x256xbf16>, vector<64x256xf32> -> vector<64x256xf32>
    %144 = arith.addf %137, %143 : vector<64x256xf32>
    %145 = vector.extract_strided_slice %0 {offsets = [2, 1, 0, 0], sizes = [1, 8, 8, 128], strides = [1, 1, 1, 1]} : vector<4x9x8x128xbf16> to vector<1x8x8x128xbf16>
    %146 = vector.shape_cast %145 : vector<1x8x8x128xbf16> to vector<8x8x128xbf16>
    %147 = vector.shape_cast %146 : vector<8x8x128xbf16> to vector<64x128xbf16>
    %c3_77 = arith.constant 3 : index
    %c0_78 = arith.constant 0 : index
    %c0_79 = arith.constant 0 : index
    %148 = vector.load %arg2[%c3_77, %c0_78, %c0_79] : memref<5x128x256xbf16, #tpu.memory_space<vmem>>, vector<1x128x256xbf16>
    %149 = vector.shape_cast %148 : vector<1x128x256xbf16> to vector<128x256xbf16>
    %cst_80 = arith.constant dense<0.000000e+00> : vector<64x256xf32>
    %150 = tpu.matmul %147, %149, %cst_80 {dimension_numbers = #tpu.dot_dimension_numbers<[1], [0], [0], [1], [0, 0, 1, 1], [], []>} : vector<64x128xbf16>, vector<128x256xbf16>, vector<64x256xf32> -> vector<64x256xf32>
    %151 = arith.addf %144, %150 : vector<64x256xf32>
    %152 = vector.extract_strided_slice %0 {offsets = [3, 1, 0, 0], sizes = [1, 8, 8, 128], strides = [1, 1, 1, 1]} : vector<4x9x8x128xbf16> to vector<1x8x8x128xbf16>
    %153 = vector.shape_cast %152 : vector<1x8x8x128xbf16> to vector<8x8x128xbf16>
    %154 = vector.shape_cast %153 : vector<8x8x128xbf16> to vector<64x128xbf16>
    %c4_81 = arith.constant 4 : index
    %c0_82 = arith.constant 0 : index
    %c0_83 = arith.constant 0 : index
    %155 = vector.load %arg2[%c4_81, %c0_82, %c0_83] : memref<5x128x256xbf16, #tpu.memory_space<vmem>>, vector<1x128x256xbf16>
    %156 = vector.shape_cast %155 : vector<1x128x256xbf16> to vector<128x256xbf16>
    %cst_84 = arith.constant dense<0.000000e+00> : vector<64x256xf32>
    %157 = tpu.matmul %154, %156, %cst_84 {dimension_numbers = #tpu.dot_dimension_numbers<[1], [0], [0], [1], [0, 0, 1, 1], [], []>} : vector<64x128xbf16>, vector<128x256xbf16>, vector<64x256xf32> -> vector<64x256xf32>
    %158 = arith.addf %151, %157 : vector<64x256xf32>
    %c0_85 = arith.constant 0 : index
    %c0_86 = arith.constant 0 : index
    %159 = vector.load %arg3[%c0_85, %c0_86] : memref<1x256xf32, #tpu.memory_space<vmem>>, vector<1x256xf32>
    %160 = vector.broadcast %159 : vector<1x256xf32> to vector<64x256xf32>
    %161 = arith.addf %158, %160 : vector<64x256xf32>
    %162 = vector.extract_strided_slice %161 {offsets = [0, 0], sizes = [64, 128], strides = [1, 1]} : vector<64x256xf32> to vector<64x128xf32>
    %163 = vector.extract_strided_slice %161 {offsets = [0, 128], sizes = [64, 128], strides = [1, 1]} : vector<64x256xf32> to vector<64x128xf32>
    %164 = arith.maximumf %162, %163 : vector<64x128xf32>
    %165 = arith.maximumf %124, %164 : vector<64x128xf32>
    %cst_87 = arith.constant 0.000000e+00 : f32
    %166 = vector.broadcast %cst_87 : f32 to vector<64x128xf32>
    %167 = arith.maximumf %165, %166 : vector<64x128xf32>
    %168 = arith.truncf %167 : vector<64x128xf32> to vector<64x128xbf16>
    %169 = vector.extract_strided_slice %84 {offsets = [0, 0], sizes = [40, 128], strides = [1, 1]} : vector<64x128xbf16> to vector<40x128xbf16>
    %c0_88 = arith.constant 0 : index
    %c0_89 = arith.constant 0 : index
    %c0_90 = arith.constant 0 : index
    %170 = vector.load %arg4[%c0_88, %c0_89, %c0_90] : memref<5x128x256xbf16, #tpu.memory_space<vmem>>, vector<1x128x256xbf16>
    %171 = vector.shape_cast %170 : vector<1x128x256xbf16> to vector<128x256xbf16>
    %cst_91 = arith.constant dense<0.000000e+00> : vector<40x256xf32>
    %172 = tpu.matmul %169, %171, %cst_91 {dimension_numbers = #tpu.dot_dimension_numbers<[1], [0], [0], [1], [0, 0, 1, 1], [], []>} : vector<40x128xbf16>, vector<128x256xbf16>, vector<40x256xf32> -> vector<40x256xf32>
    %173 = vector.extract_strided_slice %168 {offsets = [0, 0], sizes = [40, 128], strides = [1, 1]} : vector<64x128xbf16> to vector<40x128xbf16>
    %c1_92 = arith.constant 1 : index
    %c0_93 = arith.constant 0 : index
    %c0_94 = arith.constant 0 : index
    %174 = vector.load %arg4[%c1_92, %c0_93, %c0_94] : memref<5x128x256xbf16, #tpu.memory_space<vmem>>, vector<1x128x256xbf16>
    %175 = vector.shape_cast %174 : vector<1x128x256xbf16> to vector<128x256xbf16>
    %cst_95 = arith.constant dense<0.000000e+00> : vector<40x256xf32>
    %176 = tpu.matmul %173, %175, %cst_95 {dimension_numbers = #tpu.dot_dimension_numbers<[1], [0], [0], [1], [0, 0, 1, 1], [], []>} : vector<40x128xbf16>, vector<128x256xbf16>, vector<40x256xf32> -> vector<40x256xf32>
    %177 = arith.addf %172, %176 : vector<40x256xf32>
    %178 = vector.extract_strided_slice %84 {offsets = [8, 0], sizes = [40, 128], strides = [1, 1]} : vector<64x128xbf16> to vector<40x128xbf16>
    %c2_96 = arith.constant 2 : index
    %c0_97 = arith.constant 0 : index
    %c0_98 = arith.constant 0 : index
    %179 = vector.load %arg4[%c2_96, %c0_97, %c0_98] : memref<5x128x256xbf16, #tpu.memory_space<vmem>>, vector<1x128x256xbf16>
    %180 = vector.shape_cast %179 : vector<1x128x256xbf16> to vector<128x256xbf16>
    %cst_99 = arith.constant dense<0.000000e+00> : vector<40x256xf32>
    %181 = tpu.matmul %178, %180, %cst_99 {dimension_numbers = #tpu.dot_dimension_numbers<[1], [0], [0], [1], [0, 0, 1, 1], [], []>} : vector<40x128xbf16>, vector<128x256xbf16>, vector<40x256xf32> -> vector<40x256xf32>
    %182 = arith.addf %177, %181 : vector<40x256xf32>
    %183 = vector.extract_strided_slice %168 {offsets = [8, 0], sizes = [40, 128], strides = [1, 1]} : vector<64x128xbf16> to vector<40x128xbf16>
    %c3_100 = arith.constant 3 : index
    %c0_101 = arith.constant 0 : index
    %c0_102 = arith.constant 0 : index
    %184 = vector.load %arg4[%c3_100, %c0_101, %c0_102] : memref<5x128x256xbf16, #tpu.memory_space<vmem>>, vector<1x128x256xbf16>
    %185 = vector.shape_cast %184 : vector<1x128x256xbf16> to vector<128x256xbf16>
    %cst_103 = arith.constant dense<0.000000e+00> : vector<40x256xf32>
    %186 = tpu.matmul %183, %185, %cst_103 {dimension_numbers = #tpu.dot_dimension_numbers<[1], [0], [0], [1], [0, 0, 1, 1], [], []>} : vector<40x128xbf16>, vector<128x256xbf16>, vector<40x256xf32> -> vector<40x256xf32>
    %187 = arith.addf %182, %186 : vector<40x256xf32>
    %188 = vector.extract_strided_slice %84 {offsets = [16, 0], sizes = [40, 128], strides = [1, 1]} : vector<64x128xbf16> to vector<40x128xbf16>
    %c4_104 = arith.constant 4 : index
    %c0_105 = arith.constant 0 : index
    %c0_106 = arith.constant 0 : index
    %189 = vector.load %arg4[%c4_104, %c0_105, %c0_106] : memref<5x128x256xbf16, #tpu.memory_space<vmem>>, vector<1x128x256xbf16>
    %190 = vector.shape_cast %189 : vector<1x128x256xbf16> to vector<128x256xbf16>
    %cst_107 = arith.constant dense<0.000000e+00> : vector<40x256xf32>
    %191 = tpu.matmul %188, %190, %cst_107 {dimension_numbers = #tpu.dot_dimension_numbers<[1], [0], [0], [1], [0, 0, 1, 1], [], []>} : vector<40x128xbf16>, vector<128x256xbf16>, vector<40x256xf32> -> vector<40x256xf32>
    %192 = arith.addf %187, %191 : vector<40x256xf32>
    %c0_108 = arith.constant 0 : index
    %c0_109 = arith.constant 0 : index
    %193 = vector.load %arg5[%c0_108, %c0_109] : memref<1x256xf32, #tpu.memory_space<vmem>>, vector<1x256xf32>
    %194 = vector.broadcast %193 : vector<1x256xf32> to vector<40x256xf32>
    %195 = arith.addf %192, %194 : vector<40x256xf32>
    %196 = vector.extract_strided_slice %195 {offsets = [0, 0], sizes = [40, 128], strides = [1, 1]} : vector<40x256xf32> to vector<40x128xf32>
    %197 = vector.extract_strided_slice %195 {offsets = [0, 128], sizes = [40, 128], strides = [1, 1]} : vector<40x256xf32> to vector<40x128xf32>
    %198 = arith.maximumf %196, %197 : vector<40x128xf32>
    %199 = vector.extract_strided_slice %168 {offsets = [0, 0], sizes = [40, 128], strides = [1, 1]} : vector<64x128xbf16> to vector<40x128xbf16>
    %c0_110 = arith.constant 0 : index
    %c0_111 = arith.constant 0 : index
    %c0_112 = arith.constant 0 : index
    %200 = vector.load %arg4[%c0_110, %c0_111, %c0_112] : memref<5x128x256xbf16, #tpu.memory_space<vmem>>, vector<1x128x256xbf16>
    %201 = vector.shape_cast %200 : vector<1x128x256xbf16> to vector<128x256xbf16>
    %cst_113 = arith.constant dense<0.000000e+00> : vector<40x256xf32>
    %202 = tpu.matmul %199, %201, %cst_113 {dimension_numbers = #tpu.dot_dimension_numbers<[1], [0], [0], [1], [0, 0, 1, 1], [], []>} : vector<40x128xbf16>, vector<128x256xbf16>, vector<40x256xf32> -> vector<40x256xf32>
    %203 = vector.extract_strided_slice %84 {offsets = [8, 0], sizes = [40, 128], strides = [1, 1]} : vector<64x128xbf16> to vector<40x128xbf16>
    %c1_114 = arith.constant 1 : index
    %c0_115 = arith.constant 0 : index
    %c0_116 = arith.constant 0 : index
    %204 = vector.load %arg4[%c1_114, %c0_115, %c0_116] : memref<5x128x256xbf16, #tpu.memory_space<vmem>>, vector<1x128x256xbf16>
    %205 = vector.shape_cast %204 : vector<1x128x256xbf16> to vector<128x256xbf16>
    %cst_117 = arith.constant dense<0.000000e+00> : vector<40x256xf32>
    %206 = tpu.matmul %203, %205, %cst_117 {dimension_numbers = #tpu.dot_dimension_numbers<[1], [0], [0], [1], [0, 0, 1, 1], [], []>} : vector<40x128xbf16>, vector<128x256xbf16>, vector<40x256xf32> -> vector<40x256xf32>
    %207 = arith.addf %202, %206 : vector<40x256xf32>
    %208 = vector.extract_strided_slice %168 {offsets = [8, 0], sizes = [40, 128], strides = [1, 1]} : vector<64x128xbf16> to vector<40x128xbf16>
    %c2_118 = arith.constant 2 : index
    %c0_119 = arith.constant 0 : index
    %c0_120 = arith.constant 0 : index
    %209 = vector.load %arg4[%c2_118, %c0_119, %c0_120] : memref<5x128x256xbf16, #tpu.memory_space<vmem>>, vector<1x128x256xbf16>
    %210 = vector.shape_cast %209 : vector<1x128x256xbf16> to vector<128x256xbf16>
    %cst_121 = arith.constant dense<0.000000e+00> : vector<40x256xf32>
    %211 = tpu.matmul %208, %210, %cst_121 {dimension_numbers = #tpu.dot_dimension_numbers<[1], [0], [0], [1], [0, 0, 1, 1], [], []>} : vector<40x128xbf16>, vector<128x256xbf16>, vector<40x256xf32> -> vector<40x256xf32>
    %212 = arith.addf %207, %211 : vector<40x256xf32>
    %213 = vector.extract_strided_slice %84 {offsets = [16, 0], sizes = [40, 128], strides = [1, 1]} : vector<64x128xbf16> to vector<40x128xbf16>
    %c3_122 = arith.constant 3 : index
    %c0_123 = arith.constant 0 : index
    %c0_124 = arith.constant 0 : index
    %214 = vector.load %arg4[%c3_122, %c0_123, %c0_124] : memref<5x128x256xbf16, #tpu.memory_space<vmem>>, vector<1x128x256xbf16>
    %215 = vector.shape_cast %214 : vector<1x128x256xbf16> to vector<128x256xbf16>
    %cst_125 = arith.constant dense<0.000000e+00> : vector<40x256xf32>
    %216 = tpu.matmul %213, %215, %cst_125 {dimension_numbers = #tpu.dot_dimension_numbers<[1], [0], [0], [1], [0, 0, 1, 1], [], []>} : vector<40x128xbf16>, vector<128x256xbf16>, vector<40x256xf32> -> vector<40x256xf32>
    %217 = arith.addf %212, %216 : vector<40x256xf32>
    %218 = vector.extract_strided_slice %168 {offsets = [16, 0], sizes = [40, 128], strides = [1, 1]} : vector<64x128xbf16> to vector<40x128xbf16>
    %c4_126 = arith.constant 4 : index
    %c0_127 = arith.constant 0 : index
    %c0_128 = arith.constant 0 : index
    %219 = vector.load %arg4[%c4_126, %c0_127, %c0_128] : memref<5x128x256xbf16, #tpu.memory_space<vmem>>, vector<1x128x256xbf16>
    %220 = vector.shape_cast %219 : vector<1x128x256xbf16> to vector<128x256xbf16>
    %cst_129 = arith.constant dense<0.000000e+00> : vector<40x256xf32>
    %221 = tpu.matmul %218, %220, %cst_129 {dimension_numbers = #tpu.dot_dimension_numbers<[1], [0], [0], [1], [0, 0, 1, 1], [], []>} : vector<40x128xbf16>, vector<128x256xbf16>, vector<40x256xf32> -> vector<40x256xf32>
    %222 = arith.addf %217, %221 : vector<40x256xf32>
    %c0_130 = arith.constant 0 : index
    %c0_131 = arith.constant 0 : index
    %223 = vector.load %arg5[%c0_130, %c0_131] : memref<1x256xf32, #tpu.memory_space<vmem>>, vector<1x256xf32>
    %224 = vector.broadcast %223 : vector<1x256xf32> to vector<40x256xf32>
    %225 = arith.addf %222, %224 : vector<40x256xf32>
    %226 = vector.extract_strided_slice %225 {offsets = [0, 0], sizes = [40, 128], strides = [1, 1]} : vector<40x256xf32> to vector<40x128xf32>
    %227 = vector.extract_strided_slice %225 {offsets = [0, 128], sizes = [40, 128], strides = [1, 1]} : vector<40x256xf32> to vector<40x128xf32>
    %228 = arith.maximumf %226, %227 : vector<40x128xf32>
    %229 = arith.maximumf %198, %228 : vector<40x128xf32>
    %cst_132 = arith.constant 0.000000e+00 : f32
    %230 = vector.broadcast %cst_132 : f32 to vector<40x128xf32>
    %231 = arith.maximumf %229, %230 : vector<40x128xf32>
    %232 = arith.truncf %231 : vector<40x128xf32> to vector<40x128xbf16>
    %233 = vector.extract_strided_slice %232 {offsets = [0, 0], sizes = [8, 128], strides = [1, 1]} : vector<40x128xbf16> to vector<8x128xbf16>
    %c0_133 = arith.constant 0 : index
    %c0_134 = arith.constant 0 : index
    %c0_135 = arith.constant 0 : index
    %234 = vector.load %arg6[%c0_133, %c0_134, %c0_135] : memref<5x128x128xbf16, #tpu.memory_space<vmem>>, vector<1x128x128xbf16>
    %235 = vector.shape_cast %234 : vector<1x128x128xbf16> to vector<128x128xbf16>
    %cst_136 = arith.constant dense<0.000000e+00> : vector<8x128xf32>
    %236 = tpu.matmul %233, %235, %cst_136 {dimension_numbers = #tpu.dot_dimension_numbers<[1], [0], [0], [1], [0, 0, 1, 1], [], []>} : vector<8x128xbf16>, vector<128x128xbf16>, vector<8x128xf32> -> vector<8x128xf32>
    %237 = vector.extract_strided_slice %232 {offsets = [8, 0], sizes = [8, 128], strides = [1, 1]} : vector<40x128xbf16> to vector<8x128xbf16>
    %c1_137 = arith.constant 1 : index
    %c0_138 = arith.constant 0 : index
    %c0_139 = arith.constant 0 : index
    %238 = vector.load %arg6[%c1_137, %c0_138, %c0_139] : memref<5x128x128xbf16, #tpu.memory_space<vmem>>, vector<1x128x128xbf16>
    %239 = vector.shape_cast %238 : vector<1x128x128xbf16> to vector<128x128xbf16>
    %cst_140 = arith.constant dense<0.000000e+00> : vector<8x128xf32>
    %240 = tpu.matmul %237, %239, %cst_140 {dimension_numbers = #tpu.dot_dimension_numbers<[1], [0], [0], [1], [0, 0, 1, 1], [], []>} : vector<8x128xbf16>, vector<128x128xbf16>, vector<8x128xf32> -> vector<8x128xf32>
    %241 = arith.addf %236, %240 : vector<8x128xf32>
    %242 = vector.extract_strided_slice %232 {offsets = [16, 0], sizes = [8, 128], strides = [1, 1]} : vector<40x128xbf16> to vector<8x128xbf16>
    %c2_141 = arith.constant 2 : index
    %c0_142 = arith.constant 0 : index
    %c0_143 = arith.constant 0 : index
    %243 = vector.load %arg6[%c2_141, %c0_142, %c0_143] : memref<5x128x128xbf16, #tpu.memory_space<vmem>>, vector<1x128x128xbf16>
    %244 = vector.shape_cast %243 : vector<1x128x128xbf16> to vector<128x128xbf16>
    %cst_144 = arith.constant dense<0.000000e+00> : vector<8x128xf32>
    %245 = tpu.matmul %242, %244, %cst_144 {dimension_numbers = #tpu.dot_dimension_numbers<[1], [0], [0], [1], [0, 0, 1, 1], [], []>} : vector<8x128xbf16>, vector<128x128xbf16>, vector<8x128xf32> -> vector<8x128xf32>
    %246 = arith.addf %241, %245 : vector<8x128xf32>
    %247 = vector.extract_strided_slice %232 {offsets = [24, 0], sizes = [8, 128], strides = [1, 1]} : vector<40x128xbf16> to vector<8x128xbf16>
    %c3_145 = arith.constant 3 : index
    %c0_146 = arith.constant 0 : index
    %c0_147 = arith.constant 0 : index
    %248 = vector.load %arg6[%c3_145, %c0_146, %c0_147] : memref<5x128x128xbf16, #tpu.memory_space<vmem>>, vector<1x128x128xbf16>
    %249 = vector.shape_cast %248 : vector<1x128x128xbf16> to vector<128x128xbf16>
    %cst_148 = arith.constant dense<0.000000e+00> : vector<8x128xf32>
    %250 = tpu.matmul %247, %249, %cst_148 {dimension_numbers = #tpu.dot_dimension_numbers<[1], [0], [0], [1], [0, 0, 1, 1], [], []>} : vector<8x128xbf16>, vector<128x128xbf16>, vector<8x128xf32> -> vector<8x128xf32>
    %251 = arith.addf %246, %250 : vector<8x128xf32>
    %252 = vector.extract_strided_slice %232 {offsets = [32, 0], sizes = [8, 128], strides = [1, 1]} : vector<40x128xbf16> to vector<8x128xbf16>
    %c4_149 = arith.constant 4 : index
    %c0_150 = arith.constant 0 : index
    %c0_151 = arith.constant 0 : index
    %253 = vector.load %arg6[%c4_149, %c0_150, %c0_151] : memref<5x128x128xbf16, #tpu.memory_space<vmem>>, vector<1x128x128xbf16>
    %254 = vector.shape_cast %253 : vector<1x128x128xbf16> to vector<128x128xbf16>
    %cst_152 = arith.constant dense<0.000000e+00> : vector<8x128xf32>
    %255 = tpu.matmul %252, %254, %cst_152 {dimension_numbers = #tpu.dot_dimension_numbers<[1], [0], [0], [1], [0, 0, 1, 1], [], []>} : vector<8x128xbf16>, vector<128x128xbf16>, vector<8x128xf32> -> vector<8x128xf32>
    %256 = arith.addf %251, %255 : vector<8x128xf32>
    %c0_153 = arith.constant 0 : index
    %c0_154 = arith.constant 0 : index
    %257 = vector.load %arg7[%c0_153, %c0_154] : memref<1x128xf32, #tpu.memory_space<vmem>>, vector<1x128xf32>
    %258 = vector.broadcast %257 : vector<1x128xf32> to vector<8x128xf32>
    %259 = arith.addf %256, %258 : vector<8x128xf32>
    %cst_155 = arith.constant 0.000000e+00 : f32
    %260 = vector.broadcast %cst_155 : f32 to vector<8x128xf32>
    %261 = arith.maximumf %259, %260 : vector<8x128xf32>
    %262 = arith.truncf %261 : vector<8x128xf32> to vector<8x128xbf16>
    %c0_156 = arith.constant 0 : index
    %c0_157 = arith.constant 0 : index
    %263 = vector.load %arg8[%c0_156, %c0_157] : memref<128x128xbf16, #tpu.memory_space<vmem>>, vector<128x128xbf16>
    %cst_158 = arith.constant dense<0.000000e+00> : vector<8x128xf32>
    %264 = tpu.matmul %262, %263, %cst_158 {dimension_numbers = #tpu.dot_dimension_numbers<[1], [0], [0], [1], [0, 0, 1, 1], [], []>} : vector<8x128xbf16>, vector<128x128xbf16>, vector<8x128xf32> -> vector<8x128xf32>
    %c0_159 = arith.constant 0 : index
    %c0_160 = arith.constant 0 : index
    %265 = vector.load %arg9[%c0_159, %c0_160] : memref<1x128xf32, #tpu.memory_space<vmem>>, vector<1x128xf32>
    %266 = vector.broadcast %265 : vector<1x128xf32> to vector<8x128xf32>
    %267 = arith.addf %264, %266 : vector<8x128xf32>
    %cst_161 = arith.constant 0.000000e+00 : f32
    %268 = vector.broadcast %cst_161 : f32 to vector<8x128xf32>
    %269 = arith.maximumf %267, %268 : vector<8x128xf32>
    %270 = arith.truncf %269 : vector<8x128xf32> to vector<8x128xbf16>
    %c0_162 = arith.constant 0 : index
    %c0_163 = arith.constant 0 : index
    %271 = vector.load %arg10[%c0_162, %c0_163] : memref<128x128xbf16, #tpu.memory_space<vmem>>, vector<128x128xbf16>
    %cst_164 = arith.constant dense<0.000000e+00> : vector<8x128xf32>
    %272 = tpu.matmul %270, %271, %cst_164 {dimension_numbers = #tpu.dot_dimension_numbers<[1], [0], [0], [1], [0, 0, 1, 1], [], []>} : vector<8x128xbf16>, vector<128x128xbf16>, vector<8x128xf32> -> vector<8x128xf32>
    %c0_165 = arith.constant 0 : index
    %c0_166 = arith.constant 0 : index
    %273 = vector.load %arg11[%c0_165, %c0_166] : memref<1x128xf32, #tpu.memory_space<vmem>>, vector<1x128xf32>
    %274 = vector.broadcast %273 : vector<1x128xf32> to vector<8x128xf32>
    %275 = arith.addf %272, %274 : vector<8x128xf32>
    %c0_167 = arith.constant 0 : index
    %c0_168 = arith.constant 0 : index
    %276 = vector.load %arg12[%c0_167, %c0_168] : memref<8x128xf32, #tpu.memory_space<vmem>>, vector<8x128xf32>
    tpu.vector_store %arg12[%c0_167, %c0_168], %275 {strides = array<i32>} : memref<8x128xf32, #tpu.memory_space<vmem>>, vector<8x128xf32>,
    return
  }
  func.func @transform_0(%arg0: i32) -> (i32, i32, i32, i32) {
    %c0_i32 = arith.constant 0 : i32
    %c0_i32_0 = arith.constant 0 : i32
    %c0_i32_1 = arith.constant 0 : i32
    %c0_i32_2 = arith.constant 0 : i32
    return %c0_i32, %c0_i32_0, %arg0, %c0_i32_1 : i32, i32, i32, i32
  }
  func.func @transform_1(%arg0: i32) -> (i32, i32, i32) {
    %c0_i32 = arith.constant 0 : i32
    %c0_i32_0 = arith.constant 0 : i32
    %c0_i32_1 = arith.constant 0 : i32
    %c0_i32_2 = arith.constant 0 : i32
    return %c0_i32, %c0_i32_0, %c0_i32_1 : i32, i32, i32
  }
  func.func @transform_2(%arg0: i32) -> (i32, i32) {
    %c0_i32 = arith.constant 0 : i32
    %c0_i32_0 = arith.constant 0 : i32
    %c0_i32_1 = arith.constant 0 : i32
    return %c0_i32, %c0_i32_0 : i32, i32
  }
  func.func @transform_3(%arg0: i32) -> (i32, i32, i32) {
    %c0_i32 = arith.constant 0 : i32
    %c0_i32_0 = arith.constant 0 : i32
    %c0_i32_1 = arith.constant 0 : i32
    %c0_i32_2 = arith.constant 0 : i32
    return %c0_i32, %c0_i32_0, %c0_i32_1 : i32, i32, i32
  }
  func.func @transform_4(%arg0: i32) -> (i32, i32) {
    %c0_i32 = arith.constant 0 : i32
    %c0_i32_0 = arith.constant 0 : i32
    %c0_i32_1 = arith.constant 0 : i32
    return %c0_i32, %c0_i32_0 : i32, i32
  }
  func.func @transform_5(%arg0: i32) -> (i32, i32, i32) {
    %c0_i32 = arith.constant 0 : i32
    %c0_i32_0 = arith.constant 0 : i32
    %c0_i32_1 = arith.constant 0 : i32
    %c0_i32_2 = arith.constant 0 : i32
    return %c0_i32, %c0_i32_0, %c0_i32_1 : i32, i32, i32
  }
  func.func @transform_6(%arg0: i32) -> (i32, i32) {
    %c0_i32 = arith.constant 0 : i32
    %c0_i32_0 = arith.constant 0 : i32
    %c0_i32_1 = arith.constant 0 : i32
    return %c0_i32, %c0_i32_0 : i32, i32
  }
  func.func @transform_7(%arg0: i32) -> (i32, i32) {
    %c0_i32 = arith.constant 0 : i32
    %c0_i32_0 = arith.constant 0 : i32
    %c0_i32_1 = arith.constant 0 : i32
    return %c0_i32, %c0_i32_0 : i32, i32
  }
  func.func @transform_8(%arg0: i32) -> (i32, i32) {
    %c0_i32 = arith.constant 0 : i32
    %c0_i32_0 = arith.constant 0 : i32
    %c0_i32_1 = arith.constant 0 : i32
    return %c0_i32, %c0_i32_0 : i32, i32
  }
  func.func @transform_9(%arg0: i32) -> (i32, i32) {
    %c0_i32 = arith.constant 0 : i32
    %c0_i32_0 = arith.constant 0 : i32
    %c0_i32_1 = arith.constant 0 : i32
    return %c0_i32, %c0_i32_0 : i32, i32
  }
  func.func @transform_10(%arg0: i32) -> (i32, i32) {
    %c0_i32 = arith.constant 0 : i32
    %c0_i32_0 = arith.constant 0 : i32
    %c0_i32_1 = arith.constant 0 : i32
    return %c0_i32, %c0_i32_0 : i32, i32
  }
  func.func @transform_11(%arg0: i32) -> (i32, i32) {
    %c0_i32 = arith.constant 0 : i32
    %c0_i32_0 = arith.constant 0 : i32
    return %arg0, %c0_i32 : i32, i32
  }
}

</mosaic_0001>

<bundles_post_ra>
// kernel: tile.18
= control target key start
LH: loop header
LB: loop body
LE: loop exit
PB: predicated region body
PF: predicated region fallthrough
CT: control target
= control target key end

     0   :  { %s22_s0 = inlined_call_operand.vmem [shape: f32[128], index: 0, kind: input, shape index: {}]   ;;  %s23_s1 = inlined_call_operand.vmem [shape: f32[2,128], index: 1, kind: output, shape index: {}]  }
   0x1   :  { %v4_v0 = vld [vmem:[%s22_s0] ss:$0 sm:$0xff] }
   0x2   :  { %5 = vst [vmem:[%s23_s1] sm:$0x3] %v4_v0 }

// kernel: cnn_forward.1
= control target key start
LH: loop header
LB: loop body
LE: loop exit
PB: predicated region body
PF: predicated region fallthrough
CT: control target
= control target key end

     0   :  { %v7897_v1 = vmov 0   ;;  %vm2830_vm0 = vcmask 1043456   ;;  %vm5803_vm1 = vmmov 0   ;;  %s7885_s1 = inlined_call_operand.vmem [shape: bf16[5,128,256], index: 1, kind: input, shape index: {}]   ;;  %s7886_s0 = inlined_call_operand.vmem [shape: bf16[4,9,8,128], index: 0, kind: input, shape index: {}]   ;;  %s7887_s3 = inlined_call_operand.vmem [shape: bf16[5,128,256], index: 3, kind: input, shape index: {}]   ;;  %s7888_s2 = inlined_call_operand.vmem [shape: f32[1,256], index: 2, kind: input, shape index: {}]   ;;  %s7889_s5 = inlined_call_operand.vmem [shape: bf16[5,128,128], index: 5, kind: input, shape index: {}]   ;;  %s7890_s4 = inlined_call_operand.vmem [shape: f32[1,256], index: 4, kind: input, shape index: {}]   ;;  %s7891_s7 = inlined_call_operand.vmem [shape: bf16[128,128], index: 7, kind: input, shape index: {}]   ;;  %s7892_s9 = inlined_call_operand.vmem [shape: bf16[128,128], index: 9, kind: input, shape index: {}]   ;;  %s7893_s6 = inlined_call_operand.vmem [shape: f32[1,128], index: 6, kind: input, shape index: {}]   ;;  %s7894_s8 = inlined_call_operand.vmem [shape: f32[1,128], index: 8, kind: input, shape index: {}]   ;;  %s7895_s10 = inlined_call_operand.vmem [shape: f32[1,128], index: 10, kind: input, shape index: {}]   ;;  %s7896_s11 = inlined_call_operand.vmem [shape: f32[8,128], index: 11, kind: output, shape index: {}]  }
   0x1   :  { %v5867_v0 = vld [vmem:[%s7885_s1 + $0x84] ss:$8 sps:$4 sm:$0xff]   ;;  %244 = vmatprep.mubr.bf16.mxu0 %v7897_v1  ;;  %1146 = vmatprep.mubr.bf16.mxu1 %v7897_v1  ;;  %v5874_v2 = vld [vmem:[%s7885_s1 + $0x80] ss:$8 sps:$4 sm:$0xff]   ;;  %v5881_v3 = vld [vmem:[%s7885_s1 + $0x94] ss:$8 sps:$4 sm:$0xff]  }
   0x2   :  { %212 = vmatprep.subr.bf16.mxu0 %v5867_v0  ;;  %1114 = vmatprep.subr.bf16.mxu1 %v5867_v0  ;;  %v5888_v4 = vld [vmem:[%s7885_s1 + $0x90] ss:$8 sps:$4 sm:$0xff]   ;;  %v5895_v5 = vld [vmem:[%s7885_s1 + $0xa4] ss:$8 sps:$4 sm:$0xff]   ;;  %v5902_v6 = vld [vmem:[%s7885_s1 + $0xa0] ss:$8 sps:$4 sm:$0xff]  }
   0x3   :  { %213 = vmatpush1.bf16.msra.mxu0 %v5874_v2  ;;  %1115 = vmatpush1.bf16.msra.mxu1 %v5874_v2  ;;  %v5909_v7 = vld [vmem:[%s7885_s1 + $0xb4] ss:$8 sps:$4 sm:$0xff]   ;;  %v5916_v8 = vld [vmem:[%s7885_s1 + $0xb0] ss:$8 sps:$4 sm:$0xff]   ;;  %v5923_v9 = vld [vmem:[%s7885_s1 + $0xc4] ss:$8 sps:$4 sm:$0xff]  }
   0x4   :  { %214 = vmatprep.subr.bf16.mxu0 %v5881_v3  ;;  %1116 = vmatprep.subr.bf16.mxu1 %v5881_v3  ;;  %v49_v10 = vld [vmem:[%s7886_s0 + $0x28] sm:$0xf]  ;;  %v50_v11 = vld [vmem:[%s7886_s0 + $0x2c] sm:$0xf]  ;;  %v5945_v14 = vld [vmem:[%s7885_s1 + $0xd4] ss:$8 sps:$4 sm:$0xff]  }
   0x5   :  { %v5936_v12 = vld [vmem:[%s7885_s1 + $0xc0] ss:$8 sps:$4 sm:$0xff]   ;;  %v5938_v13 = vcombine.low %v49_v10, %v50_v11  ;;  %v58_v15 = vld [vmem:[%s7886_s0 + $0x4c] sm:$0xf]  ;;  %v59_v16 = vld [vmem:[%s7886_s0 + $0x50] sm:$0xf] }
   0x6   :  { %v5953_v17 = vcombine.low %v58_v15, %v59_v16  ;;  %v5960_v18 = vld [vmem:[%s7885_s1 + $0xd0] ss:$8 sps:$4 sm:$0xff]   ;;  %v5967_v19 = vld [vmem:[%s7885_s1 + $0xe4] ss:$8 sps:$4 sm:$0xff]   ;;  %v5974_v20 = vld [vmem:[%s7885_s1 + $0xe0] ss:$8 sps:$4 sm:$0xff]  }
   0x7   :  { %215 = vmatpush1.bf16.msra.mxu0 %v5888_v4  ;;  %1117 = vmatpush1.bf16.msra.mxu1 %v5888_v4  ;;  %v5981_v21 = vld [vmem:[%s7885_s1 + $0xf4] ss:$8 sps:$4 sm:$0xff]   ;;  %v5986_v22 = vld [vmem:[%s7885_s1 + $0xf0] ss:$8 sps:$4 sm:$0xff]   ;;  %v48_v23 = vld [vmem:[%s7886_s0 + $0x24] sm:$0xf] }
   0x8   :  { %216 = vmatprep.subr.bf16.mxu0 %v5895_v5  ;;  %1118 = vmatprep.subr.bf16.mxu1 %v5895_v5  ;;  %7974 = vst [vmem:[#allocation2_spill] sm:$0xff] %v5953_v17  ;;  %v57_v24 = vld [vmem:[%s7886_s0 + $0x48] sm:$0xf]  ;;  %v6001_v25 = vld [vmem:[%s7885_s1 + $0x4] ss:$8 sps:$4 sm:$0xff]   ;;  %v6003_v26 = vcombine.low %v48_v23, %v49_v10  ;;  %v7984_v17 = vmov 0  }
   0x9   :  { %v6005_v27 = vcombine.low %v57_v24, %v58_v15  ;;  %v6012_v28 = vld [vmem:[%s7885_s1] ss:$8 sps:$4 sm:$0xff]   ;;  %v6019_v29 = vld [vmem:[%s7885_s1 + $0x14] ss:$8 sps:$4 sm:$0xff]   ;;  %v6024_v30 = vld [vmem:[%s7885_s1 + $0x10] ss:$8 sps:$4 sm:$0xff]  }
   0xa   :  { %v51_v31 = vld [vmem:[%s7886_s0 + $0x30] sm:$0xf]  ;;  %v60_v32 = vld [vmem:[%s7886_s0 + $0x54] sm:$0xf]  ;;  %v6041_v33 = vld [vmem:[%s7885_s1 + $0x24] ss:$8 sps:$4 sm:$0xff]  }
   0xb   :  { %217 = vmatpush1.bf16.msra.mxu0 %v5902_v6  ;;  %1119 = vmatpush1.bf16.msra.mxu1 %v5902_v6  ;;  %v6045_v34 = vcombine.low %v50_v11, %v51_v31  ;;  %v6047_v35 = vcombine.low %v59_v16, %v60_v32  ;;  %v6052_v36 = vld [vmem:[%s7885_s1 + $0x20] ss:$8 sps:$4 sm:$0xff]   ;;  %v52_v37 = vld [vmem:[%s7886_s0 + $0x34] sm:$0xf]  ;;  %v6071_v40 = vld [vmem:[%s7885_s1 + $0x30] ss:$8 sps:$4 sm:$0xff]  }
   0xc   :  { %218 = vmatprep.subr.bf16.mxu0 %v5909_v7  ;;  %1120 = vmatprep.subr.bf16.mxu1 %v5909_v7  ;;  %v6064_v38 = vld [vmem:[%s7885_s1 + $0x34] ss:$8 sps:$4 sm:$0xff]   ;;  %v6066_v39 = vcombine.low %v51_v31, %v52_v37  ;;  %v53_v41 = vld [vmem:[%s7886_s0 + $0x38] sm:$0xf]  ;;  %v6081_v42 = vld [vmem:[%s7885_s1 + $0x44] ss:$8 sps:$4 sm:$0xff]  }
   0xd   :  { %v61_v43 = vld [vmem:[%s7886_s0 + $0x58] sm:$0xf]  ;;  %v62_v44 = vld [vmem:[%s7886_s0 + $0x5c] sm:$0xf]  ;;  %v6096_v45 = vld [vmem:[%s7886_s0 + $0x70] sm:$0xf]  ;;  %v6107_v48 = vcombine.low %v52_v37, %v53_v41 }
   0xe   :  { %7975 = vst [vmem:[#allocation3_spill] sm:$0xff] %v6096_v45  ;;  %v6101_v46 = vld [vmem:[%s7886_s0 + $0x74] sm:$0xf]  ;;  %v6109_v49 = vcombine.low %v61_v43, %v62_v44  ;;  %v6114_v50 = vld [vmem:[%s7885_s1 + $0x40] ss:$8 sps:$4 sm:$0xff]  }
   0xf   :  { %219 = vmatpush1.bf16.msra.mxu0 %v5916_v8  ;;  %1121 = vmatpush1.bf16.msra.mxu1 %v5916_v8  ;;  %7976 = vst [vmem:[#allocation4_spill] sm:$0xff] %v6101_v46  ;;  %v54_v51 = vld [vmem:[%s7886_s0 + $0x3c] sm:$0xf]  ;;  %v6135_v54 = vld [vmem:[%s7885_s1 + $0x50] ss:$8 sps:$4 sm:$0xff]  }
  0x10   :  { %220 = vmatprep.subr.bf16.mxu0 %v5923_v9  ;;  %1122 = vmatprep.subr.bf16.mxu1 %v5923_v9  ;;  %7977 = vst [vmem:[#allocation5_spill] sm:$0xff] %v6109_v49  ;;  %v6126_v52 = vld [vmem:[%s7885_s1 + $0x54] ss:$8 sps:$4 sm:$0xff]   ;;  %v6128_v53 = vcombine.low %v53_v41, %v54_v51  ;;  %v6142_v55 = vld [vmem:[%s7886_s0 + $0x40] sm:$0xf] }
  0x11   :  { %v63_v56 = vld [vmem:[%s7886_s0 + $0x60] sm:$0xf]  ;;  %v64_v57 = vld [vmem:[%s7886_s0 + $0x64] sm:$0xf]  ;;  %v6160_v59 = vcombine.low %v54_v51, %v6142_v55  ;;  %v6176_v62 = vld [vmem:[%s7885_s1 + $0x74] ss:$8 sps:$4 sm:$0xff]  }
  0x12   :  { %v6155_v58 = vld [vmem:[%s7885_s1 + $0x64] ss:$8 sps:$4 sm:$0xff]   ;;  %v6162_v60 = vcombine.low %v63_v56, %v64_v57  ;;  %v6169_v61 = vld [vmem:[%s7885_s1 + $0x60] ss:$8 sps:$4 sm:$0xff]   ;;  %v6183_v63 = vld [vmem:[%s7885_s1 + $0x70] ss:$8 sps:$4 sm:$0xff]  }
  0x13   :  { %221 = vmatpush1.bf16.msra.mxu0 %v5936_v12  ;;  %1123 = vmatpush1.bf16.msra.mxu1 %v5936_v12  ;;  %v39_v10 = vld [vmem:[%s7886_s0] sm:$0xf]  ;;  %v6193_v11 = vld [vmem:[%s7886_s0 + $0x4] sm:$0xf]  ;;  %v6217_v24 = vld [vmem:[%s7885_s1 + $0x114] ss:$8 sps:$4 sm:$0xff]  }
  0x14   :  { %222 = vmatprep.subr.bf16.mxu0 %v5945_v14  ;;  %1124 = vmatprep.subr.bf16.mxu1 %v5945_v14  ;;  %v6200_v15 = vld [vmem:[%s7885_s1 + $0x104] ss:$8 sps:$4 sm:$0xff]   ;;  %v4535_v16 = vcombine.low %v39_v10, %v6193_v11  ;;  %v6210_v23 = vld [vmem:[%s7885_s1 + $0x100] ss:$8 sps:$4 sm:$0xff]   ;;  %v6225_v31 = vld [vmem:[%s7885_s1 + $0x110] ss:$8 sps:$4 sm:$0xff]  }
  0x15   :  { %v6230_v32 = vld [vmem:[%s7886_s0 + $0x8] sm:$0xf]  ;;  %v6235_v37 = vld [vmem:[%s7886_s0 + $0xc] sm:$0xf]  ;;  %v6260_v44 = vld [vmem:[%s7885_s1 + $0x134] ss:$8 sps:$4 sm:$0xff]  }
  0x16   :  { %v4536_v41 = vcombine.low %v6230_v32, %v6235_v37  ;;  %v6253_v43 = vld [vmem:[%s7885_s1 + $0x120] ss:$8 sps:$4 sm:$0xff]   ;;  %v6268_v51 = vld [vmem:[%s7885_s1 + $0x130] ss:$8 sps:$4 sm:$0xff]   ;;  %v6278_v57 = vld [vmem:[%s7886_s0 + $0x14] sm:$0xf] }
  0x17   :  { %223 = vmatpush1.bf16.msra.mxu0 %v5960_v18  ;;  %1125 = vmatpush1.bf16.msra.mxu1 %v5960_v18  ;;  %7978 = vst [vmem:[#allocation6_spill] sm:$0xff] %v6268_v51  ;;  %v6273_v56 = vld [vmem:[%s7886_s0 + $0x10] sm:$0xf] }
  0x18   :  { %224 = vmatprep.subr.bf16.mxu0 %v5967_v19  ;;  %1126 = vmatprep.subr.bf16.mxu1 %v5967_v19  ;;  %v4537_v10 = vcombine.low %v6273_v56, %v6278_v57  ;;  %v6311_v47 = vld [vmem:[%s7885_s1 + $0x150] ss:$8 sps:$4 sm:$0xff]  }
  0x19   :  { %7982 = vst [vmem:[#allocation10_spill] sm:$0xff] %v6311_v47 }
  0x1b   :  { %225 = vmatpush1.bf16.msra.mxu0 %v5974_v20  ;;  %1127 = vmatpush1.bf16.msra.mxu1 %v5974_v20 }
  0x1c   :  { %226 = vmatprep.subr.bf16.mxu0 %v5981_v21  ;;  %1128 = vmatprep.subr.bf16.mxu1 %v5981_v21 }
  0x1f   :  { %227 = vmatpush1.bf16.msra.mxu0 %v5986_v22  ;;  %1129 = vmatpush1.bf16.msra.mxu1 %v5986_v22 }
  0x20   :  { %389 = vmatprep.subr.bf16.mxu0 %v6001_v25  ;;  %1187 = vmatprep.subr.bf16.mxu1 %v6001_v25 }
  0x22   :  { %245 = vmatmul.mubr.bf16.vlgmr.msra.gmra.mrb[0].mxu0 %v6003_v26  ;;  %1147 = vmatmul.mubr.bf16.vlgmr.msra.gmra.mrb[0].mxu1 %v6005_v27 }
  0x23   :  { %390 = vmatpush1.bf16.msra.mxu0 %v6012_v28  ;;  %1188 = vmatpush1.bf16.msra.mxu1 %v6012_v28 }
  0x24   :  { %391 = vmatprep.subr.bf16.mxu0 %v6019_v29  ;;  %1189 = vmatprep.subr.bf16.mxu1 %v6019_v29 }
  0x25   :  { %254 = vmatprep.mubr.bf16.mxu0 %v7897_v1  ;;  %1156 = vmatprep.mubr.bf16.mxu1 %v7897_v1 }
  0x27   :  { %392 = vmatpush1.bf16.msra.mxu0 %v6024_v30  ;;  %1190 = vmatpush1.bf16.msra.mxu1 %v6024_v30 }
  0x28   :  { %393 = vmatprep.subr.bf16.mxu0 %v6041_v33  ;;  %1191 = vmatprep.subr.bf16.mxu1 %v6041_v33 }
  0x2a   :  { %255 = vmatmul.mubr.bf16.gmra.mrb[4].mxu0 %v6045_v34  ;;  %1157 = vmatmul.mubr.bf16.gmra.mrb[4].mxu1 %v6047_v35 }
  0x2b   :  { %394 = vmatpush1.bf16.msra.mxu0 %v6052_v36  ;;  %1192 = vmatpush1.bf16.msra.mxu1 %v6052_v36 }
  0x2c   :  { %395 = vmatprep.subr.bf16.mxu0 %v6064_v38  ;;  %1193 = vmatprep.subr.bf16.mxu1 %v6064_v38 }
  0x2d   :  { %264 = vmatprep.mubr.bf16.mxu0 %v7897_v1  ;;  %1166 = vmatprep.mubr.bf16.mxu1 %v7897_v1 }
  0x2f   :  { %396 = vmatpush1.bf16.msra.mxu0 %v6071_v40  ;;  %1194 = vmatpush1.bf16.msra.mxu1 %v6071_v40 }
  0x30   :  { %397 = vmatprep.subr.bf16.mxu0 %v6081_v42  ;;  %1195 = vmatprep.subr.bf16.mxu1 %v6081_v42 }
  0x32   :  { %265 = vmatmul.mubr.bf16.gmra.mrb[8].mxu0 %v6107_v48  ;;  %1167 = vmatmul.mubr.bf16.gmra.mrb[8].mxu1 %v6109_v49 }
  0x33   :  { %398 = vmatpush1.bf16.msra.mxu0 %v6114_v50  ;;  %1196 = vmatpush1.bf16.msra.mxu1 %v6114_v50 }
  0x34   :  { %399 = vmatprep.subr.bf16.mxu0 %v6126_v52  ;;  %1197 = vmatprep.subr.bf16.mxu1 %v6126_v52 }
  0x35   :  { %274 = vmatprep.mubr.bf16.mxu0 %v7897_v1  ;;  %1176 = vmatprep.mubr.bf16.mxu1 %v7897_v1 }
  0x37   :  { %400 = vmatpush1.bf16.msra.mxu0 %v6135_v54  ;;  %1198 = vmatpush1.bf16.msra.mxu1 %v6135_v54 }
  0x38   :  { %401 = vmatprep.subr.bf16.mxu0 %v6155_v58  ;;  %1199 = vmatprep.subr.bf16.mxu1 %v6155_v58 }
  0x3a   :  { %275 = vmatmul.mubr.bf16.gmra.mrb[12].mxu0 %v6160_v59  ;;  %1177 = vmatmul.mubr.bf16.gmra.mrb[12].mxu1 %v6162_v60 }
  0x3b   :  { %402 = vmatpush1.bf16.msra.mxu0 %v6169_v61  ;;  %1200 = vmatpush1.bf16.msra.mxu1 %v6169_v61 }
  0x3c   :  { %403 = vmatprep.subr.bf16.mxu0 %v6176_v62  ;;  %1201 = vmatprep.subr.bf16.mxu1 %v6176_v62 }
  0x3d   :  { %421 = vmatprep.mubr.bf16.mxu0 %v7897_v1  ;;  %1219 = vmatprep.mubr.bf16.mxu1 %v7897_v1 }
  0x3f   :  { %404 = vmatpush1.bf16.msra.mxu0 %v6183_v63  ;;  %1202 = vmatpush1.bf16.msra.mxu1 %v6183_v63 }
  0x40   :  { %583 = vmatprep.subr.bf16.mxu0 %v6200_v15  ;;  %1260 = vmatprep.subr.bf16.mxu1 %v6200_v15 }
  0x42   :  { %422 = vmatmul.mubr.bf16.vlgmr.msra.gmra.mrb[0].mxu0 %v4535_v16  ;;  %1220 = vmatmul.mubr.bf16.vlgmr.msra.gmra.mrb[0].mxu1 %v6003_v26  ;;  %v6242_v26 = vld [vmem:[%s7885_s1 + $0x124] ss:$8 sps:$4 sm:$0xff]   ;;  %v6296_v16 = vld [vmem:[%s7885_s1 + $0x140] ss:$8 sps:$4 sm:$0xff]  }
  0x43   :  { %584 = vmatpush1.bf16.msra.mxu0 %v6210_v23  ;;  %1261 = vmatpush1.bf16.msra.mxu1 %v6210_v23  ;;  %7980 = vst [vmem:[#allocation8_spill] sm:$0xff] %v6296_v16 }
  0x44   :  { %585 = vmatprep.subr.bf16.mxu0 %v6217_v24  ;;  %1262 = vmatprep.subr.bf16.mxu1 %v6217_v24 }
  0x45   :  { %431 = vmatprep.mubr.bf16.mxu0 %v7897_v1  ;;  %1229 = vmatprep.mubr.bf16.mxu1 %v7897_v1 }
  0x47   :  { %586 = vmatpush1.bf16.msra.mxu0 %v6225_v31  ;;  %1263 = vmatpush1.bf16.msra.mxu1 %v6225_v31 }
  0x48   :  { %587 = vmatprep.subr.bf16.mxu0 %v6242_v26  ;;  %1264 = vmatprep.subr.bf16.mxu1 %v6242_v26 }
  0x4a   :  { %432 = vmatmul.mubr.bf16.gmra.mrb[4].mxu0 %v4536_v41  ;;  %1230 = vmatmul.mubr.bf16.gmra.mrb[4].mxu1 %v6045_v34  ;;  %v6285_v34 = vld [vmem:[%s7885_s1 + $0x144] ss:$8 sps:$4 sm:$0xff]   ;;  %v6303_v41 = vld [vmem:[%s7885_s1 + $0x154] ss:$8 sps:$4 sm:$0xff]  }
  0x4b   :  { %588 = vmatpush1.bf16.msra.mxu0 %v6253_v43  ;;  %1265 = vmatpush1.bf16.msra.mxu1 %v6253_v43  ;;  %7979 = vst [vmem:[#allocation7_spill] sm:$0xff] %v6285_v34  ;;  %7981 = vst [vmem:[#allocation9_spill] sm:$0xff] %v6303_v41 }
  0x4c   :  { %589 = vmatprep.subr.bf16.mxu0 %v6260_v44  ;;  %1266 = vmatprep.subr.bf16.mxu1 %v6260_v44 }
  0x4d   :  { %441 = vmatprep.mubr.bf16.mxu0 %v7897_v1  ;;  %1239 = vmatprep.mubr.bf16.mxu1 %v7897_v1  ;;  %v6316_v1 = vld [vmem:[%s7886_s0 + $0x18] sm:$0xf] }
  0x4f   :  { %590 = vmatpush1.bf16.msra.mxu0 %v6268_v51  ;;  %1267 = vmatpush1.bf16.msra.mxu1 %v6268_v51  ;;  %v6470_v51 = vld [vmem:[%s7885_s1 + $0x1d4] ss:$8 sps:$4 sm:$0xff]  }
  0x50   :  { %591 = vmatprep.subr.bf16.mxu0 %v6285_v34  ;;  %1268 = vmatprep.subr.bf16.mxu1 %v6285_v34  ;;  %v6346_v34 = vld [vmem:[%s7885_s1 + $0x174] ss:$8 sps:$4 sm:$0xff]   ;;  %8001 = vst [vmem:[#allocation28_spill] sm:$0xff] %v6470_v51 }
  0x51   :  { %7986 = vst [vmem:[#allocation13_spill] sm:$0xff] %v6346_v34 }
  0x52   :  { %442 = vmatmul.mubr.bf16.gmra.mrb[8].mxu0 %v4537_v10  ;;  %1240 = vmatmul.mubr.bf16.gmra.mrb[8].mxu1 %v6107_v48  ;;  %v6321_v10 = vld [vmem:[%s7886_s0 + $0x1c] sm:$0xf]  ;;  %v6328_v48 = vld [vmem:[%s7885_s1 + $0x164] ss:$8 sps:$4 sm:$0xff]  }
  0x53   :  { %592 = vmatpush1.bf16.msra.mxu0 %v6296_v16  ;;  %1269 = vmatpush1.bf16.msra.mxu1 %v6296_v16  ;;  %7983 = vst [vmem:[#allocation11_spill] sm:$0xff] %v6328_v48  ;;  %v4538_v16 = vcombine.low %v6316_v1, %v6321_v10 }
  0x54   :  { %593 = vmatprep.subr.bf16.mxu0 %v6303_v41  ;;  %1270 = vmatprep.subr.bf16.mxu1 %v6303_v41  ;;  %v6339_v41 = vld [vmem:[%s7885_s1 + $0x160] ss:$8 sps:$4 sm:$0xff]  }
  0x55   :  { %451 = vmatprep.mubr.bf16.mxu0 %v7984_v17  ;;  %1249 = vmatprep.mubr.bf16.mxu1 %v7984_v17  ;;  %7985 = vst [vmem:[#allocation12_spill] sm:$0xff] %v6339_v41 }
  0x57   :  { %594 = vmatpush1.bf16.msra.mxu0 %v6311_v47  ;;  %1271 = vmatpush1.bf16.msra.mxu1 %v6311_v47  ;;  %v6354_v47 = vld [vmem:[%s7885_s1 + $0x170] ss:$8 sps:$4 sm:$0xff]  }
  0x58   :  { %595 = vmatprep.subr.bf16.mxu0 %v6328_v48  ;;  %1272 = vmatprep.subr.bf16.mxu1 %v6328_v48  ;;  %7987 = vst [vmem:[#allocation14_spill] sm:$0xff] %v6354_v47  ;;  %v66_v48 = vld [vmem:[%s7886_s0 + $0x6c] sm:$0xf] }
  0x5a   :  { %452 = vmatmul.mubr.bf16.gmra.mrb[12].mxu0 %v4538_v16  ;;  %1250 = vmatmul.mubr.bf16.gmra.mrb[12].mxu1 %v6160_v59  ;;  %v6364_v59 = vld [vmem:[%s7885_s1 + $0x184] ss:$8 sps:$4 sm:$0xff]   ;;  %v6369_v16 = vcombine.low %v66_v48, %v6096_v45  ;;  %v6392_v48 = vld [vmem:[%s7885_s1 + $0x190] ss:$8 sps:$4 sm:$0xff]  }
  0x5b   :  { %596 = vmatpush1.bf16.msra.mxu0 %v6339_v41  ;;  %1273 = vmatpush1.bf16.msra.mxu1 %v6339_v41  ;;  %7988 = vst [vmem:[#allocation15_spill] sm:$0xff] %v6364_v59  ;;  %v6383_v41 = vld [vmem:[%s7885_s1 + $0x194] ss:$8 sps:$4 sm:$0xff]   ;;  %7991 = vst [vmem:[#allocation18_spill] sm:$0xff] %v6392_v48  ;;  %v6397_v45 = vld [vmem:[%s7886_s0 + $0x78] sm:$0xf] }
  0x5c   :  { %597 = vmatprep.subr.bf16.mxu0 %v6346_v34  ;;  %1274 = vmatprep.subr.bf16.mxu1 %v6346_v34  ;;  %v6376_v34 = vld [vmem:[%s7885_s1 + $0x180] ss:$8 sps:$4 sm:$0xff]   ;;  %7990 = vst [vmem:[#allocation17_spill] sm:$0xff] %v6383_v41  ;;  %7992 = vst [vmem:[#allocation19_spill] sm:$0xff] %v6397_v45 }
  0x5d   :  { %615 = vmatprep.mubr.bf16.mxu0 %v7984_v17  ;;  %1292 = vmatprep.mubr.bf16.mxu1 %v7984_v17  ;;  %7989 = vst [vmem:[#allocation16_spill] sm:$0xff] %v6376_v34 }
  0x5f   :  { %598 = vmatpush1.bf16.msra.mxu0 %v6354_v47  ;;  %1275 = vmatpush1.bf16.msra.mxu1 %v6354_v47  ;;  %v6424_v47 = vld [vmem:[%s7885_s1 + $0x1b4] ss:$8 sps:$4 sm:$0xff]  }
  0x60   :  { %793 = vmatprep.subr.bf16.mxu0 %v6364_v59  ;;  %1349 = vmatprep.subr.bf16.mxu1 %v6364_v59  ;;  %v6404_v59 = vld [vmem:[%s7885_s1 + $0x1a4] ss:$8 sps:$4 sm:$0xff]   ;;  %7995 = vst [vmem:[#allocation22_spill] sm:$0xff] %v6424_v47 }
  0x61   :  { %7993 = vst [vmem:[#allocation20_spill] sm:$0xff] %v6404_v59 }
  0x62   :  { %616 = vmatmul.mubr.bf16.vlgmr.msra.gmra.mrb[0].mxu0 %v6005_v27  ;;  %1293 = vmatmul.mubr.bf16.vlgmr.msra.gmra.mrb[0].mxu1 %v6369_v16 }
  0x63   :  { %794 = vmatpush1.bf16.msra.mxu0 %v6376_v34  ;;  %1350 = vmatpush1.bf16.msra.mxu1 %v6376_v34  ;;  %v6410_v34 = vcombine.low %v6101_v46, %v6397_v45  ;;  %v6433_v45 = vld [vmem:[%s7885_s1 + $0x1b0] ss:$8 sps:$4 sm:$0xff]   ;;  %v6438_v46 = vld [vmem:[%s7886_s0 + $0x7c] sm:$0xf] }
  0x64   :  { %795 = vmatprep.subr.bf16.mxu0 %v6383_v41  ;;  %1351 = vmatprep.subr.bf16.mxu1 %v6383_v41  ;;  %v6417_v41 = vld [vmem:[%s7885_s1 + $0x1a0] ss:$8 sps:$4 sm:$0xff]   ;;  %7996 = vst [vmem:[#allocation23_spill] sm:$0xff] %v6433_v45  ;;  %7997 = vst [vmem:[#allocation24_spill] sm:$0xff] %v6438_v46 }
  0x65   :  { %625 = vmatprep.mubr.bf16.mxu0 %v7984_v17  ;;  %1302 = vmatprep.mubr.bf16.mxu1 %v7984_v17  ;;  %7994 = vst [vmem:[#allocation21_spill] sm:$0xff] %v6417_v41 }
  0x67   :  { %796 = vmatpush1.bf16.msra.mxu0 %v6392_v48  ;;  %1352 = vmatpush1.bf16.msra.mxu1 %v6392_v48 }
  0x68   :  { %797 = vmatprep.subr.bf16.mxu0 %v6404_v59  ;;  %1353 = vmatprep.subr.bf16.mxu1 %v6404_v59  ;;  %v6443_v59 = vld [vmem:[%s7886_s0 + $0x80] sm:$0xf] }
  0x69   :  { %7998 = vst [vmem:[#allocation25_spill] sm:$0xff] %v6443_v59  ;;  %v6456_v48 = vcombine.low %v6438_v46, %v6443_v59  ;;  %v6479_v59 = vld [vmem:[%s7885_s1 + $0x1d0] ss:$8 sps:$4 sm:$0xff]   ;;  %v6484_v46 = vld [vmem:[%s7886_s0 + $0x84] sm:$0xf] }
  0x6a   :  { %626 = vmatmul.mubr.bf16.gmra.mrb[4].mxu0 %v6047_v35  ;;  %1303 = vmatmul.mubr.bf16.gmra.mrb[4].mxu1 %v6410_v34  ;;  %8002 = vst [vmem:[#allocation29_spill] sm:$0xff] %v6484_v46 }
  0x6b   :  { %798 = vmatpush1.bf16.msra.mxu0 %v6417_v41  ;;  %1354 = vmatpush1.bf16.msra.mxu1 %v6417_v41  ;;  %v6450_v41 = vld [vmem:[%s7885_s1 + $0x1c4] ss:$8 sps:$4 sm:$0xff]  }
  0x6c   :  { %799 = vmatprep.subr.bf16.mxu0 %v6424_v47  ;;  %1355 = vmatprep.subr.bf16.mxu1 %v6424_v47  ;;  %7999 = vst [vmem:[#allocation26_spill] sm:$0xff] %v6450_v41  ;;  %v6463_v47 = vld [vmem:[%s7885_s1 + $0x1c0] ss:$8 sps:$4 sm:$0xff]  }
  0x6d   :  { %635 = vmatprep.mubr.bf16.mxu0 %v7984_v17  ;;  %1312 = vmatprep.mubr.bf16.mxu1 %v7984_v17  ;;  %8000 = vst [vmem:[#allocation27_spill] sm:$0xff] %v6463_v47 }
  0x6f   :  { %800 = vmatpush1.bf16.msra.mxu0 %v6433_v45  ;;  %1356 = vmatpush1.bf16.msra.mxu1 %v6433_v45 }
  0x70   :  { %801 = vmatprep.subr.bf16.mxu0 %v6450_v41  ;;  %1357 = vmatprep.subr.bf16.mxu1 %v6450_v41  ;;  %v6489_v41 = vld [vmem:[%s7886_s0 + $0x88] sm:$0xf] }
  0x71   :  { %8003 = vst [vmem:[#allocation30_spill] sm:$0xff] %v6489_v41  ;;  %v6502_v45 = vcombine.low %v6484_v46, %v6489_v41  ;;  %v6525_v41 = vld [vmem:[%s7885_s1 + $0x1f0] ss:$8 sps:$4 sm:$0xff]   ;;  %v6532_v46 = vld [vmem:[%s7885_s1 + $0x204] ss:$8 sps:$4 sm:$0xff]  }
  0x72   :  { %636 = vmatmul.mubr.bf16.gmra.mrb[8].mxu0 %v6109_v49  ;;  %1313 = vmatmul.mubr.bf16.gmra.mrb[8].mxu1 %v6456_v48  ;;  %v6516_v49 = vld [vmem:[%s7885_s1 + $0x1f4] ss:$8 sps:$4 sm:$0xff]   ;;  %8007 = vst [vmem:[#allocation34_spill] sm:$0xff] %v6532_v46 }
  0x73   :  { %802 = vmatpush1.bf16.msra.mxu0 %v6463_v47  ;;  %1358 = vmatpush1.bf16.msra.mxu1 %v6463_v47  ;;  %v6496_v47 = vld [vmem:[%s7885_s1 + $0x1e4] ss:$8 sps:$4 sm:$0xff]   ;;  %8006 = vst [vmem:[#allocation33_spill] sm:$0xff] %v6516_v49 }
  0x74   :  { %803 = vmatprep.subr.bf16.mxu0 %v6470_v51  ;;  %1359 = vmatprep.subr.bf16.mxu1 %v6470_v51  ;;  %8004 = vst [vmem:[#allocation31_spill] sm:$0xff] %v6496_v47  ;;  %v6509_v51 = vld [vmem:[%s7885_s1 + $0x1e0] ss:$8 sps:$4 sm:$0xff]  }
  0x75   :  { %645 = vmatprep.mubr.bf16.mxu0 %v7984_v17  ;;  %1322 = vmatprep.mubr.bf16.mxu1 %v7984_v17  ;;  %8005 = vst [vmem:[#allocation32_spill] sm:$0xff] %v6509_v51 }
  0x77   :  { %804 = vmatpush1.bf16.msra.mxu0 %v6479_v59  ;;  %1360 = vmatpush1.bf16.msra.mxu1 %v6479_v59 }
  0x78   :  { %805 = vmatprep.subr.bf16.mxu0 %v6496_v47  ;;  %1361 = vmatprep.subr.bf16.mxu1 %v6496_v47  ;;  %v6552_v47 = vld [vmem:[%s7885_s1 + $0x214] ss:$8 sps:$4 sm:$0xff]  }
  0x79   :  { %8009 = vst [vmem:[#allocation36_spill] sm:$0xff] %v6552_v47 }
  0x7a   :  { %646 = vmatmul.mubr.bf16.gmra.mrb[12].mxu0 %v6162_v60  ;;  %1323 = vmatmul.mubr.bf16.gmra.mrb[12].mxu1 %v6502_v45 }
  0x7b   :  { %806 = vmatpush1.bf16.msra.mxu0 %v6509_v51  ;;  %1362 = vmatpush1.bf16.msra.mxu1 %v6509_v51  ;;  %v6538_v51 = vcombine.low %v6193_v11, %v6230_v32  ;;  %v6561_v11 = vld [vmem:[%s7885_s1 + $0x210] ss:$8 sps:$4 sm:$0xff]   ;;  %v6568_v32 = vld [vmem:[%s7885_s1 + $0x224] ss:$8 sps:$4 sm:$0xff]  }
  0x7c   :  { %807 = vmatprep.subr.bf16.mxu0 %v6516_v49  ;;  %1363 = vmatprep.subr.bf16.mxu1 %v6516_v49  ;;  %v6545_v49 = vld [vmem:[%s7885_s1 + $0x200] ss:$8 sps:$4 sm:$0xff]   ;;  %8010 = vst [vmem:[#allocation37_spill] sm:$0xff] %v6568_v32 }
  0x7d   :  { %825 = vmatprep.mubr.bf16.mxu0 %v7984_v17  ;;  %1381 = vmatprep.mubr.bf16.mxu1 %v7984_v17  ;;  %8008 = vst [vmem:[#allocation35_spill] sm:$0xff] %v6545_v49 }
  0x7f   :  { %808 = vmatpush1.bf16.msra.mxu0 %v6525_v41  ;;  %1364 = vmatpush1.bf16.msra.mxu1 %v6525_v41 }
  0x80   :  { %989 = vmatprep.subr.bf16.mxu0 %v6532_v46  ;;  %1448 = vmatprep.subr.bf16.mxu1 %v6532_v46  ;;  %v6588_v46 = vld [vmem:[%s7885_s1 + $0x234] ss:$8 sps:$4 sm:$0xff]  }
  0x81   :  { %8012 = vst [vmem:[#allocation39_spill] sm:$0xff] %v6588_v46 }
  0x82   :  { %826 = vmatmul.mubr.bf16.vlgmr.msra.gmra.mrb[0].mxu0 %v6369_v16  ;;  %1382 = vmatmul.mubr.bf16.vlgmr.msra.gmra.mrb[0].mxu1 %v6538_v51 }
  0x83   :  { %990 = vmatpush1.bf16.msra.mxu0 %v6545_v49  ;;  %1449 = vmatpush1.bf16.msra.mxu1 %v6545_v49  ;;  %v6574_v49 = vcombine.low %v6235_v37, %v6273_v56  ;;  %v6597_v37 = vld [vmem:[%s7885_s1 + $0x230] ss:$8 sps:$4 sm:$0xff]   ;;  %v6604_v56 = vld [vmem:[%s7885_s1 + $0x244] ss:$8 sps:$4 sm:$0xff]  }
  0x84   :  { %991 = vmatprep.subr.bf16.mxu0 %v6552_v47  ;;  %1450 = vmatprep.subr.bf16.mxu1 %v6552_v47  ;;  %v6581_v47 = vld [vmem:[%s7885_s1 + $0x220] ss:$8 sps:$4 sm:$0xff]   ;;  %8013 = vst [vmem:[#allocation40_spill] sm:$0xff] %v6597_v37  ;;  %8014 = vst [vmem:[#allocation41_spill] sm:$0xff] %v6604_v56 }
  0x85   :  { %835 = vmatprep.mubr.bf16.mxu0 %v7984_v17  ;;  %1391 = vmatprep.mubr.bf16.mxu1 %v7984_v17  ;;  %8011 = vst [vmem:[#allocation38_spill] sm:$0xff] %v6581_v47 }
  0x87   :  { %992 = vmatpush1.bf16.msra.mxu0 %v6561_v11  ;;  %1451 = vmatpush1.bf16.msra.mxu1 %v6561_v11 }
  0x88   :  { %993 = vmatprep.subr.bf16.mxu0 %v6568_v32  ;;  %1452 = vmatprep.subr.bf16.mxu1 %v6568_v32  ;;  %v6624_v32 = vld [vmem:[%s7885_s1 + $0x254] ss:$8 sps:$4 sm:$0xff]  }
  0x89   :  { %8016 = vst [vmem:[#allocation43_spill] sm:$0xff] %v6624_v32 }
  0x8a   :  { %836 = vmatmul.mubr.bf16.gmra.mrb[4].mxu0 %v6410_v34  ;;  %1392 = vmatmul.mubr.bf16.gmra.mrb[4].mxu1 %v6574_v49 }
  0x8b   :  { %994 = vmatpush1.bf16.msra.mxu0 %v6581_v47  ;;  %1453 = vmatpush1.bf16.msra.mxu1 %v6581_v47  ;;  %v6610_v47 = vcombine.low %v6278_v57, %v6316_v1  ;;  %v47_v1 = vld [vmem:[%s7886_s0 + $0x20] sm:$0xf]  ;;  %v6636_v57 = vld [vmem:[%s7885_s1 + $0x250] ss:$8 sps:$4 sm:$0xff]  }
  0x8c   :  { %995 = vmatprep.subr.bf16.mxu0 %v6588_v46  ;;  %1454 = vmatprep.subr.bf16.mxu1 %v6588_v46  ;;  %v6617_v46 = vld [vmem:[%s7885_s1 + $0x240] ss:$8 sps:$4 sm:$0xff]  }
  0x8d   :  { %845 = vmatprep.mubr.bf16.mxu0 %v7984_v17  ;;  %1401 = vmatprep.mubr.bf16.mxu1 %v7984_v17  ;;  %8015 = vst [vmem:[#allocation42_spill] sm:$0xff] %v6617_v46 }
  0x8f   :  { %996 = vmatpush1.bf16.msra.mxu0 %v6597_v37  ;;  %1455 = vmatpush1.bf16.msra.mxu1 %v6597_v37  ;;  %v6662_v37 = vld [vmem:[%s7885_s1 + $0x274] ss:$8 sps:$4 sm:$0xff]  }
  0x90   :  { %997 = vmatprep.subr.bf16.mxu0 %v6604_v56  ;;  %1456 = vmatprep.subr.bf16.mxu1 %v6604_v56  ;;  %v6643_v56 = vld [vmem:[%s7885_s1 + $0x264] ss:$8 sps:$4 sm:$0xff]  }
  0x92   :  { %846 = vmatmul.mubr.bf16.gmra.mrb[8].mxu0 %v6456_v48  ;;  %1402 = vmatmul.mubr.bf16.gmra.mrb[8].mxu1 %v6610_v47 }
  0x93   :  { %998 = vmatpush1.bf16.msra.mxu0 %v6617_v46  ;;  %1457 = vmatpush1.bf16.msra.mxu1 %v6617_v46  ;;  %v6648_v46 = vcombine.low %v6321_v10, %v47_v1  ;;  %v6671_v10 = vld [vmem:[%s7885_s1 + $0x270] ss:$8 sps:$4 sm:$0xff]   ;;  %v5634_v1 = vld [vmem:[%s7887_s3 + $0xc4] ss:$8 sps:$4 sm:$0xff]  }
  0x94   :  { %999 = vmatprep.subr.bf16.mxu0 %v6624_v32  ;;  %1458 = vmatprep.subr.bf16.mxu1 %v6624_v32  ;;  %v6655_v32 = vld [vmem:[%s7885_s1 + $0x260] ss:$8 sps:$4 sm:$0xff]  }
  0x95   :  { %855 = vmatprep.mubr.bf16.mxu0 %v7984_v17  ;;  %1411 = vmatprep.mubr.bf16.mxu1 %v7984_v17 }
  0x97   :  { %1000 = vmatpush1.bf16.msra.mxu0 %v6636_v57  ;;  %1459 = vmatpush1.bf16.msra.mxu1 %v6636_v57 }
  0x98   :  { %1001 = vmatprep.subr.bf16.mxu0 %v6643_v56  ;;  %1460 = vmatprep.subr.bf16.mxu1 %v6643_v56 }
  0x9a   :  { %856 = vmatmul.mubr.bf16.gmra.mrb[12].mxu0 %v6502_v45  ;;  %1412 = vmatmul.mubr.bf16.gmra.mrb[12].mxu1 %v6648_v46 }
  0x9b   :  { %1002 = vmatpush1.bf16.msra.mxu0 %v6655_v32  ;;  %1461 = vmatpush1.bf16.msra.mxu1 %v6655_v32 }
  0x9c   :  { %1003 = vmatprep.subr.bf16.mxu0 %v6662_v37  ;;  %1462 = vmatprep.subr.bf16.mxu1 %v6662_v37 }
  0x9d   :  { %1021 = vmatprep.mubr.bf16.mxu0 %v7984_v17  ;;  %1480 = vmatprep.mubr.bf16.mxu1 %v7984_v17 }
  0x9f   :  { %1004 = vmatpush1.bf16.msra.mxu0 %v6671_v10  ;;  %1463 = vmatpush1.bf16.msra.mxu1 %v6671_v10 }
  0xa0   :  { %1581 = vmatprep.subr.bf16.mxu0 %v5867_v0  ;;  %2028 = vmatprep.subr.bf16.mxu1 %v5867_v0  ;;  %v56_v0 = vld [vmem:[%s7886_s0 + $0x44] sm:$0xf] }
  0xa2   :  { %1022 = vmatmul.mubr.bf16.vlgmr.msra.gmra.mrb[0].mxu0 %v6538_v51  ;;  %1481 = vmatmul.mubr.bf16.vlgmr.msra.gmra.mrb[0].mxu1 %v5938_v13 }
  0xa3   :  { %1582 = vmatpush1.bf16.msra.mxu0 %v5874_v2  ;;  %2029 = vmatpush1.bf16.msra.mxu1 %v5874_v2  ;;  %v6717_v2 = vcombine.low %v6142_v55, %v56_v0  ;;  %v8047_v55 = vld [vmem:[#allocation39_spill] sm:$0xff] }
  0xa4   :  { %1583 = vmatprep.subr.bf16.mxu0 %v5881_v3  ;;  %2030 = vmatprep.subr.bf16.mxu1 %v5881_v3  ;;  %v8017_v3 = vld [vmem:[#allocation6_spill] sm:$0xff] }
  0xa5   :  { %1031 = vmatprep.mubr.bf16.mxu0 %v7984_v17  ;;  %1490 = vmatprep.mubr.bf16.mxu1 %v7984_v17 }
  0xa7   :  { %1584 = vmatpush1.bf16.msra.mxu0 %v5888_v4  ;;  %2031 = vmatpush1.bf16.msra.mxu1 %v5888_v4  ;;  %v8018_v4 = vld [vmem:[#allocation7_spill] sm:$0xff] }
  0xa8   :  { %1585 = vmatprep.subr.bf16.mxu0 %v5895_v5  ;;  %2032 = vmatprep.subr.bf16.mxu1 %v5895_v5  ;;  %v8019_v5 = vld [vmem:[#allocation5_spill] sm:$0xff] }
  0xaa   :  { %1032 = vmatmul.mubr.bf16.gmra.mrb[4].mxu0 %v6574_v49  ;;  %1491 = vmatmul.mubr.bf16.gmra.mrb[4].mxu1 %v6066_v39 }
  0xab   :  { %1586 = vmatpush1.bf16.msra.mxu0 %v5902_v6  ;;  %2033 = vmatpush1.bf16.msra.mxu1 %v5902_v6  ;;  %v8020_v6 = vld [vmem:[#allocation8_spill] sm:$0xff] }
  0xac   :  { %1587 = vmatprep.subr.bf16.mxu0 %v5909_v7  ;;  %2034 = vmatprep.subr.bf16.mxu1 %v5909_v7  ;;  %v8021_v7 = vld [vmem:[#allocation9_spill] sm:$0xff] }
  0xad   :  { %1041 = vmatprep.mubr.bf16.mxu0 %v7984_v17  ;;  %1500 = vmatprep.mubr.bf16.mxu1 %v7984_v17 }
  0xaf   :  { %1588 = vmatpush1.bf16.msra.mxu0 %v5916_v8  ;;  %2035 = vmatpush1.bf16.msra.mxu1 %v5916_v8  ;;  %v8022_v8 = vld [vmem:[#allocation10_spill] sm:$0xff] }
  0xb0   :  { %1589 = vmatprep.subr.bf16.mxu0 %v5923_v9  ;;  %2036 = vmatprep.subr.bf16.mxu1 %v5923_v9  ;;  %v8023_v9 = vld [vmem:[#allocation11_spill] sm:$0xff] }
  0xb2   :  { %1042 = vmatmul.mubr.bf16.gmra.mrb[8].mxu0 %v6610_v47  ;;  %1501 = vmatmul.mubr.bf16.gmra.mrb[8].mxu1 %v6128_v53 }
  0xb3   :  { %1590 = vmatpush1.bf16.msra.mxu0 %v5936_v12  ;;  %2037 = vmatpush1.bf16.msra.mxu1 %v5936_v12  ;;  %v8024_v12 = vld [vmem:[#allocation12_spill] sm:$0xff] }
  0xb4   :  { %1591 = vmatprep.subr.bf16.mxu0 %v5945_v14  ;;  %2038 = vmatprep.subr.bf16.mxu1 %v5945_v14  ;;  %v8025_v14 = vld [vmem:[#allocation13_spill] sm:$0xff] }
  0xb5   :  { %1051 = vmatprep.mubr.bf16.mxu0 %v7984_v17  ;;  %1510 = vmatprep.mubr.bf16.mxu1 %v7984_v17 }
  0xb7   :  { %1592 = vmatpush1.bf16.msra.mxu0 %v5960_v18  ;;  %2039 = vmatpush1.bf16.msra.mxu1 %v5960_v18  ;;  %v8026_v18 = vld [vmem:[#allocation14_spill] sm:$0xff] }
  0xb8   :  { %1593 = vmatprep.subr.bf16.mxu0 %v5967_v19  ;;  %2040 = vmatprep.subr.bf16.mxu1 %v5967_v19  ;;  %v8027_v19 = vld [vmem:[#allocation15_spill] sm:$0xff] }
  0xba   :  { %1052 = vmatmul.mubr.bf16.gmra.mrb[12].mxu0 %v6648_v46  ;;  %1511 = vmatmul.mubr.bf16.gmra.mrb[12].mxu1 %v6717_v2 }
  0xbb   :  { %1594 = vmatpush1.bf16.msra.mxu0 %v5974_v20  ;;  %2041 = vmatpush1.bf16.msra.mxu1 %v5974_v20  ;;  %v8028_v20 = vld [vmem:[#allocation16_spill] sm:$0xff] }
  0xbc   :  { %1595 = vmatprep.subr.bf16.mxu0 %v5981_v21  ;;  %2042 = vmatprep.subr.bf16.mxu1 %v5981_v21  ;;  %v8029_v21 = vld [vmem:[#allocation17_spill] sm:$0xff] }
  0xbd   :  { %1613 = vmatprep.mubr.bf16.mxu0 %v7984_v17  ;;  %2060 = vmatprep.mubr.bf16.mxu1 %v7984_v17 }
  0xbf   :  { %1596 = vmatpush1.bf16.msra.mxu0 %v5986_v22  ;;  %2043 = vmatpush1.bf16.msra.mxu1 %v5986_v22  ;;  %v8030_v22 = vld [vmem:[#allocation18_spill] sm:$0xff] }
  0xc0   :  { %1654 = vmatprep.subr.bf16.mxu0 %v6001_v25  ;;  %2101 = vmatprep.subr.bf16.mxu1 %v6001_v25  ;;  %v8031_v25 = vld [vmem:[#allocation20_spill] sm:$0xff] }
  0xc2   :  { %1614 = vmatmul.mubr.bf16.vlgmr.msra.gmra.mrb[16].mxu0 %v6369_v16  ;;  %2061 = vmatmul.mubr.bf16.vlgmr.msra.gmra.mrb[16].mxu1 %v6538_v51 }
  0xc3   :  { %1655 = vmatpush1.bf16.msra.mxu0 %v6012_v28  ;;  %2102 = vmatpush1.bf16.msra.mxu1 %v6012_v28  ;;  %v8033_v28 = vld [vmem:[#allocation22_spill] sm:$0xff] }
  0xc4   :  { %1656 = vmatprep.subr.bf16.mxu0 %v6019_v29  ;;  %2103 = vmatprep.subr.bf16.mxu1 %v6019_v29  ;;  %v8034_v29 = vld [vmem:[#allocation23_spill] sm:$0xff] }
  0xc5   :  { %1623 = vmatprep.mubr.bf16.mxu0 %v7984_v17  ;;  %2070 = vmatprep.mubr.bf16.mxu1 %v7984_v17 }
  0xc7   :  { %1657 = vmatpush1.bf16.msra.mxu0 %v6024_v30  ;;  %2104 = vmatpush1.bf16.msra.mxu1 %v6024_v30  ;;  %v8035_v30 = vld [vmem:[#allocation26_spill] sm:$0xff] }
  0xc8   :  { %1658 = vmatprep.subr.bf16.mxu0 %v6041_v33  ;;  %2105 = vmatprep.subr.bf16.mxu1 %v6041_v33  ;;  %v8036_v33 = vld [vmem:[#allocation27_spill] sm:$0xff] }
  0xca   :  { %1624 = vmatmul.mubr.bf16.gmra.mrb[20].mxu0 %v6410_v34  ;;  %2071 = vmatmul.mubr.bf16.gmra.mrb[20].mxu1 %v6574_v49 }
  0xcb   :  { %1659 = vmatpush1.bf16.msra.mxu0 %v6052_v36  ;;  %2106 = vmatpush1.bf16.msra.mxu1 %v6052_v36  ;;  %v8038_v36 = vld [vmem:[#allocation31_spill] sm:$0xff] }
  0xcc   :  { %1660 = vmatprep.subr.bf16.mxu0 %v6064_v38  ;;  %2107 = vmatprep.subr.bf16.mxu1 %v6064_v38  ;;  %v8039_v38 = vld [vmem:[#allocation32_spill] sm:$0xff] }
  0xcd   :  { %1633 = vmatprep.mubr.bf16.mxu0 %v7984_v17  ;;  %2080 = vmatprep.mubr.bf16.mxu1 %v7984_v17 }
  0xcf   :  { %1661 = vmatpush1.bf16.msra.mxu0 %v6071_v40  ;;  %2108 = vmatpush1.bf16.msra.mxu1 %v6071_v40  ;;  %v8040_v40 = vld [vmem:[#allocation33_spill] sm:$0xff] }
  0xd0   :  { %1662 = vmatprep.subr.bf16.mxu0 %v6081_v42  ;;  %2109 = vmatprep.subr.bf16.mxu1 %v6081_v42  ;;  %v8041_v42 = vld [vmem:[#allocation34_spill] sm:$0xff] }
  0xd2   :  { %1634 = vmatmul.mubr.bf16.gmra.mrb[24].mxu0 %v6456_v48  ;;  %2081 = vmatmul.mubr.bf16.gmra.mrb[24].mxu1 %v6610_v47 }
  0xd3   :  { %1663 = vmatpush1.bf16.msra.mxu0 %v6114_v50  ;;  %2110 = vmatpush1.bf16.msra.mxu1 %v6114_v50 }
  0xd4   :  { %1664 = vmatprep.subr.bf16.mxu0 %v6126_v52  ;;  %2111 = vmatprep.subr.bf16.mxu1 %v6126_v52  ;;  %v8045_v52 = vld [vmem:[#allocation37_spill] sm:$0xff] }
  0xd5   :  { %1643 = vmatprep.mubr.bf16.mxu0 %v7984_v17  ;;  %2090 = vmatprep.mubr.bf16.mxu1 %v7984_v17 }
  0xd7   :  { %1665 = vmatpush1.bf16.msra.mxu0 %v6135_v54  ;;  %2112 = vmatpush1.bf16.msra.mxu1 %v6135_v54  ;;  %v8046_v54 = vld [vmem:[#allocation38_spill] sm:$0xff] }
  0xd8   :  { %1666 = vmatprep.subr.bf16.mxu0 %v6155_v58  ;;  %2113 = vmatprep.subr.bf16.mxu1 %v6155_v58  ;;  %v5798_v58 = vld [vmem:[%s7886_s0 + $0x5c] sm:$0xf] }
  0xda   :  { %1644 = vmatmul.mubr.bf16.gmra.mrb[28].mxu0 %v6502_v45  ;;  %2091 = vmatmul.mubr.bf16.gmra.mrb[28].mxu1 %v6648_v46 }
  0xdb   :  { %1667 = vmatpush1.bf16.msra.mxu0 %v6169_v61  ;;  %2114 = vmatpush1.bf16.msra.mxu1 %v6169_v61  ;;  %v8048_v61 = vld [vmem:[#allocation40_spill] sm:$0xff] }
  0xdc   :  { %1668 = vmatprep.subr.bf16.mxu0 %v6176_v62  ;;  %2115 = vmatprep.subr.bf16.mxu1 %v6176_v62  ;;  %v8049_v62 = vld [vmem:[#allocation41_spill] sm:$0xff] }
  0xdd   :  { %1686 = vmatprep.mubr.bf16.mxu0 %v7984_v17  ;;  %2133 = vmatprep.mubr.bf16.mxu1 %v7984_v17 }
  0xdf   :  { %1669 = vmatpush1.bf16.msra.mxu0 %v6183_v63  ;;  %2116 = vmatpush1.bf16.msra.mxu1 %v6183_v63  ;;  %v8050_v63 = vld [vmem:[#allocation42_spill] sm:$0xff] }
  0xe0   :  { %1727 = vmatprep.subr.bf16.mxu0 %v6200_v15  ;;  %2174 = vmatprep.subr.bf16.mxu1 %v6200_v15  ;;  %v65_v15 = vld [vmem:[%s7886_s0 + $0x68] sm:$0xf] }
  0xe2   :  { %1687 = vmatmul.mubr.bf16.vlgmr.msra.gmra.mrb[16].mxu0 %v6005_v27  ;;  %2134 = vmatmul.mubr.bf16.vlgmr.msra.gmra.mrb[16].mxu1 %v6369_v16  ;;  %v8032_v27 = vld [vmem:[#allocation21_spill] sm:$0xff]  ;;  %v8055_v16 = vld [vmem:[#allocation24_spill] sm:$0xff] }
  0xe3   :  { %1728 = vmatpush1.bf16.msra.mxu0 %v6210_v23  ;;  %2175 = vmatpush1.bf16.msra.mxu1 %v6210_v23  ;;  %v8051_v23 = vld [vmem:[#allocation43_spill] sm:$0xff] }
  0xe4   :  { %1729 = vmatprep.subr.bf16.mxu0 %v6217_v24  ;;  %2176 = vmatprep.subr.bf16.mxu1 %v6217_v24 }
  0xe5   :  { %1696 = vmatprep.mubr.bf16.mxu0 %v7984_v17  ;;  %2143 = vmatprep.mubr.bf16.mxu1 %v7984_v17 }
  0xe7   :  { %1730 = vmatpush1.bf16.msra.mxu0 %v6225_v31  ;;  %2177 = vmatpush1.bf16.msra.mxu1 %v6225_v31  ;;  %v5622_v31 = vld [vmem:[%s7887_s3 + $0x84] ss:$8 sps:$4 sm:$0xff]  }
  0xe8   :  { %1731 = vmatprep.subr.bf16.mxu0 %v6242_v26  ;;  %2178 = vmatprep.subr.bf16.mxu1 %v6242_v26  ;;  %v5620_v26 = vld [vmem:[%s7887_s3 + $0x80] ss:$8 sps:$4 sm:$0xff]  }
  0xea   :  { %1697 = vmatmul.mubr.bf16.gmra.mrb[20].mxu0 %v6047_v35  ;;  %2144 = vmatmul.mubr.bf16.gmra.mrb[20].mxu1 %v6410_v34  ;;  %v8037_v35 = vld [vmem:[#allocation28_spill] sm:$0xff] }
  0xeb   :  { %1732 = vmatpush1.bf16.msra.mxu0 %v6253_v43  ;;  %2179 = vmatpush1.bf16.msra.mxu1 %v6253_v43  ;;  %v5625_v43 = vld [vmem:[%s7887_s3 + $0x94] ss:$8 sps:$4 sm:$0xff]  }
  0xec   :  { %1733 = vmatprep.subr.bf16.mxu0 %v6260_v44  ;;  %2180 = vmatprep.subr.bf16.mxu1 %v6260_v44  ;;  %v8052_v44 = vld [vmem:[#allocation3_spill] sm:$0xff] }
  0xed   :  { %1706 = vmatprep.mubr.bf16.mxu0 %v7984_v17  ;;  %2153 = vmatprep.mubr.bf16.mxu1 %v7984_v17 }
  0xef   :  { %1734 = vmatpush1.bf16.msra.mxu0 %v8017_v3  ;;  %2181 = vmatpush1.bf16.msra.mxu1 %v8017_v3  ;;  %v5637_v3 = vld [vmem:[%s7887_s3 + $0xd4] ss:$8 sps:$4 sm:$0xff]  }
  0xf0   :  { %1735 = vmatprep.subr.bf16.mxu0 %v8018_v4  ;;  %2182 = vmatprep.subr.bf16.mxu1 %v8018_v4  ;;  %v74_v4 = vld [vmem:[%s7886_s0 + $0x8c] sm:$0xf] }
  0xf2   :  { %1707 = vmatmul.mubr.bf16.gmra.mrb[24].mxu0 %v8019_v5  ;;  %2154 = vmatmul.mubr.bf16.gmra.mrb[24].mxu1 %v6456_v48  ;;  %v8056_v48 = vld [vmem:[#allocation19_spill] sm:$0xff]  ;;  %v5635_v5 = vld [vmem:[%s7887_s3 + $0xd0] ss:$8 sps:$4 sm:$0xff]  }
  0xf3   :  { %1736 = vmatpush1.bf16.msra.mxu0 %v8020_v6  ;;  %2183 = vmatpush1.bf16.msra.mxu1 %v8020_v6  ;;  %v5640_v6 = vld [vmem:[%s7887_s3 + $0xe4] ss:$8 sps:$4 sm:$0xff]  }
  0xf4   :  { %1737 = vmatprep.subr.bf16.mxu0 %v8021_v7  ;;  %2184 = vmatprep.subr.bf16.mxu1 %v8021_v7  ;;  %v8059_v7 = vld [vmem:[#allocation30_spill] sm:$0xff] }
  0xf5   :  { %1716 = vmatprep.mubr.bf16.mxu0 %v7984_v17  ;;  %2163 = vmatprep.mubr.bf16.mxu1 %v7984_v17 }
  0xf7   :  { %1738 = vmatpush1.bf16.msra.mxu0 %v8022_v8  ;;  %2185 = vmatpush1.bf16.msra.mxu1 %v8022_v8  ;;  %v4674_v8 = vcombine.low %v8059_v7, %v74_v4 }
  0xf8   :  { %1739 = vmatprep.subr.bf16.mxu0 %v8023_v9  ;;  %2186 = vmatprep.subr.bf16.mxu1 %v8023_v9  ;;  %v5638_v9 = vld [vmem:[%s7887_s3 + $0xe0] ss:$8 sps:$4 sm:$0xff]  }
  0xfa   :  { %1717 = vmatmul.mubr.bf16.gmra.mrb[28].mxu0 %v6162_v60  ;;  %2164 = vmatmul.mubr.bf16.gmra.mrb[28].mxu1 %v6502_v45  ;;  %v8042_v45 = vld [vmem:[#allocation2_spill] sm:$0xff] }
  0xfb   :  { %1740 = vmatpush1.bf16.msra.mxu0 %v8024_v12  ;;  %2187 = vmatpush1.bf16.msra.mxu1 %v8024_v12  ;;  %v5643_v12 = vld [vmem:[%s7887_s3 + $0xf4] ss:$8 sps:$4 sm:$0xff]  }
  0xfc   :  { %1741 = vmatprep.subr.bf16.mxu0 %v8025_v14  ;;  %2188 = vmatprep.subr.bf16.mxu1 %v8025_v14  ;;  %v5641_v14 = vld [vmem:[%s7887_s3 + $0xf0] ss:$8 sps:$4 sm:$0xff]  }
  0xfd   :  { %1759 = vmatprep.mubr.bf16.mxu0 %v7984_v17  ;;  %2206 = vmatprep.mubr.bf16.mxu1 %v7984_v17 }
  0xff   :  { %1742 = vmatpush1.bf16.msra.mxu0 %v8026_v18  ;;  %2189 = vmatpush1.bf16.msra.mxu1 %v8026_v18  ;;  %v5646_v18 = vld [vmem:[%s7887_s3 + $0x4] ss:$8 sps:$4 sm:$0xff]  }
 0x100   :  { %1816 = vmatprep.subr.bf16.mxu0 %v8027_v19  ;;  %2263 = vmatprep.subr.bf16.mxu1 %v8027_v19  ;;  %v1080_v19 = vlaneseq }
 0x102   :  { %1760 = vmatmul.mubr.bf16.vlgmr.msra.gmra.mrb[16].mxu0 %v6538_v51  ;;  %2207 = vmatmul.mubr.bf16.vlgmr.msra.gmra.mrb[16].mxu1 %v5938_v13  ;;  %v8053_v51 = vld [vmem:[#allocation4_spill] sm:$0xff] }
 0x103   :  { %1817 = vmatpush1.bf16.msra.mxu0 %v8028_v20  ;;  %2264 = vmatpush1.bf16.msra.mxu1 %v8028_v20  ;;  %v8054_v34 = vcombine.low %v8052_v44, %v8053_v51  ;;  %v7023_v20 = vshrl.u32 %v1080_v19, 7 }
 0x104   :  { %1818 = vmatprep.subr.bf16.mxu0 %v8029_v21  ;;  %2265 = vmatprep.subr.bf16.mxu1 %v8029_v21 }
 0x105   :  { %1769 = vmatprep.mubr.bf16.mxu0 %v7984_v17  ;;  %2216 = vmatprep.mubr.bf16.mxu1 %v7984_v17  ;;  %v1082_v21 = vsub.s32 0, %v7023_v20 }
 0x107   :  { %1819 = vmatpush1.bf16.msra.mxu0 %v8030_v22  ;;  %2266 = vmatpush1.bf16.msra.mxu1 %v8030_v22  ;;  %v1078_v22 = vld [vmem:[%s7888_s2] sm:$0x3] }
 0x108   :  { %1820 = vmatprep.subr.bf16.mxu0 %v8031_v25  ;;  %2267 = vmatprep.subr.bf16.mxu1 %v8031_v25  ;;  %v1086_v25 = vsub.s32 1, %v7023_v20 }
 0x10a   :  { %1770 = vmatmul.mubr.bf16.gmra.mrb[20].mxu0 %v6574_v49  ;;  %2217 = vmatmul.mubr.bf16.gmra.mrb[20].mxu1 %v6066_v39  ;;  %v5796_v49 = vld [vmem:[%s7886_s0 + $0x54] sm:$0xf] }
 0x10b   :  { %1821 = vmatpush1.bf16.msra.mxu0 %v8032_v27  ;;  %2268 = vmatpush1.bf16.msra.mxu1 %v8032_v27  ;;  %v7032_v27 = vrot.slane %v1078_v22, %v1082_v21 }
 0x10c   :  { %1822 = vmatprep.subr.bf16.mxu0 %v8033_v28  ;;  %2269 = vmatprep.subr.bf16.mxu1 %v8033_v28  ;;  %v7036_v28 = vrot.slane %v1078_v22, %v1086_v25 }
 0x10d   :  { %1779 = vmatprep.mubr.bf16.mxu0 %v7984_v17  ;;  %2226 = vmatprep.mubr.bf16.mxu1 %v7984_v17 }
 0x10f   :  { %1823 = vmatpush1.bf16.msra.mxu0 %v8034_v29  ;;  %2270 = vmatpush1.bf16.msra.mxu1 %v8034_v29 }
 0x110   :  { %1824 = vmatprep.subr.bf16.mxu0 %v8035_v30  ;;  %2271 = vmatprep.subr.bf16.mxu1 %v8035_v30 }
 0x112   :  { %1780 = vmatmul.mubr.bf16.gmra.mrb[24].mxu0 %v6610_v47  ;;  %2227 = vmatmul.mubr.bf16.gmra.mrb[24].mxu1 %v6128_v53  ;;  %v8044_v47 = vld [vmem:[#allocation36_spill] sm:$0xff] }
 0x113   :  { %1825 = vmatpush1.bf16.msra.mxu0 %v8036_v33  ;;  %2272 = vmatpush1.bf16.msra.mxu1 %v8036_v33 }
 0x114   :  { %1826 = vmatprep.subr.bf16.mxu0 %v8037_v35  ;;  %2273 = vmatprep.subr.bf16.mxu1 %v8037_v35 }
 0x115   :  { %1789 = vmatprep.mubr.bf16.mxu0 %v7984_v17  ;;  %2236 = vmatprep.mubr.bf16.mxu1 %v7984_v17 }
 0x117   :  { %1827 = vmatpush1.bf16.msra.mxu0 %v6479_v59  ;;  %2274 = vmatpush1.bf16.msra.mxu1 %v6479_v59  ;;  %v5628_v59 = vld [vmem:[%s7887_s3 + $0xa4] ss:$8 sps:$4 sm:$0xff]  }
 0x118   :  { %1828 = vmatprep.subr.bf16.mxu0 %v8038_v36  ;;  %2275 = vmatprep.subr.bf16.mxu1 %v8038_v36 }
 0x11a   :  { %1790 = vmatmul.mubr.bf16.gmra.mrb[28].mxu0 %v6648_v46  ;;  %2237 = vmatmul.mubr.bf16.gmra.mrb[28].mxu1 %v6717_v2  ;;  %v8043_v46 = vld [vmem:[#allocation35_spill] sm:$0xff] }
 0x11b   :  { %1829 = vmatpush1.bf16.msra.mxu0 %v8039_v38  ;;  %2276 = vmatpush1.bf16.msra.mxu1 %v8039_v38 }
 0x11c   :  { %1830 = vmatprep.subr.bf16.mxu0 %v8040_v40  ;;  %2277 = vmatprep.subr.bf16.mxu1 %v8040_v40 }
 0x11d   :  { %1848 = vmatprep.mubr.bf16.mxu0 %v7984_v17  ;;  %2295 = vmatprep.mubr.bf16.mxu1 %v7984_v17 }
 0x11f   :  { %1831 = vmatpush1.bf16.msra.mxu0 %v6525_v41  ;;  %2278 = vmatpush1.bf16.msra.mxu1 %v6525_v41  ;;  %v5623_v41 = vld [vmem:[%s7887_s3 + $0x90] ss:$8 sps:$4 sm:$0xff]  }
 0x120   :  { %1915 = vmatprep.subr.bf16.mxu0 %v8041_v42  ;;  %2362 = vmatprep.subr.bf16.mxu1 %v8041_v42 }
 0x122   :  { %1849 = vmatmul.mubr.bf16.vlgmr.msra.gmra.mrb[16].mxu0 %v5938_v13  ;;  %2296 = vmatmul.mubr.bf16.vlgmr.msra.gmra.mrb[16].mxu1 %v8042_v45  ;;  %v5797_v13 = vld [vmem:[%s7886_s0 + $0x58] sm:$0xf] }
 0x123   :  { %1916 = vmatpush1.bf16.msra.mxu0 %v8043_v46  ;;  %2363 = vmatpush1.bf16.msra.mxu1 %v8043_v46  ;;  %v6893_v50 = vcombine.low %v5796_v49, %v5797_v13 }
 0x124   :  { %1917 = vmatprep.subr.bf16.mxu0 %v8044_v47  ;;  %2364 = vmatprep.subr.bf16.mxu1 %v8044_v47 }
 0x125   :  { %1858 = vmatprep.mubr.bf16.mxu0 %v7984_v17  ;;  %2305 = vmatprep.mubr.bf16.mxu1 %v7984_v17 }
 0x127   :  { %1918 = vmatpush1.bf16.msra.mxu0 %v6561_v11  ;;  %2365 = vmatpush1.bf16.msra.mxu1 %v6561_v11  ;;  %v4672_v11 = vcombine.low %v8056_v48, %v8055_v16 }
 0x128   :  { %1919 = vmatprep.subr.bf16.mxu0 %v8045_v52  ;;  %2366 = vmatprep.subr.bf16.mxu1 %v8045_v52 }
 0x12a   :  { %1859 = vmatmul.mubr.bf16.gmra.mrb[20].mxu0 %v6066_v39  ;;  %2306 = vmatmul.mubr.bf16.gmra.mrb[20].mxu1 %v6893_v50  ;;  %v5799_v39 = vld [vmem:[%s7886_s0 + $0x60] sm:$0xf] }
 0x12b   :  { %1920 = vmatpush1.bf16.msra.mxu0 %v8046_v54  ;;  %2367 = vmatpush1.bf16.msra.mxu1 %v8046_v54  ;;  %v6913_v60 = vcombine.low %v5798_v58, %v5799_v39 }
 0x12c   :  { %1921 = vmatprep.subr.bf16.mxu0 %v8047_v55  ;;  %2368 = vmatprep.subr.bf16.mxu1 %v8047_v55 }
 0x12d   :  { %1868 = vmatprep.mubr.bf16.mxu0 %v7984_v17  ;;  %2315 = vmatprep.mubr.bf16.mxu1 %v7984_v17 }
 0x12f   :  { %1922 = vmatpush1.bf16.msra.mxu0 %v8048_v61  ;;  %2369 = vmatpush1.bf16.msra.mxu1 %v8048_v61 }
 0x130   :  { %1923 = vmatprep.subr.bf16.mxu0 %v8049_v62  ;;  %2370 = vmatprep.subr.bf16.mxu1 %v8049_v62 }
 0x132   :  { %1869 = vmatmul.mubr.bf16.gmra.mrb[24].mxu0 %v6128_v53  ;;  %2316 = vmatmul.mubr.bf16.gmra.mrb[24].mxu1 %v6913_v60  ;;  %v5800_v53 = vld [vmem:[%s7886_s0 + $0x64] sm:$0xf] }
 0x133   :  { %1924 = vmatpush1.bf16.msra.mxu0 %v8050_v63  ;;  %2371 = vmatpush1.bf16.msra.mxu1 %v8050_v63  ;;  %v6933_v24 = vcombine.low %v5800_v53, %v65_v15 }
 0x134   :  { %1925 = vmatprep.subr.bf16.mxu0 %v8051_v23  ;;  %2372 = vmatprep.subr.bf16.mxu1 %v8051_v23 }
 0x135   :  { %1878 = vmatprep.mubr.bf16.mxu0 %v7984_v17  ;;  %2325 = vmatprep.mubr.bf16.mxu1 %v7984_v17 }
 0x137   :  { %1926 = vmatpush1.bf16.msra.mxu0 %v6636_v57  ;;  %2373 = vmatpush1.bf16.msra.mxu1 %v6636_v57  ;;  %v8057_v57 = vld [vmem:[#allocation29_spill] sm:$0xff] }
 0x138   :  { %1927 = vmatprep.subr.bf16.mxu0 %v6643_v56  ;;  %2374 = vmatprep.subr.bf16.mxu1 %v6643_v56  ;;  %v5629_v56 = vld [vmem:[%s7887_s3 + $0xb0] ss:$8 sps:$4 sm:$0xff]  }
 0x13a   :  { %1879 = vmatmul.mubr.bf16.gmra.mrb[28].mxu0 %v6717_v2  ;;  %2326 = vmatmul.mubr.bf16.gmra.mrb[28].mxu1 %v6933_v24  ;;  %v5632_v2 = vld [vmem:[%s7887_s3 + $0xc0] ss:$8 sps:$4 sm:$0xff]  }
 0x13b   :  { %1928 = vmatpush1.bf16.msra.mxu0 %v6655_v32  ;;  %2375 = vmatpush1.bf16.msra.mxu1 %v6655_v32  ;;  %v5626_v32 = vld [vmem:[%s7887_s3 + $0xa0] ss:$8 sps:$4 sm:$0xff]  }
 0x13c   :  { %1929 = vmatprep.subr.bf16.mxu0 %v6662_v37  ;;  %2376 = vmatprep.subr.bf16.mxu1 %v6662_v37  ;;  %v5631_v37 = vld [vmem:[%s7887_s3 + $0xb4] ss:$8 sps:$4 sm:$0xff]  }
 0x13d   :  { %1947 = vmatprep.mubr.bf16.mxu0 %v7984_v17  ;;  %2394 = vmatprep.mubr.bf16.mxu1 %v7984_v17 }
 0x13f   :  { %1930 = vmatpush1.bf16.msra.mxu0 %v6671_v10  ;;  %2377 = vmatpush1.bf16.msra.mxu1 %v6671_v10  ;;  %v8058_v10 = vld [vmem:[#allocation25_spill] sm:$0xff] }
 0x140   :  { %3364 = vmatprep.subr.bf16.mxu1 %v5622_v31  ;;  %2608 = vmatprep.subr.bf16.mxu0 %v5622_v31  ;;  %v4673_v0 = vcombine.low %v8058_v10, %v8057_v57 }
 0x142   :  { %1948 = vmatmul.mubr.bf16.vlgmr.msra.gmra.mrb[16].mxu0 %v8042_v45  ;;  %2395 = vmatmul.mubr.bf16.vlgmr.msra.gmra.mrb[16].mxu1 %v8054_v34 }
 0x143   :  { %1957 = vmatprep.mubr.bf16.mxu0 %v7984_v17  ;;  %2404 = vmatprep.mubr.bf16.mxu1 %v7984_v17 }
 0x144   :  { %3365 = vmatpush1.bf16.msra.mxu1 %v5620_v26  ;;  %2609 = vmatpush1.bf16.msra.mxu0 %v5620_v26 }
 0x145   :  { %3366 = vmatprep.subr.bf16.mxu1 %v5625_v43  ;;  %2610 = vmatprep.subr.bf16.mxu0 %v5625_v43 }
 0x148   :  { %3367 = vmatpush1.bf16.msra.mxu1 %v5623_v41  ;;  %2611 = vmatpush1.bf16.msra.mxu0 %v5623_v41 }
 0x149   :  { %3368 = vmatprep.subr.bf16.mxu1 %v5628_v59  ;;  %2612 = vmatprep.subr.bf16.mxu0 %v5628_v59 }
 0x14a   :  { %1958 = vmatmul.mubr.bf16.gmra.mrb[20].mxu0 %v6893_v50  ;;  %2405 = vmatmul.mubr.bf16.gmra.mrb[20].mxu1 %v4672_v11 }
 0x14b   :  { %1967 = vmatprep.mubr.bf16.mxu0 %v7984_v17  ;;  %2414 = vmatprep.mubr.bf16.mxu1 %v7984_v17 }
 0x14c   :  { %3369 = vmatpush1.bf16.msra.mxu1 %v5626_v32  ;;  %2613 = vmatpush1.bf16.msra.mxu0 %v5626_v32 }
 0x14d   :  { %3370 = vmatprep.subr.bf16.mxu1 %v5631_v37  ;;  %2614 = vmatprep.subr.bf16.mxu0 %v5631_v37 }
 0x150   :  { %3371 = vmatpush1.bf16.msra.mxu1 %v5629_v56  ;;  %2615 = vmatpush1.bf16.msra.mxu0 %v5629_v56 }
 0x151   :  { %3372 = vmatprep.subr.bf16.mxu1 %v5634_v1  ;;  %2616 = vmatprep.subr.bf16.mxu0 %v5634_v1 }
 0x152   :  { %1968 = vmatmul.mubr.bf16.gmra.mrb[24].mxu0 %v6913_v60  ;;  %2415 = vmatmul.mubr.bf16.gmra.mrb[24].mxu1 %v4673_v0 }
 0x153   :  { %1977 = vmatprep.mubr.bf16.mxu0 %v7984_v17  ;;  %2424 = vmatprep.mubr.bf16.mxu1 %v7984_v17 }
 0x154   :  { %3373 = vmatpush1.bf16.msra.mxu1 %v5632_v2  ;;  %2617 = vmatpush1.bf16.msra.mxu0 %v5632_v2 }
 0x155   :  { %3374 = vmatprep.subr.bf16.mxu1 %v5637_v3  ;;  %2618 = vmatprep.subr.bf16.mxu0 %v5637_v3 }
 0x158   :  { %3375 = vmatpush1.bf16.msra.mxu1 %v5635_v5  ;;  %2619 = vmatpush1.bf16.msra.mxu0 %v5635_v5 }
 0x159   :  { %3376 = vmatprep.subr.bf16.mxu1 %v5640_v6  ;;  %2620 = vmatprep.subr.bf16.mxu0 %v5640_v6 }
 0x15a   :  { %1978 = vmatmul.mubr.bf16.gmra.mrb[28].mxu0 %v6933_v24  ;;  %2425 = vmatmul.mubr.bf16.gmra.mrb[28].mxu1 %v4674_v8 }
 0x15b   :  { %3396 = vmatprep.mubr.bf16.mxu1 %v7984_v17  ;;  %2640 = vmatprep.mubr.bf16.mxu0 %v7984_v17 }
 0x15c   :  { %3377 = vmatpush1.bf16.msra.mxu1 %v5638_v9  ;;  %2621 = vmatpush1.bf16.msra.mxu0 %v5638_v9 }
 0x15d   :  { %3378 = vmatprep.subr.bf16.mxu1 %v5643_v12  ;;  %2622 = vmatprep.subr.bf16.mxu0 %v5643_v12 }
 0x160   :  { %3379 = vmatpush1.bf16.msra.mxu1 %v5641_v14  ;;  %2623 = vmatpush1.bf16.msra.mxu0 %v5641_v14 }
 0x161   :  { %3425 = vmatprep.subr.bf16.mxu1 %v5646_v18  ;;  %2749 = vmatprep.subr.bf16.mxu0 %v5646_v18 }
 0x175   :  { %v1023_v29 = vpop.f32.mrb[0].mxu0  ;;  %v1482_v30 = vpop.f32.mrb[0].mxu1 }
 0x176   :  { %v1090_v33 = vadd.f32 %v7032_v27, %v1023_v29  ;;  %v1537_v35 = vadd.f32 %v1482_v30, %v7032_v27  ;;  %v1025_v36 = vpop.f32.mrb[1].mxu0  ;;  %v1484_v38 = vpop.f32.mrb[1].mxu1 }
 0x177   :  { %v1091_v40 = vadd.f32 %v7036_v28, %v1025_v36  ;;  %v1538_v42 = vadd.f32 %v1484_v38, %v7036_v28  ;;  %v1027_v45 = vpop.f32.mrb[2].mxu0  ;;  %v1486_v46 = vpop.f32.mrb[2].mxu1 }
 0x178   :  { %v1092_v47 = vadd.f32 %v7032_v27, %v1027_v45  ;;  %v1539_v49 = vadd.f32 %v1486_v46, %v7032_v27  ;;  %v1029_v13 = vpop.f32.mrb[3].mxu0  ;;  %v1488_v50 = vpop.f32.mrb[3].mxu1 }
 0x179   :  { %v1106_v52 = vmax.f32 %v1090_v33, %v1091_v40  ;;  %v1553_v54 = vmax.f32 %v1537_v35, %v1538_v42  ;;  %v1093_v55 = vadd.f32 %v7036_v28, %v1029_v13  ;;  %v1540_v58 = vadd.f32 %v1488_v50, %v7036_v28 }
 0x17b   :  { %v1561_v39 = vmax.f32 %v1106_v52, %v1553_v54  ;;  %v1107_v60 = vmax.f32 %v1092_v47, %v1093_v55  ;;  %v1554_v61 = vmax.f32 %v1539_v49, %v1540_v58  ;;  %v7071_v54 = vld [vmem:[%s7887_s3] ss:$8 sps:$4 sm:$0xff]  }
 0x17d   :  { %v1562_v62 = vmax.f32 %v1107_v60, %v1554_v61  ;;  %v1033_v63 = vpop.f32.mrb[4].mxu0  ;;  %v1492_v15 = vpop.f32.mrb[4].mxu1  ;;  %v1569_v26 = vmax.f32 %v1561_v39, 0.0  ;;  %v7076_v60 = vld [vmem:[%s7887_s3 + $0x14] ss:$8 sps:$4 sm:$0xff]  }
 0x17e   :  { %v1094_v23 = vadd.f32 %v7032_v27, %v1033_v63  ;;  %v1541_v53 = vadd.f32 %v1492_v15, %v7032_v27  ;;  %v1035_v24 = vpop.f32.mrb[5].mxu0  ;;  %v1494_v31 = vpop.f32.mrb[5].mxu1 }
 0x17f   :  { %v1570_v43 = vmax.f32 %v1562_v62, 0.0  ;;  %v1095_v44 = vadd.f32 %v7036_v28, %v1035_v24  ;;  %v1542_v51 = vadd.f32 %v1494_v31, %v7036_v28  ;;  %v1037_v34 = vpop.f32.mrb[6].mxu0  ;;  %v1496_v41 = vpop.f32.mrb[6].mxu1 }
 0x180   :  { %v1096_v59 = vadd.f32 %v7032_v27, %v1037_v34  ;;  %v1543_v16 = vadd.f32 %v1496_v41, %v7032_v27  ;;  %v1039_v48 = vpop.f32.mrb[7].mxu0  ;;  %v1498_v11 = vpop.f32.mrb[7].mxu1 }
 0x181   :  { %v7052_v32 = vpack.c.bf16 %v1570_v43, %v1569_v26  ;;  %v1108_v37 = vmax.f32 %v1094_v23, %v1095_v44  ;;  %v1555_v56 = vmax.f32 %v1541_v53, %v1542_v51  ;;  %v1097_v1 = vadd.f32 %v7036_v28, %v1039_v48 }
 0x182   :  { %v1544_v57 = vadd.f32 %v1498_v11, %v7036_v28 }
 0x183   :  { %v1563_v10 = vmax.f32 %v1108_v37, %v1555_v56  ;;  %v1109_v0 = vmax.f32 %v1096_v59, %v1097_v1  ;;  %v2831_v50 = vrot.slane %v7052_v32, 4  ;;  %v7102_v1 = vld [vmem:[%s7887_s3 + $0x24] ss:$8 sps:$4 sm:$0xff]  }
 0x184   :  { %v1556_v2 = vmax.f32 %v1543_v16, %v1544_v57  ;;  %v7093_v16 = vld [vmem:[%s7887_s3 + $0x10] ss:$8 sps:$4 sm:$0xff]  }
 0x185   :  { %v1043_v3 = vpop.f32.mrb[8].mxu0  ;;  %v1502_v4 = vpop.f32.mrb[8].mxu1  ;;  %v1571_v22 = vmax.f32 %v1563_v10, 0.0 }
 0x186   :  { %v1564_v5 = vmax.f32 %v1109_v0, %v1556_v2  ;;  %v1098_v6 = vadd.f32 %v7032_v27, %v1043_v3  ;;  %v1545_v7 = vadd.f32 %v1502_v4, %v7032_v27  ;;  %v1045_v8 = vpop.f32.mrb[9].mxu0  ;;  %v1504_v9 = vpop.f32.mrb[9].mxu1  ;;  %v7112_v4 = vld [vmem:[%s7887_s3 + $0x20] ss:$8 sps:$4 sm:$0xff]  }
 0x187   :  { %v1099_v12 = vadd.f32 %v7036_v28, %v1045_v8  ;;  %v1546_v14 = vadd.f32 %v1504_v9, %v7036_v28  ;;  %v1047_v18 = vpop.f32.mrb[10].mxu0  ;;  %v1506_v19 = vpop.f32.mrb[10].mxu1 }
 0x188   :  { %v1572_v29 = vmax.f32 %v1564_v5, 0.0  ;;  %v1100_v30 = vadd.f32 %v7032_v27, %v1047_v18  ;;  %v1547_v33 = vadd.f32 %v1506_v19, %v7032_v27  ;;  %v1049_v35 = vpop.f32.mrb[11].mxu0  ;;  %v1508_v36 = vpop.f32.mrb[11].mxu1  ;;  %v7144_v19 = vld [vmem:[%s7887_s3 + $0x40] ss:$8 sps:$4 sm:$0xff]  }
 0x189   :  { %v1110_v38 = vmax.f32 %v1098_v6, %v1099_v12  ;;  %v1557_v40 = vmax.f32 %v1545_v7, %v1546_v14  ;;  %v1101_v42 = vadd.f32 %v7036_v28, %v1049_v35  ;;  %v1548_v45 = vadd.f32 %v1508_v36, %v7036_v28  ;;  %v7122_v6 = vld [vmem:[%s7887_s3 + $0x34] ss:$8 sps:$4 sm:$0xff]   ;;  %v7130_v12 = vld [vmem:[%s7887_s3 + $0x30] ss:$8 sps:$4 sm:$0xff]   ;;  %v7136_v14 = vld [vmem:[%s7887_s3 + $0x44] ss:$8 sps:$4 sm:$0xff]  }
 0x18a   :  { %v7064_v46 = vpack.c.bf16 %v1572_v29, %v1571_v22  ;;  %v7150_v22 = vld [vmem:[%s7887_s3 + $0x54] ss:$8 sps:$4 sm:$0xff]   ;;  %v7157_v29 = vld [vmem:[%s7887_s3 + $0x50] ss:$8 sps:$4 sm:$0xff]  }
 0x18b   :  { %v1565_v47 = vmax.f32 %v1110_v38, %v1557_v40  ;;  %v1111_v49 = vmax.f32 %v1100_v30, %v1101_v42  ;;  %v1558_v13 = vmax.f32 %v1547_v33, %v1548_v45  ;;  %v7164_v30 = vld [vmem:[%s7887_s3 + $0x64] ss:$8 sps:$4 sm:$0xff]   ;;  %v7170_v33 = vld [vmem:[%s7887_s3 + $0x60] ss:$8 sps:$4 sm:$0xff]   ;;  %v7176_v35 = vld [vmem:[%s7887_s3 + $0x74] ss:$8 sps:$4 sm:$0xff]  }
 0x18c   :  { %v2832_v52 = vrot.slane %v7064_v46, 4  ;;  %v7182_v36 = vld [vmem:[%s7887_s3 + $0x70] ss:$8 sps:$4 sm:$0xff]   ;;  %v7188_v38 = vld [vmem:[%s7887_s3 + $0x104] ss:$8 sps:$4 sm:$0xff]  }
 0x18d   :  { %v1566_v55 = vmax.f32 %v1111_v49, %v1558_v13  ;;  %v1053_v58 = vpop.f32.mrb[12].mxu0  ;;  %v1512_v39 = vpop.f32.mrb[12].mxu1  ;;  %v1573_v53 = vmax.f32 %v1565_v47, 0.0 }
 0x18e   :  { %v1102_v61 = vadd.f32 %v7032_v27, %v1053_v58  ;;  %v1549_v62 = vadd.f32 %v1512_v39, %v7032_v27  ;;  %v1055_v63 = vpop.f32.mrb[13].mxu0  ;;  %v1514_v15 = vpop.f32.mrb[13].mxu1  ;;  %v7081_v23 = vsel %vm2830_vm0, %v2831_v50, %v2832_v52 }
 0x18f   :  { %v1574_v24 = vmax.f32 %v1566_v55, 0.0  ;;  %v1103_v31 = vadd.f32 %v7036_v28, %v1055_v63  ;;  %v1550_v26 = vadd.f32 %v1514_v15, %v7036_v28  ;;  %3397 = vmatmul.mubr.bf16.vlgmr.msra.gmra.mrb[32].mxu1 %v7081_v23  ;;  %v1057_v43 = vpop.f32.mrb[14].mxu0  ;;  %v1516_v44 = vpop.f32.mrb[14].mxu1 }
 0x190   :  { %v1104_v51 = vadd.f32 %v7032_v27, %v1057_v43  ;;  %v1551_v34 = vadd.f32 %v1516_v44, %v7032_v27  ;;  %v1059_v41 = vpop.f32.mrb[15].mxu0  ;;  %v1518_v59 = vpop.f32.mrb[15].mxu1  ;;  %3406 = vmatprep.mubr.bf16.mxu1 %v7984_v17  ;;  %3426 = vmatpush1.bf16.msra.mxu1 %v7071_v54 }
 0x191   :  { %v7095_v48 = vpack.c.bf16 %v1574_v24, %v1573_v53  ;;  %v1112_v11 = vmax.f32 %v1102_v61, %v1103_v31  ;;  %v1559_v37 = vmax.f32 %v1549_v62, %v1550_v26  ;;  %v1105_v56 = vadd.f32 %v7036_v28, %v1059_v41  ;;  %3427 = vmatprep.subr.bf16.mxu1 %v7076_v60 }
 0x192   :  { %v1552_v57 = vadd.f32 %v1518_v59, %v7036_v28 }
 0x193   :  { %v1567_v10 = vmax.f32 %v1112_v11, %v1559_v37  ;;  %v1113_v0 = vmax.f32 %v1104_v51, %v1105_v56  ;;  %v7106_v2 = vrot.slane %v7095_v48, 4 }
 0x194   :  { %v1560_v3 = vmax.f32 %v1551_v34, %v1552_v57  ;;  %3428 = vmatpush1.bf16.msra.mxu1 %v7093_v16 }
 0x195   :  { %v7116_v5 = vsel %vm2830_vm0, %v2832_v52, %v7106_v2  ;;  %3429 = vmatprep.subr.bf16.mxu1 %v7102_v1  ;;  %v1575_v8 = vmax.f32 %v1567_v10, 0.0 }
 0x196   :  { %v1568_v7 = vmax.f32 %v1113_v0, %v1560_v3 }
 0x197   :  { %3407 = vmatmul.mubr.bf16.gmra.mrb[36].mxu1 %v7116_v5 }
 0x198   :  { %v1576_v9 = vmax.f32 %v1568_v7, 0.0  ;;  %3416 = vmatprep.mubr.bf16.mxu1 %v7984_v17  ;;  %3430 = vmatpush1.bf16.msra.mxu1 %v7112_v4 }
 0x199   :  { %3431 = vmatprep.subr.bf16.mxu1 %v7122_v6 }
 0x19a   :  { %v7138_v18 = vpack.c.bf16 %v1576_v9, %v1575_v8 }
 0x19c   :  { %3432 = vmatpush1.bf16.msra.mxu1 %v7130_v12 }
 0x19d   :  { %3433 = vmatprep.subr.bf16.mxu1 %v7136_v14 }
 0x19f   :  { %3417 = vmatmul.mubr.bf16.gmra.mrb[40].mxu1 %v7106_v2 }
 0x1a0   :  { %3434 = vmatpush1.bf16.msra.mxu1 %v7144_v19  ;;  %3457 = vmatprep.mubr.bf16.mxu1 %v7984_v17 }
 0x1a1   :  { %3435 = vmatprep.subr.bf16.mxu1 %v7150_v22 }
 0x1a4   :  { %3436 = vmatpush1.bf16.msra.mxu1 %v7157_v29 }
 0x1a5   :  { %3437 = vmatprep.subr.bf16.mxu1 %v7164_v30 }
 0x1a8   :  { %3438 = vmatpush1.bf16.msra.mxu1 %v7170_v33 }
 0x1a9   :  { %3439 = vmatprep.subr.bf16.mxu1 %v7176_v35 }
 0x1ac   :  { %3440 = vmatpush1.bf16.msra.mxu1 %v7182_v36 }
 0x1ad   :  { %3486 = vmatprep.subr.bf16.mxu1 %v7188_v38 }
 0x215   :  { %v1949_v40 = vpop.f32.mrb[16].mxu0  ;;  %v2396_v42 = vpop.f32.mrb[16].mxu1 }
 0x216   :  { %v2004_v45 = vadd.f32 %v1949_v40, %v7032_v27  ;;  %v2451_v47 = vadd.f32 %v2396_v42, %v7032_v27  ;;  %v1951_v49 = vpop.f32.mrb[17].mxu0  ;;  %v2398_v13 = vpop.f32.mrb[17].mxu1 }
 0x217   :  { %v2005_v50 = vadd.f32 %v1951_v49, %v7036_v28  ;;  %v2452_v52 = vadd.f32 %v2398_v13, %v7036_v28  ;;  %v1953_v55 = vpop.f32.mrb[18].mxu0  ;;  %v2400_v58 = vpop.f32.mrb[18].mxu1 }
 0x218   :  { %v2006_v39 = vadd.f32 %v1953_v55, %v7032_v27  ;;  %v2453_v61 = vadd.f32 %v2400_v58, %v7032_v27  ;;  %v1955_v62 = vpop.f32.mrb[19].mxu0  ;;  %v2402_v63 = vpop.f32.mrb[19].mxu1  ;;  %v7217_v55 = vld [vmem:[%s7887_s3 + $0x114] ss:$8 sps:$4 sm:$0xff]  }
 0x219   :  { %v2020_v15 = vmax.f32 %v2004_v45, %v2005_v50  ;;  %v2467_v53 = vmax.f32 %v2451_v47, %v2452_v52  ;;  %v2007_v24 = vadd.f32 %v1955_v62, %v7036_v28  ;;  %v2454_v31 = vadd.f32 %v2402_v63, %v7036_v28  ;;  %v7209_v47 = vld [vmem:[%s7887_s3 + $0x100] ss:$8 sps:$4 sm:$0xff]   ;;  %v7227_v63 = vld [vmem:[%s7887_s3 + $0x110] ss:$8 sps:$4 sm:$0xff]  }
 0x21b   :  { %v2475_v26 = vmax.f32 %v2020_v15, %v2467_v53  ;;  %v2021_v43 = vmax.f32 %v2006_v39, %v2007_v24  ;;  %v2468_v44 = vmax.f32 %v2453_v61, %v2454_v31 }
 0x21d   :  { %v2476_v51 = vmax.f32 %v2021_v43, %v2468_v44  ;;  %v1959_v34 = vpop.f32.mrb[20].mxu0  ;;  %v2406_v41 = vpop.f32.mrb[20].mxu1  ;;  %v2483_v57 = vmax.f32 %v2475_v26, 0.0  ;;  %v7238_v44 = vld [vmem:[%s7887_s3 + $0x124] ss:$8 sps:$4 sm:$0xff]  }
 0x21e   :  { %v2008_v59 = vadd.f32 %v1959_v34, %v7032_v27  ;;  %v2455_v11 = vadd.f32 %v2406_v41, %v7032_v27  ;;  %v1961_v37 = vpop.f32.mrb[21].mxu0  ;;  %v2408_v56 = vpop.f32.mrb[21].mxu1 }
 0x21f   :  { %v2484_v10 = vmax.f32 %v2476_v51, 0.0  ;;  %v2009_v0 = vadd.f32 %v1961_v37, %v7036_v28  ;;  %v2456_v3 = vadd.f32 %v2408_v56, %v7036_v28  ;;  %v1963_v7 = vpop.f32.mrb[22].mxu0  ;;  %v2410_v8 = vpop.f32.mrb[22].mxu1 }
 0x220   :  { %v2010_v9 = vadd.f32 %v1963_v7, %v7032_v27  ;;  %v2457_v40 = vadd.f32 %v2410_v8, %v7032_v27  ;;  %v1965_v42 = vpop.f32.mrb[23].mxu0  ;;  %v2412_v45 = vpop.f32.mrb[23].mxu1 }
 0x221   :  { %v7211_v49 = vpack.c.bf16 %v2484_v10, %v2483_v57  ;;  %v2022_v13 = vmax.f32 %v2008_v59, %v2009_v0  ;;  %v2469_v50 = vmax.f32 %v2455_v11, %v2456_v3  ;;  %v2011_v52 = vadd.f32 %v1965_v42, %v7036_v28 }
 0x222   :  { %v2458_v58 = vadd.f32 %v2412_v45, %v7036_v28 }
 0x223   :  { %v2477_v39 = vmax.f32 %v2022_v13, %v2469_v50  ;;  %v2023_v61 = vmax.f32 %v2010_v9, %v2011_v52  ;;  %2641 = vmatmul.mubr.bf16.vlgmr.msra.gmra.mrb[32].mxu0 %v7211_v49  ;;  %3458 = vmatmul.mubr.bf16.vlgmr.msra.gmra.mrb[32].mxu1 %v7211_v49  ;;  %v7252_v9 = vld [vmem:[%s7887_s3 + $0x120] ss:$8 sps:$4 sm:$0xff]  }
 0x224   :  { %v2470_v62 = vmax.f32 %v2457_v40, %v2458_v58  ;;  %2750 = vmatpush1.bf16.msra.mxu0 %v7071_v54  ;;  %3487 = vmatpush1.bf16.msra.mxu1 %v7209_v47  ;;  %v7269_v58 = vld [vmem:[%s7887_s3 + $0x130] ss:$8 sps:$4 sm:$0xff]  }
 0x225   :  { %v1969_v15 = vpop.f32.mrb[24].mxu0  ;;  %v2416_v53 = vpop.f32.mrb[24].mxu1  ;;  %2751 = vmatprep.subr.bf16.mxu0 %v7076_v60  ;;  %3488 = vmatprep.subr.bf16.mxu1 %v7217_v55  ;;  %v2485_v59 = vmax.f32 %v2477_v39, 0.0 }
 0x226   :  { %v2478_v24 = vmax.f32 %v2023_v61, %v2470_v62  ;;  %v2012_v31 = vadd.f32 %v1969_v15, %v7032_v27  ;;  %v2459_v26 = vadd.f32 %v2416_v53, %v7032_v27  ;;  %v1971_v43 = vpop.f32.mrb[25].mxu0  ;;  %v2418_v54 = vpop.f32.mrb[25].mxu1  ;;  %2650 = vmatprep.mubr.bf16.mxu0 %v7984_v17  ;;  %3467 = vmatprep.mubr.bf16.mxu1 %v7984_v17 }
 0x227   :  { %v2013_v60 = vadd.f32 %v1971_v43, %v7036_v28  ;;  %v2460_v51 = vadd.f32 %v2418_v54, %v7036_v28  ;;  %v1973_v34 = vpop.f32.mrb[26].mxu0  ;;  %v2420_v41 = vpop.f32.mrb[26].mxu1 }
 0x228   :  { %v2486_v11 = vmax.f32 %v2478_v24, 0.0  ;;  %v2014_v37 = vadd.f32 %v1973_v34, %v7032_v27  ;;  %v2461_v56 = vadd.f32 %v2420_v41, %v7032_v27  ;;  %2752 = vmatpush1.bf16.msra.mxu0 %v7093_v16  ;;  %3489 = vmatpush1.bf16.msra.mxu1 %v7227_v63  ;;  %v1975_v57 = vpop.f32.mrb[27].mxu0  ;;  %v2422_v10 = vpop.f32.mrb[27].mxu1  ;;  %v7260_v16 = vld [vmem:[%s7887_s3 + $0x134] ss:$8 sps:$4 sm:$0xff]  }
 0x229   :  { %v2024_v0 = vmax.f32 %v2012_v31, %v2013_v60  ;;  %v2471_v3 = vmax.f32 %v2459_v26, %v2460_v51  ;;  %v2015_v7 = vadd.f32 %v1975_v57, %v7036_v28  ;;  %v2462_v8 = vadd.f32 %v2422_v10, %v7036_v28  ;;  %2753 = vmatprep.subr.bf16.mxu0 %v7102_v1 }
 0x22a   :  { %v7254_v40 = vpack.c.bf16 %v2486_v11, %v2485_v59  ;;  %3490 = vmatprep.subr.bf16.mxu1 %v7238_v44 }
 0x22b   :  { %v2479_v42 = vmax.f32 %v2024_v0, %v2471_v3  ;;  %v2025_v45 = vmax.f32 %v2014_v37, %v2015_v7  ;;  %v2472_v13 = vmax.f32 %v2461_v56, %v2462_v8  ;;  %v7293_v37 = vld [vmem:[%s7887_s3 + $0x140] ss:$8 sps:$4 sm:$0xff]   ;;  %v7318_v3 = vld [vmem:[%s7887_s3 + $0x164] ss:$8 sps:$4 sm:$0xff]   ;;  %v7334_v8 = vld [vmem:[%s7887_s3 + $0x174] ss:$8 sps:$4 sm:$0xff]  }
 0x22c   :  { %2651 = vmatmul.mubr.bf16.gmra.mrb[36].mxu0 %v7254_v40  ;;  %3468 = vmatmul.mubr.bf16.gmra.mrb[36].mxu1 %v7254_v40 }
 0x22d   :  { %v2480_v1 = vmax.f32 %v2025_v45, %v2472_v13  ;;  %2754 = vmatpush1.bf16.msra.mxu0 %v7112_v4  ;;  %3491 = vmatpush1.bf16.msra.mxu1 %v7252_v9  ;;  %v1979_v50 = vpop.f32.mrb[28].mxu0  ;;  %v2426_v52 = vpop.f32.mrb[28].mxu1  ;;  %v7278_v4 = vld [vmem:[%s7887_s3 + $0x144] ss:$8 sps:$4 sm:$0xff]   ;;  %v2487_v53 = vmax.f32 %v2479_v42, 0.0  ;;  %v3011_v45 = vrot.slane %v7254_v40, 4 }
 0x22e   :  { %v2016_v39 = vadd.f32 %v1979_v50, %v7032_v27  ;;  %v2463_v61 = vadd.f32 %v2426_v52, %v7032_v27  ;;  %v1981_v62 = vpop.f32.mrb[29].mxu0  ;;  %v2428_v15 = vpop.f32.mrb[29].mxu1  ;;  %2755 = vmatprep.subr.bf16.mxu0 %v7122_v6  ;;  %3492 = vmatprep.subr.bf16.mxu1 %v7260_v16  ;;  %v7359_v13 = vld [vmem:[%s7887_s3 + $0x180] ss:$8 sps:$4 sm:$0xff]   ;;  %v7449_v50 = vld [vmem:[%s7887_s3 + $0x1d0] ss:$8 sps:$4 sm:$0xff]  }
 0x22f   :  { %v2488_v24 = vmax.f32 %v2480_v1, 0.0  ;;  %v2017_v31 = vadd.f32 %v1981_v62, %v7036_v28  ;;  %v2464_v26 = vadd.f32 %v2428_v15, %v7036_v28  ;;  %v1983_v43 = vpop.f32.mrb[30].mxu0  ;;  %v2430_v54 = vpop.f32.mrb[30].mxu1  ;;  %2660 = vmatprep.mubr.bf16.mxu0 %v7984_v17  ;;  %3477 = vmatprep.mubr.bf16.mxu1 %v7984_v17  ;;  %v7456_v52 = vld [vmem:[%s7887_s3 + $0x1e4] ss:$8 sps:$4 sm:$0xff]  }
 0x230   :  { %v2018_v6 = vadd.f32 %v1983_v43, %v7032_v27  ;;  %v2465_v60 = vadd.f32 %v2430_v54, %v7032_v27  ;;  %v1985_v51 = vpop.f32.mrb[31].mxu0  ;;  %v2432_v34 = vpop.f32.mrb[31].mxu1  ;;  %v7302_v27 = vld [vmem:[%s7887_s3 + $0x154] ss:$8 sps:$4 sm:$0xff]   ;;  %v7486_v62 = vld [vmem:[%s7887_s3 + $0x204] ss:$8 sps:$4 sm:$0xff]  }
 0x231   :  { %v7286_v41 = vpack.c.bf16 %v2488_v24, %v2487_v53  ;;  %v2026_v59 = vmax.f32 %v2016_v39, %v2017_v31  ;;  %v2473_v11 = vmax.f32 %v2463_v61, %v2464_v26  ;;  %2756 = vmatpush1.bf16.msra.mxu0 %v7130_v12  ;;  %3493 = vmatpush1.bf16.msra.mxu1 %v7269_v58  ;;  %v7472_v39 = vld [vmem:[%s7887_s3 + $0x1f4] ss:$8 sps:$4 sm:$0xff]   ;;  %v7479_v61 = vld [vmem:[%s7887_s3 + $0x1f0] ss:$8 sps:$4 sm:$0xff]   ;;  %v7493_v15 = vld [vmem:[%s7887_s3 + $0x200] ss:$8 sps:$4 sm:$0xff]  }
 0x232   :  { %v2019_v56 = vadd.f32 %v1985_v51, %v7036_v28  ;;  %v2466_v57 = vadd.f32 %v2432_v34, %v7036_v28  ;;  %2757 = vmatprep.subr.bf16.mxu0 %v7136_v14  ;;  %3494 = vmatprep.subr.bf16.mxu1 %v7278_v4  ;;  %v7311_v28 = vld [vmem:[%s7887_s3 + $0x150] ss:$8 sps:$4 sm:$0xff]   ;;  %v5724_v24 = vld [vmem:[%s7887_s3 + $0x224] ss:$8 sps:$4 sm:$0xff]   ;;  %v5727_v31 = vld [vmem:[%s7887_s3 + $0x234] ss:$8 sps:$4 sm:$0xff]  }
 0x233   :  { %v2481_v12 = vmax.f32 %v2026_v59, %v2473_v11  ;;  %v5719_v53 = vld [vmem:[%s7887_s3 + $0x210] ss:$8 sps:$4 sm:$0xff]   ;;  %v5730_v43 = vld [vmem:[%s7887_s3 + $0x244] ss:$8 sps:$4 sm:$0xff]  }
 0x234   :  { %v2027_v10 = vmax.f32 %v2018_v6, %v2019_v56  ;;  %v2474_v0 = vmax.f32 %v2465_v60, %v2466_v57  ;;  %2661 = vmatmul.mubr.bf16.gmra.mrb[40].mxu0 %v7286_v41  ;;  %3478 = vmatmul.mubr.bf16.gmra.mrb[44].mxu1 %v7286_v41  ;;  %v5725_v26 = vld [vmem:[%s7887_s3 + $0x230] ss:$8 sps:$4 sm:$0xff]   ;;  %v5733_v6 = vld [vmem:[%s7887_s3 + $0x254] ss:$8 sps:$4 sm:$0xff]   ;;  %v5736_v11 = vld [vmem:[%s7887_s3 + $0x264] ss:$8 sps:$4 sm:$0xff]  }
 0x235   :  { %2758 = vmatpush1.bf16.msra.mxu0 %v7144_v19  ;;  %3495 = vmatpush1.bf16.msra.mxu1 %v7293_v37  ;;  %v2489_v19 = vmax.f32 %v2481_v12, 0.0  ;;  %v5731_v59 = vld [vmem:[%s7887_s3 + $0x250] ss:$8 sps:$4 sm:$0xff]  }
 0x236   :  { %v2482_v14 = vmax.f32 %v2027_v10, %v2474_v0  ;;  %2759 = vmatprep.subr.bf16.mxu0 %v7150_v22  ;;  %3496 = vmatprep.subr.bf16.mxu1 %v7302_v27  ;;  %v7327_v22 = vld [vmem:[%s7887_s3 + $0x160] ss:$8 sps:$4 sm:$0xff]   ;;  %v5737_v56 = vld [vmem:[%s7887_s3 + $0x270] ss:$8 sps:$4 sm:$0xff]  }
 0x237   :  { %2781 = vmatprep.mubr.bf16.mxu0 %v7984_v17  ;;  %3518 = vmatprep.mubr.bf16.mxu1 %v7984_v17  ;;  %v5745_v57 = vld [vmem:[%s7889_s5 + $0x50] sm:$0xff]   ;;  %v5747_v12 = vld [vmem:[%s7889_s5 + $0x58] sm:$0xff]   ;;  %v5748_v10 = vld [vmem:[%s7889_s5 + $0x20] sm:$0xff]  }
 0x238   :  { %v2490_v7 = vmax.f32 %v2482_v14, 0.0  ;;  %v5749_v0 = vld [vmem:[%s7889_s5 + $0x60] sm:$0xff]   ;;  %v5751_v14 = vld [vmem:[%s7889_s5 + $0x68] sm:$0xff]  }
 0x239   :  { %2760 = vmatpush1.bf16.msra.mxu0 %v7157_v29  ;;  %3497 = vmatpush1.bf16.msra.mxu1 %v7311_v28  ;;  %v7343_v29 = vld [vmem:[%s7887_s3 + $0x170] ss:$8 sps:$4 sm:$0xff]  }
 0x23a   :  { %2761 = vmatprep.subr.bf16.mxu0 %v7164_v30  ;;  %3498 = vmatprep.subr.bf16.mxu1 %v7318_v3  ;;  %v7336_v42 = vpack.c.bf16 %v2490_v7, %v2489_v19  ;;  %v7350_v30 = vld [vmem:[%s7887_s3 + $0x184] ss:$8 sps:$4 sm:$0xff]   ;;  %v5753_v19 = vld [vmem:[%s7889_s5 + $0x70] sm:$0xff]   ;;  %v5754_v7 = vld [vmem:[%s7889_s5 + $0x38] sm:$0xff]  }
 0x23d   :  { %2762 = vmatpush1.bf16.msra.mxu0 %v7170_v33  ;;  %3499 = vmatpush1.bf16.msra.mxu1 %v7327_v22  ;;  %v3010_v33 = vrot.slane %v7211_v49, 4  ;;  %v7385_v49 = vld [vmem:[%s7887_s3 + $0x1a4] ss:$8 sps:$4 sm:$0xff]  }
 0x23e   :  { %2763 = vmatprep.subr.bf16.mxu0 %v7176_v35  ;;  %3500 = vmatprep.subr.bf16.mxu1 %v7334_v8  ;;  %v7366_v35 = vld [vmem:[%s7887_s3 + $0x194] ss:$8 sps:$4 sm:$0xff]  }
 0x241   :  { %2764 = vmatpush1.bf16.msra.mxu0 %v7182_v36  ;;  %3501 = vmatpush1.bf16.msra.mxu1 %v7343_v29  ;;  %v7369_v36 = vsel %vm2830_vm0, %v3010_v33, %v3011_v45 }
 0x242   :  { %2919 = vmatprep.subr.bf16.mxu0 %v7188_v38  ;;  %3557 = vmatprep.subr.bf16.mxu1 %v7350_v30  ;;  %v7378_v38 = vld [vmem:[%s7887_s3 + $0x190] ss:$8 sps:$4 sm:$0xff]  }
 0x244   :  { %2782 = vmatmul.mubr.bf16.vlgmr.msra.gmra.mrb[32].mxu0 %v7052_v32  ;;  %3519 = vmatmul.mubr.bf16.vlgmr.msra.gmra.mrb[32].mxu1 %v7369_v36  ;;  %v7390_v32 = vrot.slane %v7286_v41, 4 }
 0x245   :  { %2920 = vmatpush1.bf16.msra.mxu0 %v7209_v47  ;;  %3558 = vmatpush1.bf16.msra.mxu1 %v7359_v13  ;;  %v7397_v47 = vld [vmem:[%s7887_s3 + $0x1a0] ss:$8 sps:$4 sm:$0xff]  }
 0x246   :  { %2921 = vmatprep.subr.bf16.mxu0 %v7217_v55  ;;  %3559 = vmatprep.subr.bf16.mxu1 %v7366_v35  ;;  %v7404_v55 = vld [vmem:[%s7887_s3 + $0x1b4] ss:$8 sps:$4 sm:$0xff]   ;;  %v7408_v1 = vsel %vm2830_vm0, %v3011_v45, %v7390_v32 }
 0x247   :  { %2791 = vmatprep.mubr.bf16.mxu0 %v7984_v17  ;;  %3528 = vmatprep.mubr.bf16.mxu1 %v7984_v17 }
 0x249   :  { %2922 = vmatpush1.bf16.msra.mxu0 %v7227_v63  ;;  %3560 = vmatpush1.bf16.msra.mxu1 %v7378_v38  ;;  %v7417_v63 = vld [vmem:[%s7887_s3 + $0x1b0] ss:$8 sps:$4 sm:$0xff]  }
 0x24a   :  { %2923 = vmatprep.subr.bf16.mxu0 %v7238_v44  ;;  %3561 = vmatprep.subr.bf16.mxu1 %v7385_v49  ;;  %v7424_v44 = vld [vmem:[%s7887_s3 + $0x1c4] ss:$8 sps:$4 sm:$0xff]  }
 0x24c   :  { %2792 = vmatmul.mubr.bf16.gmra.mrb[36].mxu0 %v7064_v46  ;;  %3529 = vmatmul.mubr.bf16.gmra.mrb[36].mxu1 %v7408_v1 }
 0x24d   :  { %2924 = vmatpush1.bf16.msra.mxu0 %v7252_v9  ;;  %3562 = vmatpush1.bf16.msra.mxu1 %v7397_v47  ;;  %v7433_v9 = vld [vmem:[%s7887_s3 + $0x1c0] ss:$8 sps:$4 sm:$0xff]  }
 0x24e   :  { %2925 = vmatprep.subr.bf16.mxu0 %v7260_v16  ;;  %3563 = vmatprep.subr.bf16.mxu1 %v7404_v55  ;;  %v7440_v16 = vld [vmem:[%s7887_s3 + $0x1d4] ss:$8 sps:$4 sm:$0xff]  }
 0x24f   :  { %2801 = vmatprep.mubr.bf16.mxu0 %v7984_v17  ;;  %3538 = vmatprep.mubr.bf16.mxu1 %v7984_v17 }
 0x251   :  { %2926 = vmatpush1.bf16.msra.mxu0 %v7269_v58  ;;  %3564 = vmatpush1.bf16.msra.mxu1 %v7417_v63  ;;  %v7465_v58 = vld [vmem:[%s7887_s3 + $0x1e0] ss:$8 sps:$4 sm:$0xff]  }
 0x252   :  { %2927 = vmatprep.subr.bf16.mxu0 %v7278_v4  ;;  %3565 = vmatprep.subr.bf16.mxu1 %v7424_v44  ;;  %v7500_v4 = vld [vmem:[%s7887_s3 + $0x214] ss:$8 sps:$4 sm:$0xff]  }
 0x254   :  { %2802 = vmatmul.mubr.bf16.gmra.mrb[44].mxu0 %v7095_v48  ;;  %3539 = vmatmul.mubr.bf16.gmra.mrb[48].mxu1 %v7390_v32 }
 0x255   :  { %2928 = vmatpush1.bf16.msra.mxu0 %v7293_v37  ;;  %3566 = vmatpush1.bf16.msra.mxu1 %v7433_v9  ;;  %v5739_v37 = vld [vmem:[%s7887_s3 + $0x274] ss:$8 sps:$4 sm:$0xff]  }
 0x256   :  { %2929 = vmatprep.subr.bf16.mxu0 %v7302_v27  ;;  %3567 = vmatprep.subr.bf16.mxu1 %v7440_v16  ;;  %v5746_v27 = vld [vmem:[%s7889_s5 + $0x18] sm:$0xff]  }
 0x257   :  { %2951 = vmatprep.mubr.bf16.mxu0 %v7984_v17  ;;  %3589 = vmatprep.mubr.bf16.mxu1 %v7984_v17 }
 0x259   :  { %2930 = vmatpush1.bf16.msra.mxu0 %v7311_v28  ;;  %3568 = vmatpush1.bf16.msra.mxu1 %v7449_v50  ;;  %v5750_v28 = vld [vmem:[%s7889_s5 + $0x28] sm:$0xff]  }
 0x25a   :  { %2931 = vmatprep.subr.bf16.mxu0 %v7318_v3  ;;  %3569 = vmatprep.subr.bf16.mxu1 %v7456_v52  ;;  %v5752_v3 = vld [vmem:[%s7889_s5 + $0x30] sm:$0xff]  }
 0x25d   :  { %2932 = vmatpush1.bf16.msra.mxu0 %v7327_v22  ;;  %3570 = vmatpush1.bf16.msra.mxu1 %v7465_v58  ;;  %v5755_v22 = vld [vmem:[%s7889_s5 + $0x78] sm:$0xff]  }
 0x25e   :  { %2933 = vmatprep.subr.bf16.mxu0 %v7334_v8  ;;  %3571 = vmatprep.subr.bf16.mxu1 %v7472_v39 }
 0x261   :  { %2934 = vmatpush1.bf16.msra.mxu0 %v7343_v29  ;;  %3572 = vmatpush1.bf16.msra.mxu1 %v7479_v61 }
 0x262   :  { %3098 = vmatprep.subr.bf16.mxu0 %v7350_v30  ;;  %3628 = vmatprep.subr.bf16.mxu1 %v7486_v62 }
 0x264   :  { %2952 = vmatmul.mubr.bf16.vlgmr.msra.gmra.mrb[32].mxu0 %v7081_v23  ;;  %3590 = vmatmul.mubr.bf16.vlgmr.msra.gmra.mrb[32].mxu1 %v7064_v46  ;;  %v5722_v23 = vld [vmem:[%s7887_s3 + $0x220] ss:$8 sps:$4 sm:$0xff]  }
 0x265   :  { %3099 = vmatpush1.bf16.msra.mxu0 %v7359_v13  ;;  %3629 = vmatpush1.bf16.msra.mxu1 %v7493_v15 }
 0x266   :  { %3100 = vmatprep.subr.bf16.mxu0 %v7366_v35  ;;  %3630 = vmatprep.subr.bf16.mxu1 %v7500_v4 }
 0x267   :  { %2961 = vmatprep.mubr.bf16.mxu0 %v7984_v17  ;;  %3599 = vmatprep.mubr.bf16.mxu1 %v7984_v17 }
 0x269   :  { %3101 = vmatpush1.bf16.msra.mxu0 %v7378_v38  ;;  %3631 = vmatpush1.bf16.msra.mxu1 %v5719_v53 }
 0x26a   :  { %3102 = vmatprep.subr.bf16.mxu0 %v7385_v49  ;;  %3632 = vmatprep.subr.bf16.mxu1 %v5724_v24 }
 0x26c   :  { %2962 = vmatmul.mubr.bf16.gmra.mrb[36].mxu0 %v7116_v5  ;;  %3600 = vmatmul.mubr.bf16.gmra.mrb[36].mxu1 %v7095_v48  ;;  %v5728_v5 = vld [vmem:[%s7887_s3 + $0x240] ss:$8 sps:$4 sm:$0xff]  }
 0x26d   :  { %3103 = vmatpush1.bf16.msra.mxu0 %v7397_v47  ;;  %3633 = vmatpush1.bf16.msra.mxu1 %v5722_v23 }
 0x26e   :  { %3104 = vmatprep.subr.bf16.mxu0 %v7404_v55  ;;  %3634 = vmatprep.subr.bf16.mxu1 %v5727_v31 }
 0x26f   :  { %2971 = vmatprep.mubr.bf16.mxu0 %v7984_v17  ;;  %3609 = vmatprep.mubr.bf16.mxu1 %v7984_v17 }
 0x271   :  { %3105 = vmatpush1.bf16.msra.mxu0 %v7417_v63  ;;  %3635 = vmatpush1.bf16.msra.mxu1 %v5725_v26 }
 0x272   :  { %v7540_v54 = vpop.f32.mrb[40].mxu1  ;;  %3106 = vmatprep.subr.bf16.mxu0 %v7424_v44  ;;  %3636 = vmatprep.subr.bf16.mxu1 %v5730_v43 }
 0x273   :  { %v7546_v60 = vpop.f32.mrb[41].mxu1 }
 0x274   :  { %2972 = vmatmul.mubr.bf16.gmra.mrb[48].mxu0 %v7106_v2  ;;  %3610 = vmatmul.mubr.bf16.gmra.mrb[52].mxu1 %v7138_v18  ;;  %v3422_v51 = vpop.f32.mrb[42].mxu1  ;;  %v5734_v2 = vld [vmem:[%s7887_s3 + $0x260] ss:$8 sps:$4 sm:$0xff]  }
 0x275   :  { %3107 = vmatpush1.bf16.msra.mxu0 %v7433_v9  ;;  %3637 = vmatpush1.bf16.msra.mxu1 %v5728_v5  ;;  %v3423_v34 = vpop.f32.mrb[43].mxu1 }
 0x276   :  { %3108 = vmatprep.subr.bf16.mxu0 %v7440_v16  ;;  %3638 = vmatprep.subr.bf16.mxu1 %v5733_v6 }
 0x277   :  { %3130 = vmatprep.mubr.bf16.mxu0 %v7984_v17  ;;  %3660 = vmatprep.mubr.bf16.mxu1 %v7984_v17 }
 0x279   :  { %3109 = vmatpush1.bf16.msra.mxu0 %v7449_v50  ;;  %3639 = vmatpush1.bf16.msra.mxu1 %v5731_v59 }
 0x27a   :  { %3110 = vmatprep.subr.bf16.mxu0 %v7456_v52  ;;  %3640 = vmatprep.subr.bf16.mxu1 %v5736_v11 }
 0x27d   :  { %3111 = vmatpush1.bf16.msra.mxu0 %v7465_v58  ;;  %3641 = vmatpush1.bf16.msra.mxu1 %v5734_v2 }
 0x27e   :  { %3112 = vmatprep.subr.bf16.mxu0 %v7472_v39  ;;  %3642 = vmatprep.subr.bf16.mxu1 %v5739_v37 }
 0x281   :  { %3113 = vmatpush1.bf16.msra.mxu0 %v7479_v61  ;;  %3643 = vmatpush1.bf16.msra.mxu1 %v5737_v56 }
 0x282   :  { %3266 = vmatprep.subr.bf16.mxu0 %v7486_v62 }
 0x284   :  { %3131 = vmatmul.mubr.bf16.vlgmr.msra.gmra.mrb[32].mxu0 %v7369_v36  ;;  %3661 = vmatmul.mubr.bf16.vlgmr.msra.gmra.mrb[32].mxu1 %v7254_v40  ;;  %v5740_v40 = vld [vmem:[%s7889_s5] sm:$0xff]  }
 0x285   :  { %3267 = vmatpush1.bf16.msra.mxu0 %v7493_v15  ;;  %3140 = vmatprep.mubr.bf16.mxu0 %v7984_v17 }
 0x286   :  { %3268 = vmatprep.subr.bf16.mxu0 %v7500_v4  ;;  %3670 = vmatprep.mubr.bf16.mxu1 %v7984_v17 }
 0x289   :  { %3269 = vmatpush1.bf16.msra.mxu0 %v5719_v53 }
 0x28a   :  { %3270 = vmatprep.subr.bf16.mxu0 %v5724_v24 }
 0x28c   :  { %3141 = vmatmul.mubr.bf16.gmra.mrb[36].mxu0 %v7408_v1  ;;  %3671 = vmatmul.mubr.bf16.gmra.mrb[36].mxu1 %v7286_v41  ;;  %v5802_v41 = vmov 0.0  }
 0x28d   :  { %3271 = vmatpush1.bf16.msra.mxu0 %v5722_v23  ;;  %3150 = vmatprep.mubr.bf16.mxu0 %v7984_v17 }
 0x28e   :  { %3272 = vmatprep.subr.bf16.mxu0 %v5727_v31  ;;  %3680 = vmatprep.mubr.bf16.mxu1 %v7984_v17 }
 0x28f   :  { %5025 = vmatprep.subr.bf16.mxu1 %v5802_v41 }
 0x290   :  { %5026 = vmatpush3.bf16.msra.mxu1 %v5740_v40 }
 0x291   :  { %3273 = vmatpush1.bf16.msra.mxu0 %v5725_v26  ;;  %5027 = vmatprep.subr.bf16.mxu1 %v5802_v41 }
 0x292   :  { %3274 = vmatprep.subr.bf16.mxu0 %v5730_v43 }
 0x294   :  { %3151 = vmatmul.mubr.bf16.gmra.mrb[52].mxu0 %v7390_v32  ;;  %3681 = vmatmul.mubr.bf16.gmra.mrb[56].mxu1 %v7336_v42 }
 0x295   :  { %3275 = vmatpush1.bf16.msra.mxu0 %v5728_v5  ;;  %3298 = vmatprep.mubr.bf16.mxu0 %v7984_v17 }
 0x296   :  { %3276 = vmatprep.subr.bf16.mxu0 %v5733_v6  ;;  %5041 = vmatprep.mubr.msk.bf16.mxu1 %vm5803_vm1, %v5802_v41 }
 0x299   :  { %3277 = vmatpush1.bf16.msra.mxu0 %v5731_v59 }
 0x29a   :  { %3278 = vmatprep.subr.bf16.mxu0 %v5736_v11 }
 0x29d   :  { %3279 = vmatpush1.bf16.msra.mxu0 %v5734_v2 }
 0x29e   :  { %3280 = vmatprep.subr.bf16.mxu0 %v5739_v37 }
 0x2a1   :  { %3281 = vmatpush1.bf16.msra.mxu0 %v5737_v56 }
 0x2a2   :  { %5005 = vmatprep.subr.bf16.mxu0 %v5802_v41 }
 0x2a4   :  { %3299 = vmatmul.mubr.bf16.vlgmr.msra.gmra.mrb[32].mxu0 %v7064_v46  ;;  %v5741_v46 = vld [vmem:[%s7889_s5 + $0x40] sm:$0xff]  }
 0x2a5   :  { %3308 = vmatprep.mubr.bf16.mxu0 %v7984_v17  ;;  %5006 = vmatpush3.bf16.msra.mxu0 %v5741_v46 }
 0x2a6   :  { %5007 = vmatprep.subr.bf16.mxu0 %v5802_v41 }
 0x2ac   :  { %3309 = vmatmul.mubr.bf16.gmra.mrb[36].mxu0 %v7095_v48  ;;  %v5743_v48 = vld [vmem:[%s7889_s5 + $0x48] sm:$0xff]  }
 0x2ad   :  { %3318 = vmatprep.mubr.bf16.mxu0 %v7984_v17  ;;  %v5742_v17 = vld [vmem:[%s7889_s5 + $0x8] sm:$0xff]   ;;  %5008 = vmatpush3.bf16.msra.mxu0 %v5743_v48 }
 0x2ae   :  { %5028 = vmatpush3.bf16.msra.mxu1 %v5742_v17  ;;  %5009 = vmatprep.subr.bf16.mxu0 %v5802_v41 }
 0x2af   :  { %5029 = vmatprep.subr.bf16.mxu1 %v5802_v41 }
 0x2b1   :  { %5010 = vmatpush3.bf16.msra.mxu0 %v5745_v57 }
 0x2b2   :  { %5011 = vmatprep.subr.bf16.mxu0 %v5802_v41 }
 0x2b4   :  { %3319 = vmatmul.mubr.bf16.gmra.mrb[56].mxu0 %v7138_v18  ;;  %v5744_v18 = vld [vmem:[%s7889_s5 + $0x10] sm:$0xff]  }
 0x2b5   :  { %5030 = vmatpush3.bf16.msra.mxu1 %v5744_v18  ;;  %5012 = vmatpush3.bf16.msra.mxu0 %v5747_v12 }
 0x2b6   :  { %5031 = vmatprep.subr.bf16.mxu1 %v5802_v41  ;;  %5013 = vmatprep.subr.bf16.mxu0 %v5802_v41 }
 0x2b7   :  { %5021 = vmatprep.mubr.msk.bf16.mxu0 %vm5803_vm1, %v5802_v41 }
 0x2b9   :  { %5032 = vmatpush3.bf16.msra.mxu1 %v5746_v27  ;;  %5014 = vmatpush3.bf16.msra.mxu0 %v5749_v0 }
 0x2ba   :  { %5033 = vmatprep.subr.bf16.mxu1 %v5802_v41  ;;  %5015 = vmatprep.subr.bf16.mxu0 %v5802_v41 }
 0x2bd   :  { %5034 = vmatpush3.bf16.msra.mxu1 %v5748_v10  ;;  %5016 = vmatpush3.bf16.msra.mxu0 %v5751_v14 }
 0x2be   :  { %5035 = vmatprep.subr.bf16.mxu1 %v5802_v41  ;;  %5017 = vmatprep.subr.bf16.mxu0 %v5802_v41 }
 0x2c1   :  { %5036 = vmatpush3.bf16.msra.mxu1 %v5750_v28  ;;  %5018 = vmatpush3.bf16.msra.mxu0 %v5753_v19 }
 0x2c2   :  { %5037 = vmatprep.subr.bf16.mxu1 %v5802_v41  ;;  %5019 = vmatprep.subr.bf16.mxu0 %v5802_v41 }
 0x2c5   :  { %5038 = vmatpush3.bf16.msra.mxu1 %v5752_v3  ;;  %5020 = vmatpush3.bf16.msra.mxu0 %v5755_v22 }
 0x2c6   :  { %5039 = vmatprep.subr.bf16.mxu1 %v5802_v41  ;;  %5045 = vmatprep.subr.bf16.mxu0 %v5802_v41 }
 0x2c9   :  { %5040 = vmatpush3.bf16.msra.mxu1 %v5754_v7 }
 0x2ca   :  { %5065 = vmatprep.subr.bf16.mxu1 %v5802_v41 }
 0x307   :  { %v2662_v8 = vpop.f32.mrb[40].mxu0  ;;  %v3479_v42 = vpop.f32.mrb[44].mxu1 }
 0x308   :  { %v3480_v29 = vadd.f32 %v3479_v42, %v7540_v54  ;;  %v2664_v30 = vpop.f32.mrb[41].mxu0  ;;  %v3481_v45 = vpop.f32.mrb[45].mxu1  ;;  %v3337_v54 = vld [vmem:[%s7890_s4] sm:$0x3] }
 0x309   :  { %v3482_v33 = vadd.f32 %v3481_v45, %v7546_v60  ;;  %v2666_v13 = vpop.f32.mrb[42].mxu0  ;;  %v3483_v35 = vpop.f32.mrb[46].mxu1  ;;  %v7670_v6 = vrot.slane %v3337_v54, %v1082_v21  ;;  %v7674_v60 = vrot.slane %v3337_v54, %v1086_v25  ;;  %v5757_v54 = vld [vmem:[%s7889_s5 + $0x80] sm:$0xff]  }
 0x30a   :  { %v2667_v36 = vpop.f32.mrb[43].mxu0  ;;  %v3484_v38 = vpop.f32.mrb[47].mxu1 }
 0x327   :  { %v2803_v49 = vpop.f32.mrb[44].mxu0  ;;  %v3540_v32 = vpop.f32.mrb[48].mxu1 }
 0x328   :  { %v2804_v47 = vadd.f32 %v2803_v49, %v2662_v8  ;;  %v3555_v55 = vadd.f32 %v3540_v32, %v3480_v29  ;;  %v2805_v1 = vpop.f32.mrb[45].mxu0  ;;  %v3542_v63 = vpop.f32.mrb[49].mxu1 }
 0x329   :  { %v2806_v44 = vadd.f32 %v2805_v1, %v2664_v30  ;;  %v3556_v9 = vadd.f32 %v3542_v63, %v3482_v33  ;;  %v2807_v16 = vpop.f32.mrb[46].mxu0  ;;  %v3544_v50 = vpop.f32.mrb[50].mxu1 }
 0x32a   :  { %v2808_v52 = vpop.f32.mrb[47].mxu0  ;;  %v3545_v58 = vpop.f32.mrb[51].mxu1 }
 0x347   :  { %v2973_v39 = vpop.f32.mrb[48].mxu0  ;;  %v3611_v61 = vpop.f32.mrb[52].mxu1 }
 0x348   :  { %v2988_v62 = vadd.f32 %v2973_v39, %v2804_v47  ;;  %v3626_v15 = vadd.f32 %v3611_v61, %v3555_v55  ;;  %v2975_v4 = vpop.f32.mrb[49].mxu0  ;;  %v3613_v53 = vpop.f32.mrb[53].mxu1 }
 0x349   :  { %v2989_v24 = vadd.f32 %v2975_v4, %v2806_v44  ;;  %v3627_v23 = vadd.f32 %v3613_v53, %v3556_v9  ;;  %v2977_v31 = vpop.f32.mrb[50].mxu0  ;;  %v3615_v26 = vpop.f32.mrb[54].mxu1 }
 0x34a   :  { %v2978_v43 = vpop.f32.mrb[51].mxu0  ;;  %v3616_v5 = vpop.f32.mrb[55].mxu1  ;;  %v5756_v31 = vld [vmem:[%s7889_s5 + $0xc0] sm:$0xff]  }
 0x357   :  { %v3662_v51 = vpop.f32.mrb[32].mxu1 }
 0x358   :  { %v3699_v34 = vadd.f32 %v3662_v51, %v7670_v6  ;;  %v3664_v59 = vpop.f32.mrb[33].mxu1 }
 0x359   :  { %v3700_v11 = vadd.f32 %v3664_v59, %v7674_v60  ;;  %v3666_v2 = vpop.f32.mrb[34].mxu1 }
 0x35a   :  { %v3701_v37 = vadd.f32 %v3666_v2, %v7670_v6  ;;  %v3668_v56 = vpop.f32.mrb[35].mxu1 }
 0x35b   :  { %v3709_v40 = vmax.f32 %v3699_v34, %v3700_v11  ;;  %v3702_v46 = vadd.f32 %v3668_v56, %v7674_v60  ;;  %v5758_v11 = vld [vmem:[%s7889_s5 + $0xc8] sm:$0xff]  }
 0x35d   :  { %v3710_v17 = vmax.f32 %v3701_v37, %v3702_v46  ;;  %v5759_v46 = vld [vmem:[%s7889_s5 + $0x88] sm:$0xff]  }
 0x35f   :  { %v3672_v21 = vpop.f32.mrb[36].mxu1 }
 0x360   :  { %v3703_v48 = vadd.f32 %v3672_v21, %v7670_v6  ;;  %v3674_v20 = vpop.f32.mrb[37].mxu1 }
 0x361   :  { %v3704_v25 = vadd.f32 %v3674_v20, %v7674_v60  ;;  %v3676_v18 = vpop.f32.mrb[38].mxu1 }
 0x362   :  { %v3705_v57 = vadd.f32 %v3676_v18, %v7670_v6  ;;  %v3678_v27 = vpop.f32.mrb[39].mxu1 }
 0x363   :  { %v3711_v12 = vmax.f32 %v3703_v48, %v3704_v25  ;;  %v3706_v10 = vadd.f32 %v3678_v27, %v7674_v60 }
 0x365   :  { %v3712_v0 = vmax.f32 %v3705_v57, %v3706_v10  ;;  %v5760_v57 = vld [vmem:[%s7889_s5 + $0xd0] sm:$0xff]  }
 0x366   :  { %v5761_v10 = vld [vmem:[%s7889_s5 + $0x90] sm:$0xff]  }
 0x367   :  { %v3152_v28 = vpop.f32.mrb[52].mxu0  ;;  %v3682_v14 = vpop.f32.mrb[56].mxu1 }
 0x368   :  { %v3167_v3 = vadd.f32 %v3152_v28, %v2988_v62  ;;  %v3697_v19 = vadd.f32 %v3682_v14, %v3626_v15  ;;  %v3154_v7 = vpop.f32.mrb[53].mxu0  ;;  %v3684_v22 = vpop.f32.mrb[57].mxu1  ;;  %v5764_v14 = vld [vmem:[%s7889_s5 + $0xe0] sm:$0xff]  }
 0x369   :  { %v3168_v8 = vadd.f32 %v3154_v7, %v2989_v24  ;;  %v3698_v42 = vadd.f32 %v3684_v22, %v3627_v23  ;;  %v3156_v29 = vpop.f32.mrb[54].mxu0  ;;  %v3686_v30 = vpop.f32.mrb[58].mxu1  ;;  %v5767_v7 = vld [vmem:[%s7889_s5 + $0xa8] sm:$0xff]   ;;  %v5768_v22 = vld [vmem:[%s7889_s5 + $0xf0] sm:$0xff]  }
 0x36a   :  { %v7685_v45 = vadd.f32 %v3697_v19, %v7670_v6  ;;  %v3157_v33 = vpop.f32.mrb[55].mxu0  ;;  %v3687_v13 = vpop.f32.mrb[59].mxu1  ;;  %v5766_v19 = vld [vmem:[%s7889_s5 + $0xe8] sm:$0xff]   ;;  %v5771_v29 = vld [vmem:[%s7889_s5 + $0xb8] sm:$0xff]  }
 0x36b   :  { %v7688_v35 = vadd.f32 %v3698_v42, %v7674_v60  ;;  %v5770_v42 = vld [vmem:[%s7889_s5 + $0xf8] sm:$0xff]   ;;  %v5773_v33 = vld [vmem:[%s7889_s5 + $0x108] sm:$0xff]   ;;  %v5774_v13 = vld [vmem:[%s7889_s5 + $0x110] sm:$0xff]  }
 0x36d   :  { %v3713_v36 = vmax.f32 %v7685_v45, %v7688_v35  ;;  %v5772_v45 = vld [vmem:[%s7889_s5 + $0x100] sm:$0xff]   ;;  %v5775_v35 = vld [vmem:[%s7889_s5 + $0x118] sm:$0xff]  }
 0x377   :  { %v3300_v38 = vpop.f32.mrb[32].mxu0 }
 0x378   :  { %v3349_v49 = vadd.f32 %v7670_v6, %v3300_v38  ;;  %v3302_v32 = vpop.f32.mrb[33].mxu0  ;;  %v5777_v38 = vld [vmem:[%s7889_s5 + $0x128] sm:$0xff]  }
 0x379   :  { %v3350_v47 = vadd.f32 %v7674_v60, %v3302_v32  ;;  %v3304_v55 = vpop.f32.mrb[34].mxu0  ;;  %v5779_v32 = vld [vmem:[%s7889_s5 + $0x138] sm:$0xff]  }
 0x37a   :  { %v3351_v1 = vadd.f32 %v7670_v6, %v3304_v55  ;;  %v3306_v63 = vpop.f32.mrb[35].mxu0 }
 0x37b   :  { %v3359_v44 = vmax.f32 %v3349_v49, %v3350_v47  ;;  %v3352_v9 = vadd.f32 %v7674_v60, %v3306_v63  ;;  %v5778_v49 = vld [vmem:[%s7889_s5 + $0x130] sm:$0xff]   ;;  %v5781_v63 = vld [vmem:[%s7891_s7 + $0x8] sm:$0xff]  }
 0x37d   :  { %v3714_v16 = vmax.f32 %v3359_v44, %v3709_v40  ;;  %v3360_v50 = vmax.f32 %v3351_v1, %v3352_v9  ;;  %v5780_v1 = vld [vmem:[%s7891_s7] sm:$0xff]   ;;  %v5782_v44 = vld [vmem:[%s7891_s7 + $0x10] sm:$0xff]   ;;  %v5783_v9 = vld [vmem:[%s7891_s7 + $0x18] sm:$0xff]  }
 0x37f   :  { %v3715_v52 = vmax.f32 %v3360_v50, %v3710_v17  ;;  %v3310_v58 = vpop.f32.mrb[36].mxu0  ;;  %v3719_v62 = vmax.f32 %v3714_v16, 0.0  ;;  %v5784_v16 = vld [vmem:[%s7891_s7 + $0x20] sm:$0xff]   ;;  %v5785_v50 = vld [vmem:[%s7891_s7 + $0x28] sm:$0xff]  }
 0x380   :  { %v3353_v39 = vadd.f32 %v7670_v6, %v3310_v58  ;;  %v3312_v61 = vpop.f32.mrb[37].mxu0  ;;  %v5787_v58 = vld [vmem:[%s7891_s7 + $0x38] sm:$0xff]  }
 0x381   :  { %v3720_v15 = vmax.f32 %v3715_v52, 0.0  ;;  %v3354_v4 = vadd.f32 %v7674_v60, %v3312_v61  ;;  %v3314_v53 = vpop.f32.mrb[38].mxu0  ;;  %v5786_v52 = vld [vmem:[%s7891_s7 + $0x30] sm:$0xff]   ;;  %v5789_v61 = vld [vmem:[%s7892_s9 + $0x8] sm:$0xff]  }
 0x382   :  { %v3355_v24 = vadd.f32 %v7670_v6, %v3314_v53  ;;  %v3316_v23 = vpop.f32.mrb[39].mxu0  ;;  %v5793_v53 = vld [vmem:[%s7892_s9 + $0x28] sm:$0xff]  }
 0x383   :  { %v3724_v26 = vpack.c.bf16 %v3720_v15, %v3719_v62  ;;  %v3361_v43 = vmax.f32 %v3353_v39, %v3354_v4  ;;  %v3356_v5 = vadd.f32 %v7674_v60, %v3316_v23  ;;  %v5788_v39 = vld [vmem:[%s7892_s9] sm:$0xff]   ;;  %v5790_v62 = vld [vmem:[%s7892_s9 + $0x10] sm:$0xff]   ;;  %v5791_v15 = vld [vmem:[%s7892_s9 + $0x18] sm:$0xff]  }
 0x384   :  { %v5792_v4 = vld [vmem:[%s7892_s9 + $0x20] sm:$0xff]  }
 0x385   :  { %v3761_v51 = vrot.slane %v3724_v26, 4  ;;  %v3716_v34 = vmax.f32 %v3361_v43, %v3711_v12  ;;  %v3362_v59 = vmax.f32 %v3355_v24, %v3356_v5  ;;  %5042 = vmatmul.mubr.bf16.vlgmr.msra.gmra.mrb[60].mxu1 %v3724_v26 }
 0x386   :  { %5066 = vmatpush3.bf16.msra.mxu1 %v5756_v31  ;;  %5081 = vmatprep.mubr.msk.bf16.mxu1 %vm5803_vm1, %v5802_v41 }
 0x387   :  { %v3717_v2 = vmax.f32 %v3362_v59, %v3712_v0  ;;  %v3320_v37 = vpop.f32.mrb[56].mxu0  ;;  %5022 = vmatmul.mubr.bf16.vlgmr.msra.gmra.mrb[60].mxu0 %v3761_v51  ;;  %5067 = vmatprep.subr.bf16.mxu1 %v5802_v41  ;;  %v3721_v17 = vmax.f32 %v3716_v34, 0.0 }
 0x388   :  { %v3335_v56 = vadd.f32 %v3320_v37, %v3167_v3  ;;  %5046 = vmatpush3.bf16.msra.mxu0 %v5757_v54  ;;  %v3322_v40 = vpop.f32.mrb[57].mxu0  ;;  %5061 = vmatprep.mubr.msk.bf16.mxu0 %vm5803_vm1, %v5802_v41  ;;  %v5765_v3 = vld [vmem:[%s7889_s5 + $0xa0] sm:$0xff]  }
 0x389   :  { %v3722_v21 = vmax.f32 %v3717_v2, 0.0  ;;  %v3336_v48 = vadd.f32 %v3322_v40, %v3168_v8  ;;  %v3324_v20 = vpop.f32.mrb[58].mxu0  ;;  %5047 = vmatprep.subr.bf16.mxu0 %v5802_v41  ;;  %v5769_v8 = vld [vmem:[%s7889_s5 + $0xb0] sm:$0xff]  }
 0x38a   :  { %v3357_v25 = vadd.f32 %v7670_v6, %v3335_v56  ;;  %5068 = vmatpush3.bf16.msra.mxu1 %v5758_v11  ;;  %v3325_v18 = vpop.f32.mrb[59].mxu0  ;;  %v5762_v6 = vld [vmem:[%s7889_s5 + $0xd8] sm:$0xff]  }
 0x38b   :  { %v3725_v27 = vpack.c.bf16 %v3722_v21, %v3721_v17  ;;  %v3358_v12 = vadd.f32 %v7674_v60, %v3336_v48  ;;  %5069 = vmatprep.subr.bf16.mxu1 %v5802_v41  ;;  %v5763_v60 = vld [vmem:[%s7889_s5 + $0x98] sm:$0xff]  }
 0x38c   :  { %5048 = vmatpush3.bf16.msra.mxu0 %v5759_v46 }
 0x38d   :  { %v3363_v0 = vmax.f32 %v3357_v25, %v3358_v12  ;;  %5049 = vmatprep.subr.bf16.mxu0 %v5802_v41  ;;  %v4063_v30 = vrot.slane %v3725_v27, 4  ;;  %v4923_v25 = vld [vmem:[%s7893_s6] ss:$0 sm:$0xff] }
 0x38e   :  { %5070 = vmatpush3.bf16.msra.mxu1 %v5760_v57 }
 0x38f   :  { %v7731_v28 = vmax.f32 %v3363_v0, %v3713_v36  ;;  %5071 = vmatprep.subr.bf16.mxu1 %v5802_v41  ;;  %v5776_v36 = vld [vmem:[%s7889_s5 + $0x120] sm:$0xff]  }
 0x390   :  { %5050 = vmatpush3.bf16.msra.mxu0 %v5761_v10 }
 0x391   :  { %5051 = vmatprep.subr.bf16.mxu0 %v5802_v41  ;;  %v3723_v47 = vmax.f32 %v7731_v28, 0.0  ;;  %v5794_v28 = vld [vmem:[%s7892_s9 + $0x30] sm:$0xff]  }
 0x392   :  { %5072 = vmatpush3.bf16.msra.mxu1 %v5762_v6 }
 0x393   :  { %5073 = vmatprep.subr.bf16.mxu1 %v5802_v41  ;;  %v3726_v55 = vpack.c.bf16 %v3723_v47, %v3723_v47 }
 0x394   :  { %5052 = vmatpush3.bf16.msra.mxu0 %v5763_v60  ;;  %v5795_v60 = vld [vmem:[%s7892_s9 + $0x38] sm:$0xff]  }
 0x395   :  { %5053 = vmatprep.subr.bf16.mxu0 %v5802_v41 }
 0x396   :  { %5074 = vmatpush3.bf16.msra.mxu1 %v5764_v14  ;;  %v4924_v14 = vld [vmem:[%s7894_s8] ss:$0 sm:$0xff] }
 0x397   :  { %5075 = vmatprep.subr.bf16.mxu1 %v5802_v41 }
 0x398   :  { %5054 = vmatpush3.bf16.msra.mxu0 %v5765_v3 }
 0x399   :  { %5055 = vmatprep.subr.bf16.mxu0 %v5802_v41 }
 0x39a   :  { %5076 = vmatpush3.bf16.msra.mxu1 %v5766_v19 }
 0x39b   :  { %5077 = vmatprep.subr.bf16.mxu1 %v5802_v41 }
 0x39c   :  { %5056 = vmatpush3.bf16.msra.mxu0 %v5767_v7 }
 0x39d   :  { %5057 = vmatprep.subr.bf16.mxu0 %v5802_v41 }
 0x39e   :  { %5078 = vmatpush3.bf16.msra.mxu1 %v5768_v22 }
 0x39f   :  { %5079 = vmatprep.subr.bf16.mxu1 %v5802_v41 }
 0x3a0   :  { %5058 = vmatpush3.bf16.msra.mxu0 %v5769_v8 }
 0x3a1   :  { %5059 = vmatprep.subr.bf16.mxu0 %v5802_v41 }
 0x3a2   :  { %5080 = vmatpush3.bf16.msra.mxu1 %v5770_v42 }
 0x3a3   :  { %5105 = vmatprep.subr.bf16.mxu1 %v5802_v41 }
 0x3a4   :  { %5060 = vmatpush3.bf16.msra.mxu0 %v5771_v29 }
 0x3a5   :  { %5082 = vmatmul.mubr.bf16.vlgmr.msra.gmra.mrb[64].mxu1 %v4063_v30  ;;  %5085 = vmatprep.subr.bf16.mxu0 %v5802_v41 }
 0x3a6   :  { %5121 = vmatprep.mubr.msk.bf16.mxu1 %vm5803_vm1, %v5802_v41  ;;  %5106 = vmatpush3.bf16.msra.mxu1 %v5780_v1 }
 0x3a7   :  { %5062 = vmatmul.mubr.bf16.vlgmr.msra.gmra.mrb[64].mxu0 %v3725_v27  ;;  %5107 = vmatprep.subr.bf16.mxu1 %v5802_v41 }
 0x3a8   :  { %5086 = vmatpush3.bf16.msra.mxu0 %v5772_v45  ;;  %5101 = vmatprep.mubr.msk.bf16.mxu0 %vm5803_vm1, %v5802_v41 }
 0x3a9   :  { %5087 = vmatprep.subr.bf16.mxu0 %v5802_v41 }
 0x3aa   :  { %5108 = vmatpush3.bf16.msra.mxu1 %v5781_v63 }
 0x3ab   :  { %5109 = vmatprep.subr.bf16.mxu1 %v5802_v41 }
 0x3ac   :  { %5088 = vmatpush3.bf16.msra.mxu0 %v5773_v33 }
 0x3ad   :  { %5089 = vmatprep.subr.bf16.mxu0 %v5802_v41 }
 0x3ae   :  { %5110 = vmatpush3.bf16.msra.mxu1 %v5782_v44 }
 0x3af   :  { %5111 = vmatprep.subr.bf16.mxu1 %v5802_v41 }
 0x3b0   :  { %5090 = vmatpush3.bf16.msra.mxu0 %v5774_v13 }
 0x3b1   :  { %5091 = vmatprep.subr.bf16.mxu0 %v5802_v41 }
 0x3b2   :  { %5112 = vmatpush3.bf16.msra.mxu1 %v5783_v9 }
 0x3b3   :  { %5113 = vmatprep.subr.bf16.mxu1 %v5802_v41 }
 0x3b4   :  { %5092 = vmatpush3.bf16.msra.mxu0 %v5775_v35 }
 0x3b5   :  { %5093 = vmatprep.subr.bf16.mxu0 %v5802_v41 }
 0x3b6   :  { %5114 = vmatpush3.bf16.msra.mxu1 %v5784_v16 }
 0x3b7   :  { %5115 = vmatprep.subr.bf16.mxu1 %v5802_v41 }
 0x3b8   :  { %5094 = vmatpush3.bf16.msra.mxu0 %v5776_v36 }
 0x3b9   :  { %5095 = vmatprep.subr.bf16.mxu0 %v5802_v41 }
 0x3ba   :  { %5116 = vmatpush3.bf16.msra.mxu1 %v5785_v50 }
 0x3bb   :  { %5117 = vmatprep.subr.bf16.mxu1 %v5802_v41 }
 0x3bc   :  { %5096 = vmatpush3.bf16.msra.mxu0 %v5777_v38 }
 0x3bd   :  { %5097 = vmatprep.subr.bf16.mxu0 %v5802_v41 }
 0x3be   :  { %5118 = vmatpush3.bf16.msra.mxu1 %v5786_v52 }
 0x3bf   :  { %5119 = vmatprep.subr.bf16.mxu1 %v5802_v41 }
 0x3c0   :  { %5098 = vmatpush3.bf16.msra.mxu0 %v5778_v49 }
 0x3c1   :  { %5099 = vmatprep.subr.bf16.mxu0 %v5802_v41 }
 0x3c2   :  { %5120 = vmatpush3.bf16.msra.mxu1 %v5787_v58 }
 0x3c4   :  { %5100 = vmatpush3.bf16.msra.mxu0 %v5779_v32 }
 0x3c5   :  { %5125 = vmatprep.subr.bf16.mxu0 %v5802_v41 }
 0x3c7   :  { %5102 = vmatmul.mubr.bf16.vlgmr.msra.gmra.mrb[68].mxu0 %v3726_v55 }
 0x3c8   :  { %5141 = vmatprep.mubr.msk.bf16.mxu0 %vm5803_vm1, %v5802_v41  ;;  %5126 = vmatpush3.bf16.msra.mxu0 %v5788_v39 }
 0x3c9   :  { %5127 = vmatprep.subr.bf16.mxu0 %v5802_v41 }
 0x3cc   :  { %5128 = vmatpush3.bf16.msra.mxu0 %v5789_v61 }
 0x3cd   :  { %5129 = vmatprep.subr.bf16.mxu0 %v5802_v41 }
 0x3d0   :  { %5130 = vmatpush3.bf16.msra.mxu0 %v5790_v62 }
 0x3d1   :  { %5131 = vmatprep.subr.bf16.mxu0 %v5802_v41 }
 0x3d4   :  { %5132 = vmatpush3.bf16.msra.mxu0 %v5791_v15 }
 0x3d5   :  { %5133 = vmatprep.subr.bf16.mxu0 %v5802_v41 }
 0x3d8   :  { %5134 = vmatpush3.bf16.msra.mxu0 %v5792_v4 }
 0x3d9   :  { %5135 = vmatprep.subr.bf16.mxu0 %v5802_v41 }
 0x3dc   :  { %5136 = vmatpush3.bf16.msra.mxu0 %v5793_v53 }
 0x3dd   :  { %5137 = vmatprep.subr.bf16.mxu0 %v5802_v41 }
 0x3e0   :  { %5138 = vmatpush3.bf16.msra.mxu0 %v5794_v28 }
 0x3e1   :  { %5139 = vmatprep.subr.bf16.mxu0 %v5802_v41  ;;  %v4933_v41 = vld [vmem:[%s7895_s10] ss:$0 sm:$0xff] }
 0x3e4   :  { %5140 = vmatpush3.bf16.msra.mxu0 %v5795_v60 }
 0x458   :  { %v3933_v24 = vpop.f32.mrb[60].mxu1 }
 0x459   :  { %v5043_v23 = vpop.f32.mrb[61].mxu1 }
 0x45a   :  { %v3845_v31 = vpop.f32.mrb[60].mxu0  ;;  %v3936_v26 = vpop.f32.mrb[62].mxu1 }
 0x45b   :  { %v3934_v43 = vadd.f32 %v3933_v24, %v3845_v31  ;;  %v5023_v5 = vpop.f32.mrb[61].mxu0  ;;  %v5044_v54 = vpop.f32.mrb[63].mxu1 }
 0x45c   :  { %v3848_v51 = vpop.f32.mrb[62].mxu0 }
 0x45d   :  { %v5024_v34 = vpop.f32.mrb[63].mxu0 }
 0x478   :  { %v4147_v59 = vpop.f32.mrb[64].mxu1 }
 0x479   :  { %v5083_v11 = vpop.f32.mrb[65].mxu1 }
 0x47a   :  { %v4038_v2 = vpop.f32.mrb[64].mxu0  ;;  %v4150_v37 = vpop.f32.mrb[66].mxu1 }
 0x47b   :  { %v4044_v56 = vadd.f32 %v4038_v2, %v3934_v43  ;;  %v5063_v40 = vpop.f32.mrb[65].mxu0  ;;  %v5084_v46 = vpop.f32.mrb[67].mxu1 }
 0x47c   :  { %v4041_v17 = vpop.f32.mrb[66].mxu0 }
 0x47d   :  { %v5064_v21 = vpop.f32.mrb[67].mxu0  ;;  %v4153_v48 = vadd.f32 %v4147_v59, %v4044_v56 }
 0x49a   :  { %v4253_v20 = vpop.f32.mrb[68].mxu0 }
 0x49b   :  { %v4259_v18 = vadd.f32 %v4253_v20, %v4153_v48  ;;  %v5103_v57 = vpop.f32.mrb[69].mxu0 }
 0x49c   :  { %v4256_v27 = vpop.f32.mrb[70].mxu0 }
 0x49d   :  { %v4267_v12 = vadd.f32 %v4923_v25, %v4259_v18  ;;  %v5104_v10 = vpop.f32.mrb[71].mxu0 }
 0x49f   :  { %v4268_v0 = vmax.f32 %v4267_v12, 0.0 }
 0x4a1   :  { %v4269_v6 = vpack.c.bf16 %v4268_v0, %v4268_v0 }
 0x4a3   :  { %5122 = vmatmul.mubr.bf16.vlgmr.msra.gmra.mrb[68].mxu1 %v4269_v6 }
 0x576   :  { %v4375_v3 = vpop.f32.mrb[68].mxu1 }
 0x577   :  { %v4376_v19 = vadd.f32 %v4924_v14, %v4375_v3  ;;  %v5123_v7 = vpop.f32.mrb[69].mxu1 }
 0x578   :  { %v4378_v22 = vpop.f32.mrb[70].mxu1 }
 0x579   :  { %v4381_v8 = vmax.f32 %v4376_v19, 0.0  ;;  %v5124_v42 = vpop.f32.mrb[71].mxu1 }
 0x57b   :  { %v4382_v29 = vpack.c.bf16 %v4381_v8, %v4381_v8 }
 0x57d   :  { %5142 = vmatmul.mubr.bf16.vlgmr.msra.gmra.mrb[72].mxu0 %v4382_v29 }
 0x650   :  { %v4488_v30 = vpop.f32.mrb[72].mxu0 }
 0x651   :  { %v4489_v45 = vadd.f32 %v4933_v41, %v4488_v30  ;;  %v5143_v33 = vpop.f32.mrb[73].mxu0 }
 0x652   :  { %v4491_v13 = vpop.f32.mrb[74].mxu0 }
 0x653   :  { %4494 = vst [vmem:[%s7896_s11] sm:$0xff] %v4489_v45  ;;  %v5144_v35 = vpop.f32.mrb[75].mxu0 }

</bundles_post_ra>
